<compile_context>
chip_gen: v7x
topology: tpu7x:2x2x1
jax: 0.10.0
libtpu: 0.0.40
codegen_flags: <defaults>
</compile_context>

<pallas_src>
import functools

import numpy as np
import jax
import jax.numpy as jnp
from jax.experimental import pallas as pl
from jax.experimental.pallas import tpu as pltpu

# ----------------------------- small config ---------------------------------
# (scaled-down version of the original: in_channels=1, patch=(25,18), emb=450,
#  img=250x90, heads=3, depth=1, forward_expansion=4, lstm_hidden=64, classes=7)
IN_CH = 1
IMG_H, IMG_W = 16, 12          # input spatial size (H, W)
PW, PH = 8, 6                  # patch size -> emb = PW*PH (keeps img/emb == n_patches)
EMB = PW * PH                  # 48
HEADS = 3
HEAD_DIM = EMB // HEADS        # 16
LSTM_H = 16
FF_EXP = 2
N_CLASSES = 7
DEPTH = 1
N_PATCH = (IMG_H // PW) * (IMG_W // PH)    # 4
N_TOKENS = N_PATCH + 1                     # 5 (cls + patches)
PATCH_DIM = IN_CH * PW * PH                # 48
CHW = IN_CH * IMG_H * IMG_W                # 192
LN_EPS = 1e-5
NEG_INF = -1e30


# ----------------------------- tiny math helpers ------------------------------
def _erf_f32(v):
    # Abramowitz & Stegun 7.1.26, |err| <= 1.5e-7 -> float32-exact erf, built only
    # from exp/abs/where so the Mosaic lowering never needs a lax.erf primitive.
    a1, a2, a3, a4, a5 = 0.254829592, -0.284496736, 1.421413741, -1.453152027, 1.061405429
    p = 0.3275911
    av = jnp.abs(v)
    t = 1.0 / (1.0 + p * av)
    poly = ((((a5 * t + a4) * t + a3) * t + a2) * t + a1) * t
    e = 1.0 - poly * jnp.exp(-av * av)
    return jnp.where(v >= 0.0, e, -e)


def _gelu_exact(v):
    # nn.GELU() exact (erf) form.
    return 0.5 * v * (1.0 + _erf_f32(v * 0.7071067811865476))


def _layernorm(v, g, b):
    mu = jnp.mean(v, axis=-1, keepdims=True)
    var = jnp.mean(jnp.square(v - mu), axis=-1, keepdims=True)
    return (v - mu) * jax.lax.rsqrt(var + LN_EPS) * g + b


# ----------------------------- the fused kernel -------------------------------
def _fused_forward_kernel(
        # input + structure constants for the embedding
        x_ref, sel_ref, inmask_ref,
        # patch embedding weights
        embed_w_ref, tok_const_ref,
        # attention
        qkv_w_ref, qkv_b_ref, attn_bias_ref, proj_w_ref, proj_b_ref,
        ln1_g_ref, ln1_b_ref,
        # bidirectional LSTM
        wih_ref, bg_ref, whh_ref, fmask_ref, pf_ref, pb_ref, qf_ref, qb_ref, hmask_ref,
        fc_w_ref, fc_b_ref, ln2_g_ref, ln2_b_ref,
        # feed-forward (two fused Conv1d branches)
        prevm_ref, nextm_ref, ff_w_ref, ff_b_ref, ffp_w_ref, ffp_b_ref,
        ln3_g_ref, ln3_b_ref,
        # classifier
        pool_ref, cls_w_ref, cls_b_ref,
        # output + scratch
        o_ref, hseq_ref,
        *, batch):
    f32 = jnp.float32
    B, N, E, Hd = batch, N_TOKENS, EMB, HEAD_DIM
    H2 = 2 * LSTM_H

    def mm(a, b):
        return jnp.dot(a, b, preferred_element_type=f32)

    # ---- patch embedding: folded Conv2d(patch) + cls token + positional add ----
    # Each token row gets its batch's flat image (one-hot matmul), the per-token
    # input mask keeps only that patch's pixels, embed_w is patch_w scattered to
    # pixel order -> one masked matmul replaces im2col + reshape/transpose.
    x_rep = mm(sel_ref[...], x_ref[...])                          # (B*N, CHW)
    tok = mm(x_rep * inmask_ref[...], embed_w_ref[...])           # (B*N, E)
    tok = tok + jnp.concatenate([tok_const_ref[...]] * B, axis=0)  # cls/pos/conv-bias

    # ---- multi-head self-attention, batched over B with an additive mask ----
    # NOTE: reference applies softmax FIRST, then divides by sqrt(emb_size).
    qkv = mm(tok, qkv_w_ref[...]) + qkv_b_ref[...]                # (B*N, 3E), [Q|K|V]
    bias = attn_bias_ref[...]                                     # 0 same-batch, -1e30 cross
    inv_scale = 1.0 / (E ** 0.5)
    heads = []
    for h in range(HEADS):
        q = qkv[:, h * Hd:(h + 1) * Hd]
        k = qkv[:, E + h * Hd:E + (h + 1) * Hd]
        v = qkv[:, 2 * E + h * Hd:2 * E + (h + 1) * Hd]
        s = jax.lax.dot_general(q, k, (((1,), (1,)), ((), ())),
                                preferred_element_type=f32) + bias  # (B*N, B*N)
        att = jax.nn.softmax(s, axis=-1) * inv_scale
        heads.append(mm(att, v))
    attn = jnp.concatenate(heads, axis=-1)                        # (B*N, E)
    attn = mm(attn, proj_w_ref[...]) + proj_b_ref[...]
    x1 = _layernorm(tok + attn, ln1_g_ref[...], ln1_b_ref[...])

    # ---- bidirectional LSTM (both directions fused on the 128-wide gate axis) ----
    # Gate/direction lane layout: [i_f|i_b|f_f|f_b|g_f|g_b|o_f|o_b], each LSTM_H wide.
    xg = mm(x1, wih_ref[...]) + bg_ref[...]                       # (B*N, 8H) lane-dense
    fm = fmask_ref[...]                                           # forward-direction lanes
    xg_f = xg * fm
    xg_b = xg - xg_f
    # Precompute step-major gate inputs OUTSIDE the recurrence (fwd lanes take token t,
    # bwd lanes take token N-1-t) with two constant permutation matmuls.
    gate_seq = mm(pf_ref[...], xg_f) + mm(pb_ref[...], xg_b)      # (N*B, 8H)
    whh = whh_ref[...]                                            # (2H, 8H) block-diagonal
    h_state = jnp.zeros((B, H2), f32)
    c_state = jnp.zeros((B, H2), f32)
    # TODO(synk): on v5e, hold whh on the MXU across steps via pltpu.matmul_push_rhs/
    #             matmul_acc_lhs instead of re-issuing the dot each step.
    for t in range(N):                                            # 5-step serial recurrence
        g = gate_seq[t * B:(t + 1) * B, :] + mm(h_state, whh)     # (B, 8H)
        i_g = jax.nn.sigmoid(g[:, 0:H2])
        f_g = jax.nn.sigmoid(g[:, H2:2 * H2])
        g_g = jnp.tanh(g[:, 2 * H2:3 * H2])
        o_g = jax.nn.sigmoid(g[:, 3 * H2:4 * H2])
        c_state = f_g * c_state + i_g * g_g
        h_state = o_g * jnp.tanh(c_state)
        hseq_ref[t * B:(t + 1) * B, :] = h_state                  # scratch row store
    hseq = hseq_ref[...]                                          # (N*B, 2H), step-major
    hm = hmask_ref[...]                                           # forward half of h
    h_f = hseq * hm
    h_b = hseq - h_f
    # Token-order bidirectional output via two constant permutation matmuls.
    lstm_cat = mm(qf_ref[...], h_f) + mm(qb_ref[...], h_b)        # (B*N, 2H)
    lstm_out = mm(lstm_cat, fc_w_ref[...]) + fc_b_ref[...]
    x2 = _layernorm(x1 + lstm_out, ln2_g_ref[...], ln2_b_ref[...])

    # ---- feed-forward: two Conv1d(k=3,pad=1) branches fused into one matmul ----
    # im2col = global row shift + batch-boundary/wrap row masks (no per-batch concats).
    x_prev = jnp.roll(x2, 1, axis=0) * prevm_ref[...]
    x_next = jnp.roll(x2, -1, axis=0) * nextm_ref[...]
    u = jnp.concatenate([x_prev, x2, x_next], axis=-1)            # (B*N, 3E)
    ff = _gelu_exact(mm(u, ff_w_ref[...]) + ff_b_ref[...])        # (B*N, 2*FF_EXP*E)
    ff = mm(ff, ffp_w_ref[...]) + ffp_b_ref[...]                  # 1x1 projection
    x3 = _layernorm(x2 + ff, ln3_g_ref[...], ln3_b_ref[...])

    # ---- mean over all tokens (incl. CLS) + classifier, as one pooling matmul ----
    pooled = mm(pool_ref[...], x3)                                # (B, E)
    o_ref[...] = mm(pooled, cls_w_ref[...]) + cls_b_ref[...]      # (B, n_classes)


# ----------------------------- structure constants ----------------------------
def _patch_maps():
    """flat pixel index -> (owning patch, local position inside the patch)."""
    patch_of = np.zeros((CHW,), np.int32)
    local_of = np.zeros((CHW,), np.int32)
    n_w = IMG_W // PH
    for c in range(IN_CH):
        for h in range(IMG_H):
            for w in range(IMG_W):
                j = (c * IMG_H + h) * IMG_W + w
                patch_of[j] = (h // PW) * n_w + (w // PH)
                local_of[j] = (c * PW + (h % PW)) * PH + (w % PH)
    return patch_of, local_of


def _structure_constants(batch):
    """Batch-structure constants (numpy, trace-time -> baked XLA constants)."""
    B, N, E = batch, N_TOKENS, EMB
    BN = B * N
    f32 = np.float32

    sel = np.zeros((BN, B), f32)                       # token row -> its batch's image
    for q in range(BN):
        sel[q, q // N] = 1.0

    patch_of, _ = _patch_maps()
    inmask = np.zeros((BN, CHW), f32)                  # token row -> its patch's pixels
    for q in range(BN):
        n = q % N
        if n != 0:
            inmask[q, :] = (patch_of == (n - 1)).astype(f32)

    attn_bias = np.full((BN, BN), NEG_INF, f32)        # block out cross-batch attention
    for qi in range(BN):
        for ki in range(BN):
            if qi // N == ki // N:
                attn_bias[qi, ki] = 0.0

    # LSTM gate-sequence permutations: step-major rows (t, b) from token-major (b, n).
    pf = np.zeros((BN, BN), f32)
    pb = np.zeros((BN, BN), f32)
    for t in range(N):
        for b in range(B):
            pf[t * B + b, b * N + t] = 1.0
            pb[t * B + b, b * N + (N - 1 - t)] = 1.0
    # Output permutations: token-major rows (b, n) from step-major hidden states.
    qf = np.zeros((BN, BN), f32)
    qb = np.zeros((BN, BN), f32)
    for b in range(B):
        for n in range(N):
            qf[b * N + n, n * B + b] = 1.0
            qb[b * N + n, (N - 1 - n) * B + b] = 1.0

    gate_lane = np.arange(8 * LSTM_H)
    fmask = ((gate_lane // LSTM_H) % 2 == 0).astype(f32)[None, :]   # (1, 8H) fwd lanes
    hmask = (np.arange(2 * LSTM_H) < LSTM_H).astype(f32)[None, :]   # (1, 2H) fwd half

    prevm = np.ones((BN, E), f32)                      # kill wrap/cross-batch leaks
    nextm = np.ones((BN, E), f32)
    for b in range(B):
        prevm[b * N, :] = 0.0
        nextm[b * N + N - 1, :] = 0.0

    pool = np.zeros((B, BN), f32)                      # mean over tokens as a matmul
    for b in range(B):
        pool[b, b * N:(b + 1) * N] = 1.0 / N

    return dict(sel=sel, inmask=inmask, attn_bias=attn_bias, pf=pf, pb=pb,
                qf=qf, qb=qb, fmask=fmask, hmask=hmask,
                prevm=prevm, nextm=nextm, pool=pool)


# ----------------------------- model glue ------------------------------------
def forward(x, params):
    B = x.shape[0]
    BN = B * N_TOKENS
    # TODO(synk): depth>1 would loop the block body inside the kernel over stacked weights.
    lp = params["layers"][0]
    c = _structure_constants(B)
    x_flat = x.reshape(B, CHW)                         # contiguous reshape, no data movement

    operands = (
        x_flat, c["sel"], c["inmask"],
        params["embed_w"], params["tok_const"],
        lp["qkv_w"], lp["qkv_b"], c["attn_bias"], lp["attn_proj_w"], lp["attn_proj_b"],
        lp["ln1_g"], lp["ln1_b"],
        lp["lstm_wih"], lp["lstm_b"], lp["lstm_whh"], c["fmask"], c["pf"], c["pb"],
        c["qf"], c["qb"], c["hmask"], lp["lstm_fc_w"], lp["lstm_fc_b"],
        lp["ln2_g"], lp["ln2_b"],
        c["prevm"], c["nextm"], lp["ff_w"], lp["ff_b"], lp["ffp_w"], lp["ffp_b"],
        lp["ln3_g"], lp["ln3_b"],
        c["pool"], params["cls_w"], params["cls_b"],
    )
    vmem_spec = pl.BlockSpec(memory_space=pltpu.MemorySpace.VMEM)
    return pl.pallas_call(
        functools.partial(_fused_forward_kernel, batch=B),
        out_shape=jax.ShapeDtypeStruct((B, N_CLASSES), jnp.float32),
        in_specs=[vmem_spec] * len(operands),
        out_specs=vmem_spec,
        scratch_shapes=[pltpu.VMEM((BN, 2 * LSTM_H), jnp.float32)],
    )(*operands)


# ----------------------------- parameter init --------------------------------
def init_params(key):
    keys = iter(jax.random.split(key, 64))

    def nrm(shape, scale=0.05):
        return (scale * jax.random.normal(next(keys), shape)).astype(jnp.float32)

    ones = lambda *s: jnp.ones(s, jnp.float32)
    zeros = lambda *s: jnp.zeros(s, jnp.float32)

    patch_w = nrm((PATCH_DIM, EMB))                    # Conv2d(patch) as linear projection
    patch_b = nrm((1, EMB))
    cls = nrm((1, EMB))
    pos = nrm((N_TOKENS, EMB))

    _, local_of = _patch_maps()
    # Folded patch projection: row j of embed_w = patch_w row of pixel j's position
    # inside its own patch (the per-token input mask picks the patch).
    embed_w = patch_w[local_of]                        # (CHW, EMB)
    # Per-token additive constant: cls+pos for the CLS row, conv-bias+pos for patch rows.
    tok_const = pos + jnp.concatenate([cls, jnp.tile(patch_b, (N_PATCH, 1))], axis=0)

    p = {
        "embed_w": embed_w,
        "tok_const": tok_const,
        "cls_w": nrm((EMB, N_CLASSES)),
        "cls_b": nrm((1, N_CLASSES)),
        "layers": [],
    }
    H = LSTM_H
    for _ in range(DEPTH):
        # Block-diagonal recurrent weight for the fused bi-LSTM matmul:
        # rows = [h_f | h_b], columns interleaved per gate/direction.
        whh = jnp.zeros((2 * H, 8 * H), jnp.float32)
        for g_idx in range(4):
            for d in range(2):
                whh = whh.at[d * H:(d + 1) * H,
                             (2 * g_idx + d) * H:(2 * g_idx + d + 1) * H].set(nrm((H, H)))
        lp = {
            # qkv columns laid out [Q|K|V], head-minor: every 16-wide head slice is
            # 128-lane-tile aligned (V of head 2 starts exactly at lane 128).
            "qkv_w": nrm((EMB, 3 * EMB)), "qkv_b": nrm((1, 3 * EMB)),
            "attn_proj_w": nrm((EMB, EMB)), "attn_proj_b": nrm((1, EMB)),
            "ln1_g": ones(1, EMB), "ln1_b": zeros(1, EMB),
            # Both LSTM directions' input projections fused into one 128-wide matrix;
            # b_ih + b_hh folded into one bias.
            "lstm_wih": nrm((EMB, 8 * H)), "lstm_b": nrm((1, 8 * H)),
            "lstm_whh": whh,
            "lstm_fc_w": nrm((2 * H, EMB)), "lstm_fc_b": nrm((1, EMB)),
            "ln2_g": ones(1, EMB), "ln2_b": zeros(1, EMB),
            # Both Conv1d branches fused: rows = 3 taps x EMB (prev|cur|next),
            # cols = conv1|conv2 channels.
            "ff_w": nrm((3 * EMB, 2 * FF_EXP * EMB)), "ff_b": nrm((1, 2 * FF_EXP * EMB)),
            "ffp_w": nrm((2 * FF_EXP * EMB, EMB)), "ffp_b": nrm((1, EMB)),
            "ln3_g": ones(1, EMB), "ln3_b": zeros(1, EMB),
        }
        p["layers"].append(lp)
    return p


# ----------------------------- main -------------------------------------------
if __name__ == "__main__":
    key = jax.random.PRNGKey(0)
    pkey, xkey = jax.random.split(key)
    params = init_params(pkey)
    x = jax.random.normal(xkey, (2, IN_CH, IMG_H, IMG_W), dtype=jnp.float32)

    logits = jax.jit(forward)(x, params)
    logits = jax.block_until_ready(logits)

    assert logits.shape == (2, N_CLASSES)
    assert bool(jnp.all(jnp.isfinite(logits)))
    print("KERNEL_OK")
</pallas_src>

<mosaic_0001>
module attributes {stable_mosaic.version = 11 : i64} {
  func.func @_fused_forward_kernel(%arg0: memref<2x192xf32, #tpu.memory_space<vmem>>, %arg1: memref<10x2xf32, #tpu.memory_space<vmem>>, %arg2: memref<10x192xf32, #tpu.memory_space<vmem>>, %arg3: memref<192x48xf32, #tpu.memory_space<vmem>>, %arg4: memref<5x48xf32, #tpu.memory_space<vmem>>, %arg5: memref<48x144xf32, #tpu.memory_space<vmem>>, %arg6: memref<1x144xf32, #tpu.memory_space<vmem>>, %arg7: memref<10x10xf32, #tpu.memory_space<vmem>>, %arg8: memref<48x48xf32, #tpu.memory_space<vmem>>, %arg9: memref<1x48xf32, #tpu.memory_space<vmem>>, %arg10: memref<1x48xf32, #tpu.memory_space<vmem>>, %arg11: memref<1x48xf32, #tpu.memory_space<vmem>>, %arg12: memref<48x128xf32, #tpu.memory_space<vmem>>, %arg13: memref<1x128xf32, #tpu.memory_space<vmem>>, %arg14: memref<32x128xf32, #tpu.memory_space<vmem>>, %arg15: memref<1x128xf32, #tpu.memory_space<vmem>>, %arg16: memref<10x10xf32, #tpu.memory_space<vmem>>, %arg17: memref<10x10xf32, #tpu.memory_space<vmem>>, %arg18: memref<10x10xf32, #tpu.memory_space<vmem>>, %arg19: memref<10x10xf32, #tpu.memory_space<vmem>>, %arg20: memref<1x32xf32, #tpu.memory_space<vmem>>, %arg21: memref<32x48xf32, #tpu.memory_space<vmem>>, %arg22: memref<1x48xf32, #tpu.memory_space<vmem>>, %arg23: memref<1x48xf32, #tpu.memory_space<vmem>>, %arg24: memref<1x48xf32, #tpu.memory_space<vmem>>, %arg25: memref<10x48xf32, #tpu.memory_space<vmem>>, %arg26: memref<10x48xf32, #tpu.memory_space<vmem>>, %arg27: memref<144x192xf32, #tpu.memory_space<vmem>>, %arg28: memref<1x192xf32, #tpu.memory_space<vmem>>, %arg29: memref<192x48xf32, #tpu.memory_space<vmem>>, %arg30: memref<1x48xf32, #tpu.memory_space<vmem>>, %arg31: memref<1x48xf32, #tpu.memory_space<vmem>>, %arg32: memref<1x48xf32, #tpu.memory_space<vmem>>, %arg33: memref<2x10xf32, #tpu.memory_space<vmem>>, %arg34: memref<48x7xf32, #tpu.memory_space<vmem>>, %arg35: memref<1x7xf32, #tpu.memory_space<vmem>>, %arg36: memref<2x7xf32, #tpu.memory_space<vmem>>, %arg37: memref<10x32xf32, #tpu.memory_space<vmem>>) attributes {dimension_semantics = [], scalar_prefetch = 0 : i64, scratch_operands = 1 : i64, tpu.core_type = #tpu.core_type<tc>} {
    %c0 = arith.constant 0 : index
    %c0_0 = arith.constant 0 : index
    %0 = vector.load %arg1[%c0, %c0_0] : memref<10x2xf32, #tpu.memory_space<vmem>>, vector<10x2xf32>
    %c0_1 = arith.constant 0 : index
    %c0_2 = arith.constant 0 : index
    %1 = vector.load %arg0[%c0_1, %c0_2] : memref<2x192xf32, #tpu.memory_space<vmem>>, vector<2x192xf32>
    %cst = arith.constant dense<0.000000e+00> : vector<10x192xf32>
    %2 = tpu.matmul %0, %1, %cst {dimension_numbers = #tpu.dot_dimension_numbers<[1], [0], [0], [1], [0, 0, 1, 1], [], []>} : vector<10x2xf32>, vector<2x192xf32>, vector<10x192xf32> -> vector<10x192xf32>
    %c0_3 = arith.constant 0 : index
    %c0_4 = arith.constant 0 : index
    %3 = vector.load %arg2[%c0_3, %c0_4] : memref<10x192xf32, #tpu.memory_space<vmem>>, vector<10x192xf32>
    %4 = arith.mulf %2, %3 : vector<10x192xf32>
    %c0_5 = arith.constant 0 : index
    %c0_6 = arith.constant 0 : index
    %5 = vector.load %arg3[%c0_5, %c0_6] : memref<192x48xf32, #tpu.memory_space<vmem>>, vector<192x48xf32>
    %cst_7 = arith.constant dense<0.000000e+00> : vector<10x48xf32>
    %6 = tpu.matmul %4, %5, %cst_7 {dimension_numbers = #tpu.dot_dimension_numbers<[1], [0], [0], [1], [0, 0, 1, 1], [], []>} : vector<10x192xf32>, vector<192x48xf32>, vector<10x48xf32> -> vector<10x48xf32>
    %c0_8 = arith.constant 0 : index
    %c0_9 = arith.constant 0 : index
    %7 = vector.load %arg4[%c0_8, %c0_9] : memref<5x48xf32, #tpu.memory_space<vmem>>, vector<5x48xf32>
    %8 = tpu.concatenate %7, %7 in 0 : vector<5x48xf32>, vector<5x48xf32> -> vector<10x48xf32>
    %9 = arith.addf %6, %8 : vector<10x48xf32>
    %c0_10 = arith.constant 0 : index
    %c0_11 = arith.constant 0 : index
    %10 = vector.load %arg5[%c0_10, %c0_11] : memref<48x144xf32, #tpu.memory_space<vmem>>, vector<48x144xf32>
    %cst_12 = arith.constant dense<0.000000e+00> : vector<10x144xf32>
    %11 = tpu.matmul %9, %10, %cst_12 {dimension_numbers = #tpu.dot_dimension_numbers<[1], [0], [0], [1], [0, 0, 1, 1], [], []>} : vector<10x48xf32>, vector<48x144xf32>, vector<10x144xf32> -> vector<10x144xf32>
    %c0_13 = arith.constant 0 : index
    %c0_14 = arith.constant 0 : index
    %12 = vector.load %arg6[%c0_13, %c0_14] : memref<1x144xf32, #tpu.memory_space<vmem>>, vector<1x144xf32>
    %13 = vector.broadcast %12 : vector<1x144xf32> to vector<10x144xf32>
    %14 = arith.addf %11, %13 : vector<10x144xf32>
    %c0_15 = arith.constant 0 : index
    %c0_16 = arith.constant 0 : index
    %15 = vector.load %arg7[%c0_15, %c0_16] : memref<10x10xf32, #tpu.memory_space<vmem>>, vector<10x10xf32>
    %16 = vector.extract_strided_slice %14 {offsets = [0, 0], sizes = [10, 16], strides = [1, 1]} : vector<10x144xf32> to vector<10x16xf32>
    %17 = vector.extract_strided_slice %14 {offsets = [0, 48], sizes = [10, 16], strides = [1, 1]} : vector<10x144xf32> to vector<10x16xf32>
    %18 = vector.extract_strided_slice %14 {offsets = [0, 96], sizes = [10, 16], strides = [1, 1]} : vector<10x144xf32> to vector<10x16xf32>
    %cst_17 = arith.constant dense<0.000000e+00> : vector<10x10xf32>
    %19 = tpu.matmul %16, %17, %cst_17 {dimension_numbers = #tpu.dot_dimension_numbers<[1], [1], [0], [0], [0, 0, 1, 0], [], []>} : vector<10x16xf32>, vector<10x16xf32>, vector<10x10xf32> -> vector<10x10xf32>
    %20 = arith.addf %19, %15 : vector<10x10xf32>
    %cst_18 = arith.constant dense<0xFF800000> : vector<10xf32>
    %21 = vector.multi_reduction <maximumf>, %20, %cst_18 [1] : vector<10x10xf32> to vector<10xf32>
    %cst_19 = arith.constant 0xFF800000 : f32
    %22 = vector.broadcast %cst_19 : f32 to vector<10xf32>
    %23 = arith.maximumf %22, %21 : vector<10xf32>
    %24 = vector.shape_cast %23 : vector<10xf32> to vector<10x1xf32>
    %25 = vector.broadcast %24 : vector<10x1xf32> to vector<10x10xf32>
    %26 = arith.subf %20, %25 : vector<10x10xf32>
    %27 = math.exp %26 : vector<10x10xf32>
    %cst_20 = arith.constant dense<0.000000e+00> : vector<10xf32>
    %28 = vector.multi_reduction <add>, %27, %cst_20 [1] : vector<10x10xf32> to vector<10xf32>
    %29 = vector.shape_cast %28 : vector<10xf32> to vector<10x1xf32>
    %30 = vector.broadcast %29 : vector<10x1xf32> to vector<10x10xf32>
    %31 = arith.divf %27, %30 : vector<10x10xf32>
    %cst_21 = arith.constant 0.144337565 : f32
    %32 = vector.broadcast %cst_21 : f32 to vector<10x10xf32>
    %33 = arith.mulf %31, %32 : vector<10x10xf32>
    %cst_22 = arith.constant dense<0.000000e+00> : vector<10x16xf32>
    %34 = tpu.matmul %33, %18, %cst_22 {dimension_numbers = #tpu.dot_dimension_numbers<[1], [0], [0], [1], [0, 0, 1, 1], [], []>} : vector<10x10xf32>, vector<10x16xf32>, vector<10x16xf32> -> vector<10x16xf32>
    %35 = vector.extract_strided_slice %14 {offsets = [0, 16], sizes = [10, 16], strides = [1, 1]} : vector<10x144xf32> to vector<10x16xf32>
    %36 = vector.extract_strided_slice %14 {offsets = [0, 64], sizes = [10, 16], strides = [1, 1]} : vector<10x144xf32> to vector<10x16xf32>
    %37 = vector.extract_strided_slice %14 {offsets = [0, 112], sizes = [10, 16], strides = [1, 1]} : vector<10x144xf32> to vector<10x16xf32>
    %cst_23 = arith.constant dense<0.000000e+00> : vector<10x10xf32>
    %38 = tpu.matmul %35, %36, %cst_23 {dimension_numbers = #tpu.dot_dimension_numbers<[1], [1], [0], [0], [0, 0, 1, 0], [], []>} : vector<10x16xf32>, vector<10x16xf32>, vector<10x10xf32> -> vector<10x10xf32>
    %39 = arith.addf %38, %15 : vector<10x10xf32>
    %cst_24 = arith.constant dense<0xFF800000> : vector<10xf32>
    %40 = vector.multi_reduction <maximumf>, %39, %cst_24 [1] : vector<10x10xf32> to vector<10xf32>
    %cst_25 = arith.constant 0xFF800000 : f32
    %41 = vector.broadcast %cst_25 : f32 to vector<10xf32>
    %42 = arith.maximumf %41, %40 : vector<10xf32>
    %43 = vector.shape_cast %42 : vector<10xf32> to vector<10x1xf32>
    %44 = vector.broadcast %43 : vector<10x1xf32> to vector<10x10xf32>
    %45 = arith.subf %39, %44 : vector<10x10xf32>
    %46 = math.exp %45 : vector<10x10xf32>
    %cst_26 = arith.constant dense<0.000000e+00> : vector<10xf32>
    %47 = vector.multi_reduction <add>, %46, %cst_26 [1] : vector<10x10xf32> to vector<10xf32>
    %48 = vector.shape_cast %47 : vector<10xf32> to vector<10x1xf32>
    %49 = vector.broadcast %48 : vector<10x1xf32> to vector<10x10xf32>
    %50 = arith.divf %46, %49 : vector<10x10xf32>
    %cst_27 = arith.constant 0.144337565 : f32
    %51 = vector.broadcast %cst_27 : f32 to vector<10x10xf32>
    %52 = arith.mulf %50, %51 : vector<10x10xf32>
    %cst_28 = arith.constant dense<0.000000e+00> : vector<10x16xf32>
    %53 = tpu.matmul %52, %37, %cst_28 {dimension_numbers = #tpu.dot_dimension_numbers<[1], [0], [0], [1], [0, 0, 1, 1], [], []>} : vector<10x10xf32>, vector<10x16xf32>, vector<10x16xf32> -> vector<10x16xf32>
    %54 = vector.extract_strided_slice %14 {offsets = [0, 32], sizes = [10, 16], strides = [1, 1]} : vector<10x144xf32> to vector<10x16xf32>
    %55 = vector.extract_strided_slice %14 {offsets = [0, 80], sizes = [10, 16], strides = [1, 1]} : vector<10x144xf32> to vector<10x16xf32>
    %56 = vector.extract_strided_slice %14 {offsets = [0, 128], sizes = [10, 16], strides = [1, 1]} : vector<10x144xf32> to vector<10x16xf32>
    %cst_29 = arith.constant dense<0.000000e+00> : vector<10x10xf32>
    %57 = tpu.matmul %54, %55, %cst_29 {dimension_numbers = #tpu.dot_dimension_numbers<[1], [1], [0], [0], [0, 0, 1, 0], [], []>} : vector<10x16xf32>, vector<10x16xf32>, vector<10x10xf32> -> vector<10x10xf32>
    %58 = arith.addf %57, %15 : vector<10x10xf32>
    %cst_30 = arith.constant dense<0xFF800000> : vector<10xf32>
    %59 = vector.multi_reduction <maximumf>, %58, %cst_30 [1] : vector<10x10xf32> to vector<10xf32>
    %cst_31 = arith.constant 0xFF800000 : f32
    %60 = vector.broadcast %cst_31 : f32 to vector<10xf32>
    %61 = arith.maximumf %60, %59 : vector<10xf32>
    %62 = vector.shape_cast %61 : vector<10xf32> to vector<10x1xf32>
    %63 = vector.broadcast %62 : vector<10x1xf32> to vector<10x10xf32>
    %64 = arith.subf %58, %63 : vector<10x10xf32>
    %65 = math.exp %64 : vector<10x10xf32>
    %cst_32 = arith.constant dense<0.000000e+00> : vector<10xf32>
    %66 = vector.multi_reduction <add>, %65, %cst_32 [1] : vector<10x10xf32> to vector<10xf32>
    %67 = vector.shape_cast %66 : vector<10xf32> to vector<10x1xf32>
    %68 = vector.broadcast %67 : vector<10x1xf32> to vector<10x10xf32>
    %69 = arith.divf %65, %68 : vector<10x10xf32>
    %cst_33 = arith.constant 0.144337565 : f32
    %70 = vector.broadcast %cst_33 : f32 to vector<10x10xf32>
    %71 = arith.mulf %69, %70 : vector<10x10xf32>
    %cst_34 = arith.constant dense<0.000000e+00> : vector<10x16xf32>
    %72 = tpu.matmul %71, %56, %cst_34 {dimension_numbers = #tpu.dot_dimension_numbers<[1], [0], [0], [1], [0, 0, 1, 1], [], []>} : vector<10x10xf32>, vector<10x16xf32>, vector<10x16xf32> -> vector<10x16xf32>
    %73 = tpu.concatenate %34, %53, %72 in 1 : vector<10x16xf32>, vector<10x16xf32>, vector<10x16xf32> -> vector<10x48xf32>
    %c0_35 = arith.constant 0 : index
    %c0_36 = arith.constant 0 : index
    %74 = vector.load %arg8[%c0_35, %c0_36] : memref<48x48xf32, #tpu.memory_space<vmem>>, vector<48x48xf32>
    %cst_37 = arith.constant dense<0.000000e+00> : vector<10x48xf32>
    %75 = tpu.matmul %73, %74, %cst_37 {dimension_numbers = #tpu.dot_dimension_numbers<[1], [0], [0], [1], [0, 0, 1, 1], [], []>} : vector<10x48xf32>, vector<48x48xf32>, vector<10x48xf32> -> vector<10x48xf32>
    %c0_38 = arith.constant 0 : index
    %c0_39 = arith.constant 0 : index
    %76 = vector.load %arg9[%c0_38, %c0_39] : memref<1x48xf32, #tpu.memory_space<vmem>>, vector<1x48xf32>
    %77 = vector.broadcast %76 : vector<1x48xf32> to vector<10x48xf32>
    %78 = arith.addf %75, %77 : vector<10x48xf32>
    %79 = arith.addf %9, %78 : vector<10x48xf32>
    %c0_40 = arith.constant 0 : index
    %c0_41 = arith.constant 0 : index
    %80 = vector.load %arg10[%c0_40, %c0_41] : memref<1x48xf32, #tpu.memory_space<vmem>>, vector<1x48xf32>
    %c0_42 = arith.constant 0 : index
    %c0_43 = arith.constant 0 : index
    %81 = vector.load %arg11[%c0_42, %c0_43] : memref<1x48xf32, #tpu.memory_space<vmem>>, vector<1x48xf32>
    %cst_44 = arith.constant dense<0.000000e+00> : vector<10xf32>
    %82 = vector.multi_reduction <add>, %79, %cst_44 [1] : vector<10x48xf32> to vector<10xf32>
    %83 = vector.shape_cast %82 : vector<10xf32> to vector<10x1xf32>
    %cst_45 = arith.constant 4.800000e+01 : f32
    %84 = vector.broadcast %cst_45 : f32 to vector<10x1xf32>
    %85 = arith.divf %83, %84 : vector<10x1xf32>
    %86 = vector.broadcast %85 : vector<10x1xf32> to vector<10x48xf32>
    %87 = arith.subf %79, %86 : vector<10x48xf32>
    %88 = arith.mulf %87, %87 : vector<10x48xf32>
    %cst_46 = arith.constant dense<0.000000e+00> : vector<10xf32>
    %89 = vector.multi_reduction <add>, %88, %cst_46 [1] : vector<10x48xf32> to vector<10xf32>
    %90 = vector.shape_cast %89 : vector<10xf32> to vector<10x1xf32>
    %cst_47 = arith.constant 4.800000e+01 : f32
    %91 = vector.broadcast %cst_47 : f32 to vector<10x1xf32>
    %92 = arith.divf %90, %91 : vector<10x1xf32>
    %93 = vector.broadcast %85 : vector<10x1xf32> to vector<10x48xf32>
    %94 = arith.subf %79, %93 : vector<10x48xf32>
    %cst_48 = arith.constant 9.99999974E-6 : f32
    %95 = vector.broadcast %cst_48 : f32 to vector<10x1xf32>
    %96 = arith.addf %92, %95 : vector<10x1xf32>
    %97 = math.rsqrt %96 : vector<10x1xf32>
    %98 = vector.broadcast %97 : vector<10x1xf32> to vector<10x48xf32>
    %99 = arith.mulf %94, %98 : vector<10x48xf32>
    %100 = vector.broadcast %80 : vector<1x48xf32> to vector<10x48xf32>
    %101 = arith.mulf %99, %100 : vector<10x48xf32>
    %102 = vector.broadcast %81 : vector<1x48xf32> to vector<10x48xf32>
    %103 = arith.addf %101, %102 : vector<10x48xf32>
    %c0_49 = arith.constant 0 : index
    %c0_50 = arith.constant 0 : index
    %104 = vector.load %arg12[%c0_49, %c0_50] : memref<48x128xf32, #tpu.memory_space<vmem>>, vector<48x128xf32>
    %cst_51 = arith.constant dense<0.000000e+00> : vector<10x128xf32>
    %105 = tpu.matmul %103, %104, %cst_51 {dimension_numbers = #tpu.dot_dimension_numbers<[1], [0], [0], [1], [0, 0, 1, 1], [], []>} : vector<10x48xf32>, vector<48x128xf32>, vector<10x128xf32> -> vector<10x128xf32>
    %c0_52 = arith.constant 0 : index
    %c0_53 = arith.constant 0 : index
    %106 = vector.load %arg13[%c0_52, %c0_53] : memref<1x128xf32, #tpu.memory_space<vmem>>, vector<1x128xf32>
    %107 = vector.broadcast %106 : vector<1x128xf32> to vector<10x128xf32>
    %108 = arith.addf %105, %107 : vector<10x128xf32>
    %c0_54 = arith.constant 0 : index
    %c0_55 = arith.constant 0 : index
    %109 = vector.load %arg15[%c0_54, %c0_55] : memref<1x128xf32, #tpu.memory_space<vmem>>, vector<1x128xf32>
    %110 = vector.broadcast %109 : vector<1x128xf32> to vector<10x128xf32>
    %111 = arith.mulf %108, %110 : vector<10x128xf32>
    %112 = arith.subf %108, %111 : vector<10x128xf32>
    %c0_56 = arith.constant 0 : index
    %c0_57 = arith.constant 0 : index
    %113 = vector.load %arg16[%c0_56, %c0_57] : memref<10x10xf32, #tpu.memory_space<vmem>>, vector<10x10xf32>
    %cst_58 = arith.constant dense<0.000000e+00> : vector<10x128xf32>
    %114 = tpu.matmul %113, %111, %cst_58 {dimension_numbers = #tpu.dot_dimension_numbers<[1], [0], [0], [1], [0, 0, 1, 1], [], []>} : vector<10x10xf32>, vector<10x128xf32>, vector<10x128xf32> -> vector<10x128xf32>
    %c0_59 = arith.constant 0 : index
    %c0_60 = arith.constant 0 : index
    %115 = vector.load %arg17[%c0_59, %c0_60] : memref<10x10xf32, #tpu.memory_space<vmem>>, vector<10x10xf32>
    %cst_61 = arith.constant dense<0.000000e+00> : vector<10x128xf32>
    %116 = tpu.matmul %115, %112, %cst_61 {dimension_numbers = #tpu.dot_dimension_numbers<[1], [0], [0], [1], [0, 0, 1, 1], [], []>} : vector<10x10xf32>, vector<10x128xf32>, vector<10x128xf32> -> vector<10x128xf32>
    %117 = arith.addf %114, %116 : vector<10x128xf32>
    %c0_62 = arith.constant 0 : index
    %c0_63 = arith.constant 0 : index
    %118 = vector.load %arg14[%c0_62, %c0_63] : memref<32x128xf32, #tpu.memory_space<vmem>>, vector<32x128xf32>
    %cst_64 = arith.constant 0.000000e+00 : f32
    %119 = vector.broadcast %cst_64 : f32 to vector<2x32xf32>
    %cst_65 = arith.constant 0.000000e+00 : f32
    %120 = vector.broadcast %cst_65 : f32 to vector<2x32xf32>
    %121 = vector.extract_strided_slice %117 {offsets = [0, 0], sizes = [2, 128], strides = [1, 1]} : vector<10x128xf32> to vector<2x128xf32>
    %cst_66 = arith.constant dense<0.000000e+00> : vector<2x128xf32>
    %122 = tpu.matmul %119, %118, %cst_66 {dimension_numbers = #tpu.dot_dimension_numbers<[1], [0], [0], [1], [0, 0, 1, 1], [], []>} : vector<2x32xf32>, vector<32x128xf32>, vector<2x128xf32> -> vector<2x128xf32>
    %123 = arith.addf %121, %122 : vector<2x128xf32>
    %124 = vector.extract_strided_slice %123 {offsets = [0, 0], sizes = [2, 32], strides = [1, 1]} : vector<2x128xf32> to vector<2x32xf32>
    %125 = arith.negf %124 : vector<2x32xf32>
    %126 = math.exp %125 : vector<2x32xf32>
    %cst_67 = arith.constant 1.000000e+00 : f32
    %127 = vector.broadcast %cst_67 : f32 to vector<2x32xf32>
    %128 = arith.addf %127, %126 : vector<2x32xf32>
    %129 = arith.divf %127, %128 : vector<2x32xf32>
    %130 = vector.extract_strided_slice %123 {offsets = [0, 32], sizes = [2, 32], strides = [1, 1]} : vector<2x128xf32> to vector<2x32xf32>
    %131 = arith.negf %130 : vector<2x32xf32>
    %132 = math.exp %131 : vector<2x32xf32>
    %cst_68 = arith.constant 1.000000e+00 : f32
    %133 = vector.broadcast %cst_68 : f32 to vector<2x32xf32>
    %134 = arith.addf %133, %132 : vector<2x32xf32>
    %135 = arith.divf %133, %134 : vector<2x32xf32>
    %136 = vector.extract_strided_slice %123 {offsets = [0, 64], sizes = [2, 32], strides = [1, 1]} : vector<2x128xf32> to vector<2x32xf32>
    %137 = math.tanh %136 : vector<2x32xf32>
    %138 = vector.extract_strided_slice %123 {offsets = [0, 96], sizes = [2, 32], strides = [1, 1]} : vector<2x128xf32> to vector<2x32xf32>
    %139 = arith.negf %138 : vector<2x32xf32>
    %140 = math.exp %139 : vector<2x32xf32>
    %cst_69 = arith.constant 1.000000e+00 : f32
    %141 = vector.broadcast %cst_69 : f32 to vector<2x32xf32>
    %142 = arith.addf %141, %140 : vector<2x32xf32>
    %143 = arith.divf %141, %142 : vector<2x32xf32>
    %144 = arith.mulf %135, %120 : vector<2x32xf32>
    %145 = arith.mulf %129, %137 : vector<2x32xf32>
    %146 = arith.addf %144, %145 : vector<2x32xf32>
    %147 = math.tanh %146 : vector<2x32xf32>
    %148 = arith.mulf %143, %147 : vector<2x32xf32>
    %c0_70 = arith.constant 0 : index
    %c0_71 = arith.constant 0 : index
    %149 = vector.load %arg37[%c0_70, %c0_71] : memref<10x32xf32, #tpu.memory_space<vmem>>, vector<2x32xf32>
    tpu.vector_store %arg37[%c0_70, %c0_71], %148 {strides = array<i32>} : memref<10x32xf32, #tpu.memory_space<vmem>>, vector<2x32xf32>,
    %150 = vector.extract_strided_slice %117 {offsets = [2, 0], sizes = [2, 128], strides = [1, 1]} : vector<10x128xf32> to vector<2x128xf32>
    %cst_72 = arith.constant dense<0.000000e+00> : vector<2x128xf32>
    %151 = tpu.matmul %148, %118, %cst_72 {dimension_numbers = #tpu.dot_dimension_numbers<[1], [0], [0], [1], [0, 0, 1, 1], [], []>} : vector<2x32xf32>, vector<32x128xf32>, vector<2x128xf32> -> vector<2x128xf32>
    %152 = arith.addf %150, %151 : vector<2x128xf32>
    %153 = vector.extract_strided_slice %152 {offsets = [0, 0], sizes = [2, 32], strides = [1, 1]} : vector<2x128xf32> to vector<2x32xf32>
    %154 = arith.negf %153 : vector<2x32xf32>
    %155 = math.exp %154 : vector<2x32xf32>
    %cst_73 = arith.constant 1.000000e+00 : f32
    %156 = vector.broadcast %cst_73 : f32 to vector<2x32xf32>
    %157 = arith.addf %156, %155 : vector<2x32xf32>
    %158 = arith.divf %156, %157 : vector<2x32xf32>
    %159 = vector.extract_strided_slice %152 {offsets = [0, 32], sizes = [2, 32], strides = [1, 1]} : vector<2x128xf32> to vector<2x32xf32>
    %160 = arith.negf %159 : vector<2x32xf32>
    %161 = math.exp %160 : vector<2x32xf32>
    %cst_74 = arith.constant 1.000000e+00 : f32
    %162 = vector.broadcast %cst_74 : f32 to vector<2x32xf32>
    %163 = arith.addf %162, %161 : vector<2x32xf32>
    %164 = arith.divf %162, %163 : vector<2x32xf32>
    %165 = vector.extract_strided_slice %152 {offsets = [0, 64], sizes = [2, 32], strides = [1, 1]} : vector<2x128xf32> to vector<2x32xf32>
    %166 = math.tanh %165 : vector<2x32xf32>
    %167 = vector.extract_strided_slice %152 {offsets = [0, 96], sizes = [2, 32], strides = [1, 1]} : vector<2x128xf32> to vector<2x32xf32>
    %168 = arith.negf %167 : vector<2x32xf32>
    %169 = math.exp %168 : vector<2x32xf32>
    %cst_75 = arith.constant 1.000000e+00 : f32
    %170 = vector.broadcast %cst_75 : f32 to vector<2x32xf32>
    %171 = arith.addf %170, %169 : vector<2x32xf32>
    %172 = arith.divf %170, %171 : vector<2x32xf32>
    %173 = arith.mulf %164, %146 : vector<2x32xf32>
    %174 = arith.mulf %158, %166 : vector<2x32xf32>
    %175 = arith.addf %173, %174 : vector<2x32xf32>
    %176 = math.tanh %175 : vector<2x32xf32>
    %177 = arith.mulf %172, %176 : vector<2x32xf32>
    %c2 = arith.constant 2 : index
    %c0_76 = arith.constant 0 : index
    %178 = vector.load %arg37[%c2, %c0_76] : memref<10x32xf32, #tpu.memory_space<vmem>>, vector<2x32xf32>
    tpu.vector_store %arg37[%c2, %c0_76], %177 {strides = array<i32>} : memref<10x32xf32, #tpu.memory_space<vmem>>, vector<2x32xf32>,
    %179 = vector.extract_strided_slice %117 {offsets = [4, 0], sizes = [2, 128], strides = [1, 1]} : vector<10x128xf32> to vector<2x128xf32>
    %cst_77 = arith.constant dense<0.000000e+00> : vector<2x128xf32>
    %180 = tpu.matmul %177, %118, %cst_77 {dimension_numbers = #tpu.dot_dimension_numbers<[1], [0], [0], [1], [0, 0, 1, 1], [], []>} : vector<2x32xf32>, vector<32x128xf32>, vector<2x128xf32> -> vector<2x128xf32>
    %181 = arith.addf %179, %180 : vector<2x128xf32>
    %182 = vector.extract_strided_slice %181 {offsets = [0, 0], sizes = [2, 32], strides = [1, 1]} : vector<2x128xf32> to vector<2x32xf32>
    %183 = arith.negf %182 : vector<2x32xf32>
    %184 = math.exp %183 : vector<2x32xf32>
    %cst_78 = arith.constant 1.000000e+00 : f32
    %185 = vector.broadcast %cst_78 : f32 to vector<2x32xf32>
    %186 = arith.addf %185, %184 : vector<2x32xf32>
    %187 = arith.divf %185, %186 : vector<2x32xf32>
    %188 = vector.extract_strided_slice %181 {offsets = [0, 32], sizes = [2, 32], strides = [1, 1]} : vector<2x128xf32> to vector<2x32xf32>
    %189 = arith.negf %188 : vector<2x32xf32>
    %190 = math.exp %189 : vector<2x32xf32>
    %cst_79 = arith.constant 1.000000e+00 : f32
    %191 = vector.broadcast %cst_79 : f32 to vector<2x32xf32>
    %192 = arith.addf %191, %190 : vector<2x32xf32>
    %193 = arith.divf %191, %192 : vector<2x32xf32>
    %194 = vector.extract_strided_slice %181 {offsets = [0, 64], sizes = [2, 32], strides = [1, 1]} : vector<2x128xf32> to vector<2x32xf32>
    %195 = math.tanh %194 : vector<2x32xf32>
    %196 = vector.extract_strided_slice %181 {offsets = [0, 96], sizes = [2, 32], strides = [1, 1]} : vector<2x128xf32> to vector<2x32xf32>
    %197 = arith.negf %196 : vector<2x32xf32>
    %198 = math.exp %197 : vector<2x32xf32>
    %cst_80 = arith.constant 1.000000e+00 : f32
    %199 = vector.broadcast %cst_80 : f32 to vector<2x32xf32>
    %200 = arith.addf %199, %198 : vector<2x32xf32>
    %201 = arith.divf %199, %200 : vector<2x32xf32>
    %202 = arith.mulf %193, %175 : vector<2x32xf32>
    %203 = arith.mulf %187, %195 : vector<2x32xf32>
    %204 = arith.addf %202, %203 : vector<2x32xf32>
    %205 = math.tanh %204 : vector<2x32xf32>
    %206 = arith.mulf %201, %205 : vector<2x32xf32>
    %c4 = arith.constant 4 : index
    %c0_81 = arith.constant 0 : index
    %207 = vector.load %arg37[%c4, %c0_81] : memref<10x32xf32, #tpu.memory_space<vmem>>, vector<2x32xf32>
    tpu.vector_store %arg37[%c4, %c0_81], %206 {strides = array<i32>} : memref<10x32xf32, #tpu.memory_space<vmem>>, vector<2x32xf32>,
    %208 = vector.extract_strided_slice %117 {offsets = [6, 0], sizes = [2, 128], strides = [1, 1]} : vector<10x128xf32> to vector<2x128xf32>
    %cst_82 = arith.constant dense<0.000000e+00> : vector<2x128xf32>
    %209 = tpu.matmul %206, %118, %cst_82 {dimension_numbers = #tpu.dot_dimension_numbers<[1], [0], [0], [1], [0, 0, 1, 1], [], []>} : vector<2x32xf32>, vector<32x128xf32>, vector<2x128xf32> -> vector<2x128xf32>
    %210 = arith.addf %208, %209 : vector<2x128xf32>
    %211 = vector.extract_strided_slice %210 {offsets = [0, 0], sizes = [2, 32], strides = [1, 1]} : vector<2x128xf32> to vector<2x32xf32>
    %212 = arith.negf %211 : vector<2x32xf32>
    %213 = math.exp %212 : vector<2x32xf32>
    %cst_83 = arith.constant 1.000000e+00 : f32
    %214 = vector.broadcast %cst_83 : f32 to vector<2x32xf32>
    %215 = arith.addf %214, %213 : vector<2x32xf32>
    %216 = arith.divf %214, %215 : vector<2x32xf32>
    %217 = vector.extract_strided_slice %210 {offsets = [0, 32], sizes = [2, 32], strides = [1, 1]} : vector<2x128xf32> to vector<2x32xf32>
    %218 = arith.negf %217 : vector<2x32xf32>
    %219 = math.exp %218 : vector<2x32xf32>
    %cst_84 = arith.constant 1.000000e+00 : f32
    %220 = vector.broadcast %cst_84 : f32 to vector<2x32xf32>
    %221 = arith.addf %220, %219 : vector<2x32xf32>
    %222 = arith.divf %220, %221 : vector<2x32xf32>
    %223 = vector.extract_strided_slice %210 {offsets = [0, 64], sizes = [2, 32], strides = [1, 1]} : vector<2x128xf32> to vector<2x32xf32>
    %224 = math.tanh %223 : vector<2x32xf32>
    %225 = vector.extract_strided_slice %210 {offsets = [0, 96], sizes = [2, 32], strides = [1, 1]} : vector<2x128xf32> to vector<2x32xf32>
    %226 = arith.negf %225 : vector<2x32xf32>
    %227 = math.exp %226 : vector<2x32xf32>
    %cst_85 = arith.constant 1.000000e+00 : f32
    %228 = vector.broadcast %cst_85 : f32 to vector<2x32xf32>
    %229 = arith.addf %228, %227 : vector<2x32xf32>
    %230 = arith.divf %228, %229 : vector<2x32xf32>
    %231 = arith.mulf %222, %204 : vector<2x32xf32>
    %232 = arith.mulf %216, %224 : vector<2x32xf32>
    %233 = arith.addf %231, %232 : vector<2x32xf32>
    %234 = math.tanh %233 : vector<2x32xf32>
    %235 = arith.mulf %230, %234 : vector<2x32xf32>
    %c6 = arith.constant 6 : index
    %c0_86 = arith.constant 0 : index
    %236 = vector.load %arg37[%c6, %c0_86] : memref<10x32xf32, #tpu.memory_space<vmem>>, vector<2x32xf32>
    tpu.vector_store %arg37[%c6, %c0_86], %235 {strides = array<i32>} : memref<10x32xf32, #tpu.memory_space<vmem>>, vector<2x32xf32>,
    %237 = vector.extract_strided_slice %117 {offsets = [8, 0], sizes = [2, 128], strides = [1, 1]} : vector<10x128xf32> to vector<2x128xf32>
    %cst_87 = arith.constant dense<0.000000e+00> : vector<2x128xf32>
    %238 = tpu.matmul %235, %118, %cst_87 {dimension_numbers = #tpu.dot_dimension_numbers<[1], [0], [0], [1], [0, 0, 1, 1], [], []>} : vector<2x32xf32>, vector<32x128xf32>, vector<2x128xf32> -> vector<2x128xf32>
    %239 = arith.addf %237, %238 : vector<2x128xf32>
    %240 = vector.extract_strided_slice %239 {offsets = [0, 0], sizes = [2, 32], strides = [1, 1]} : vector<2x128xf32> to vector<2x32xf32>
    %241 = arith.negf %240 : vector<2x32xf32>
    %242 = math.exp %241 : vector<2x32xf32>
    %cst_88 = arith.constant 1.000000e+00 : f32
    %243 = vector.broadcast %cst_88 : f32 to vector<2x32xf32>
    %244 = arith.addf %243, %242 : vector<2x32xf32>
    %245 = arith.divf %243, %244 : vector<2x32xf32>
    %246 = vector.extract_strided_slice %239 {offsets = [0, 32], sizes = [2, 32], strides = [1, 1]} : vector<2x128xf32> to vector<2x32xf32>
    %247 = arith.negf %246 : vector<2x32xf32>
    %248 = math.exp %247 : vector<2x32xf32>
    %cst_89 = arith.constant 1.000000e+00 : f32
    %249 = vector.broadcast %cst_89 : f32 to vector<2x32xf32>
    %250 = arith.addf %249, %248 : vector<2x32xf32>
    %251 = arith.divf %249, %250 : vector<2x32xf32>
    %252 = vector.extract_strided_slice %239 {offsets = [0, 64], sizes = [2, 32], strides = [1, 1]} : vector<2x128xf32> to vector<2x32xf32>
    %253 = math.tanh %252 : vector<2x32xf32>
    %254 = vector.extract_strided_slice %239 {offsets = [0, 96], sizes = [2, 32], strides = [1, 1]} : vector<2x128xf32> to vector<2x32xf32>
    %255 = arith.negf %254 : vector<2x32xf32>
    %256 = math.exp %255 : vector<2x32xf32>
    %cst_90 = arith.constant 1.000000e+00 : f32
    %257 = vector.broadcast %cst_90 : f32 to vector<2x32xf32>
    %258 = arith.addf %257, %256 : vector<2x32xf32>
    %259 = arith.divf %257, %258 : vector<2x32xf32>
    %260 = arith.mulf %251, %233 : vector<2x32xf32>
    %261 = arith.mulf %245, %253 : vector<2x32xf32>
    %262 = arith.addf %260, %261 : vector<2x32xf32>
    %263 = math.tanh %262 : vector<2x32xf32>
    %264 = arith.mulf %259, %263 : vector<2x32xf32>
    %c8 = arith.constant 8 : index
    %c0_91 = arith.constant 0 : index
    %265 = vector.load %arg37[%c8, %c0_91] : memref<10x32xf32, #tpu.memory_space<vmem>>, vector<2x32xf32>
    tpu.vector_store %arg37[%c8, %c0_91], %264 {strides = array<i32>} : memref<10x32xf32, #tpu.memory_space<vmem>>, vector<2x32xf32>,
    %c0_92 = arith.constant 0 : index
    %c0_93 = arith.constant 0 : index
    %266 = vector.load %arg37[%c0_92, %c0_93] : memref<10x32xf32, #tpu.memory_space<vmem>>, vector<10x32xf32>
    %c0_94 = arith.constant 0 : index
    %c0_95 = arith.constant 0 : index
    %267 = vector.load %arg20[%c0_94, %c0_95] : memref<1x32xf32, #tpu.memory_space<vmem>>, vector<1x32xf32>
    %268 = vector.broadcast %267 : vector<1x32xf32> to vector<10x32xf32>
    %269 = arith.mulf %266, %268 : vector<10x32xf32>
    %270 = arith.subf %266, %269 : vector<10x32xf32>
    %c0_96 = arith.constant 0 : index
    %c0_97 = arith.constant 0 : index
    %271 = vector.load %arg18[%c0_96, %c0_97] : memref<10x10xf32, #tpu.memory_space<vmem>>, vector<10x10xf32>
    %cst_98 = arith.constant dense<0.000000e+00> : vector<10x32xf32>
    %272 = tpu.matmul %271, %269, %cst_98 {dimension_numbers = #tpu.dot_dimension_numbers<[1], [0], [0], [1], [0, 0, 1, 1], [], []>} : vector<10x10xf32>, vector<10x32xf32>, vector<10x32xf32> -> vector<10x32xf32>
    %c0_99 = arith.constant 0 : index
    %c0_100 = arith.constant 0 : index
    %273 = vector.load %arg19[%c0_99, %c0_100] : memref<10x10xf32, #tpu.memory_space<vmem>>, vector<10x10xf32>
    %cst_101 = arith.constant dense<0.000000e+00> : vector<10x32xf32>
    %274 = tpu.matmul %273, %270, %cst_101 {dimension_numbers = #tpu.dot_dimension_numbers<[1], [0], [0], [1], [0, 0, 1, 1], [], []>} : vector<10x10xf32>, vector<10x32xf32>, vector<10x32xf32> -> vector<10x32xf32>
    %275 = arith.addf %272, %274 : vector<10x32xf32>
    %c0_102 = arith.constant 0 : index
    %c0_103 = arith.constant 0 : index
    %276 = vector.load %arg21[%c0_102, %c0_103] : memref<32x48xf32, #tpu.memory_space<vmem>>, vector<32x48xf32>
    %cst_104 = arith.constant dense<0.000000e+00> : vector<10x48xf32>
    %277 = tpu.matmul %275, %276, %cst_104 {dimension_numbers = #tpu.dot_dimension_numbers<[1], [0], [0], [1], [0, 0, 1, 1], [], []>} : vector<10x32xf32>, vector<32x48xf32>, vector<10x48xf32> -> vector<10x48xf32>
    %c0_105 = arith.constant 0 : index
    %c0_106 = arith.constant 0 : index
    %278 = vector.load %arg22[%c0_105, %c0_106] : memref<1x48xf32, #tpu.memory_space<vmem>>, vector<1x48xf32>
    %279 = vector.broadcast %278 : vector<1x48xf32> to vector<10x48xf32>
    %280 = arith.addf %277, %279 : vector<10x48xf32>
    %281 = arith.addf %103, %280 : vector<10x48xf32>
    %c0_107 = arith.constant 0 : index
    %c0_108 = arith.constant 0 : index
    %282 = vector.load %arg23[%c0_107, %c0_108] : memref<1x48xf32, #tpu.memory_space<vmem>>, vector<1x48xf32>
    %c0_109 = arith.constant 0 : index
    %c0_110 = arith.constant 0 : index
    %283 = vector.load %arg24[%c0_109, %c0_110] : memref<1x48xf32, #tpu.memory_space<vmem>>, vector<1x48xf32>
    %cst_111 = arith.constant dense<0.000000e+00> : vector<10xf32>
    %284 = vector.multi_reduction <add>, %281, %cst_111 [1] : vector<10x48xf32> to vector<10xf32>
    %285 = vector.shape_cast %284 : vector<10xf32> to vector<10x1xf32>
    %cst_112 = arith.constant 4.800000e+01 : f32
    %286 = vector.broadcast %cst_112 : f32 to vector<10x1xf32>
    %287 = arith.divf %285, %286 : vector<10x1xf32>
    %288 = vector.broadcast %287 : vector<10x1xf32> to vector<10x48xf32>
    %289 = arith.subf %281, %288 : vector<10x48xf32>
    %290 = arith.mulf %289, %289 : vector<10x48xf32>
    %cst_113 = arith.constant dense<0.000000e+00> : vector<10xf32>
    %291 = vector.multi_reduction <add>, %290, %cst_113 [1] : vector<10x48xf32> to vector<10xf32>
    %292 = vector.shape_cast %291 : vector<10xf32> to vector<10x1xf32>
    %cst_114 = arith.constant 4.800000e+01 : f32
    %293 = vector.broadcast %cst_114 : f32 to vector<10x1xf32>
    %294 = arith.divf %292, %293 : vector<10x1xf32>
    %295 = vector.broadcast %287 : vector<10x1xf32> to vector<10x48xf32>
    %296 = arith.subf %281, %295 : vector<10x48xf32>
    %cst_115 = arith.constant 9.99999974E-6 : f32
    %297 = vector.broadcast %cst_115 : f32 to vector<10x1xf32>
    %298 = arith.addf %294, %297 : vector<10x1xf32>
    %299 = math.rsqrt %298 : vector<10x1xf32>
    %300 = vector.broadcast %299 : vector<10x1xf32> to vector<10x48xf32>
    %301 = arith.mulf %296, %300 : vector<10x48xf32>
    %302 = vector.broadcast %282 : vector<1x48xf32> to vector<10x48xf32>
    %303 = arith.mulf %301, %302 : vector<10x48xf32>
    %304 = vector.broadcast %283 : vector<1x48xf32> to vector<10x48xf32>
    %305 = arith.addf %303, %304 : vector<10x48xf32>
    %306 = vector.extract_strided_slice %305 {offsets = [9, 0], sizes = [1, 48], strides = [1, 1]} : vector<10x48xf32> to vector<1x48xf32>
    %307 = vector.extract_strided_slice %305 {offsets = [0, 0], sizes = [9, 48], strides = [1, 1]} : vector<10x48xf32> to vector<9x48xf32>
    %308 = tpu.concatenate %306, %307 in 0 : vector<1x48xf32>, vector<9x48xf32> -> vector<10x48xf32>
    %c0_116 = arith.constant 0 : index
    %c0_117 = arith.constant 0 : index
    %309 = vector.load %arg25[%c0_116, %c0_117] : memref<10x48xf32, #tpu.memory_space<vmem>>, vector<10x48xf32>
    %310 = arith.mulf %308, %309 : vector<10x48xf32>
    %311 = vector.extract_strided_slice %305 {offsets = [1, 0], sizes = [9, 48], strides = [1, 1]} : vector<10x48xf32> to vector<9x48xf32>
    %312 = vector.extract_strided_slice %305 {offsets = [0, 0], sizes = [1, 48], strides = [1, 1]} : vector<10x48xf32> to vector<1x48xf32>
    %313 = tpu.concatenate %311, %312 in 0 : vector<9x48xf32>, vector<1x48xf32> -> vector<10x48xf32>
    %c0_118 = arith.constant 0 : index
    %c0_119 = arith.constant 0 : index
    %314 = vector.load %arg26[%c0_118, %c0_119] : memref<10x48xf32, #tpu.memory_space<vmem>>, vector<10x48xf32>
    %315 = arith.mulf %313, %314 : vector<10x48xf32>
    %316 = tpu.concatenate %310, %305, %315 in 1 : vector<10x48xf32>, vector<10x48xf32>, vector<10x48xf32> -> vector<10x144xf32>
    %c0_120 = arith.constant 0 : index
    %c0_121 = arith.constant 0 : index
    %317 = vector.load %arg27[%c0_120, %c0_121] : memref<144x192xf32, #tpu.memory_space<vmem>>, vector<144x192xf32>
    %cst_122 = arith.constant dense<0.000000e+00> : vector<10x192xf32>
    %318 = tpu.matmul %316, %317, %cst_122 {dimension_numbers = #tpu.dot_dimension_numbers<[1], [0], [0], [1], [0, 0, 1, 1], [], []>} : vector<10x144xf32>, vector<144x192xf32>, vector<10x192xf32> -> vector<10x192xf32>
    %c0_123 = arith.constant 0 : index
    %c0_124 = arith.constant 0 : index
    %319 = vector.load %arg28[%c0_123, %c0_124] : memref<1x192xf32, #tpu.memory_space<vmem>>, vector<1x192xf32>
    %320 = vector.broadcast %319 : vector<1x192xf32> to vector<10x192xf32>
    %321 = arith.addf %318, %320 : vector<10x192xf32>
    %cst_125 = arith.constant 5.000000e-01 : f32
    %322 = vector.broadcast %cst_125 : f32 to vector<10x192xf32>
    %323 = arith.mulf %322, %321 : vector<10x192xf32>
    %cst_126 = arith.constant 0.707106769 : f32
    %324 = vector.broadcast %cst_126 : f32 to vector<10x192xf32>
    %325 = arith.mulf %321, %324 : vector<10x192xf32>
    %326 = math.absf %325 : vector<10x192xf32>
    %cst_127 = arith.constant 0.327591091 : f32
    %327 = vector.broadcast %cst_127 : f32 to vector<10x192xf32>
    %328 = arith.mulf %327, %326 : vector<10x192xf32>
    %cst_128 = arith.constant 1.000000e+00 : f32
    %329 = vector.broadcast %cst_128 : f32 to vector<10x192xf32>
    %330 = arith.addf %329, %328 : vector<10x192xf32>
    %cst_129 = arith.constant 1.000000e+00 : f32
    %331 = vector.broadcast %cst_129 : f32 to vector<10x192xf32>
    %332 = arith.divf %331, %330 : vector<10x192xf32>
    %cst_130 = arith.constant 1.06140542 : f32
    %333 = vector.broadcast %cst_130 : f32 to vector<10x192xf32>
    %334 = arith.mulf %333, %332 : vector<10x192xf32>
    %cst_131 = arith.constant -1.45315206 : f32
    %335 = vector.broadcast %cst_131 : f32 to vector<10x192xf32>
    %336 = arith.addf %334, %335 : vector<10x192xf32>
    %337 = arith.mulf %336, %332 : vector<10x192xf32>
    %cst_132 = arith.constant 1.42141378 : f32
    %338 = vector.broadcast %cst_132 : f32 to vector<10x192xf32>
    %339 = arith.addf %337, %338 : vector<10x192xf32>
    %340 = arith.mulf %339, %332 : vector<10x192xf32>
    %cst_133 = arith.constant -0.284496725 : f32
    %341 = vector.broadcast %cst_133 : f32 to vector<10x192xf32>
    %342 = arith.addf %340, %341 : vector<10x192xf32>
    %343 = arith.mulf %342, %332 : vector<10x192xf32>
    %cst_134 = arith.constant 0.254829586 : f32
    %344 = vector.broadcast %cst_134 : f32 to vector<10x192xf32>
    %345 = arith.addf %343, %344 : vector<10x192xf32>
    %346 = arith.mulf %345, %332 : vector<10x192xf32>
    %cst_135 = arith.constant 0.000000e+00 : f32
    %347 = vector.broadcast %cst_135 : f32 to vector<10x192xf32>
    %348 = arith.subf %347, %326 : vector<10x192xf32>
    %349 = arith.mulf %348, %326 : vector<10x192xf32>
    %350 = math.exp %349 : vector<10x192xf32>
    %351 = arith.mulf %346, %350 : vector<10x192xf32>
    %cst_136 = arith.constant 1.000000e+00 : f32
    %352 = vector.broadcast %cst_136 : f32 to vector<10x192xf32>
    %353 = arith.subf %352, %351 : vector<10x192xf32>
    %cst_137 = arith.constant 0.000000e+00 : f32
    %354 = vector.broadcast %cst_137 : f32 to vector<10x192xf32>
    %355 = arith.cmpf oge, %325, %354 : vector<10x192xf32>
    %cst_138 = arith.constant 0.000000e+00 : f32
    %356 = vector.broadcast %cst_138 : f32 to vector<10x192xf32>
    %357 = arith.subf %356, %353 : vector<10x192xf32>
    %358 = arith.select %355, %353, %357 : vector<10x192xi1>, vector<10x192xf32>
    %cst_139 = arith.constant 1.000000e+00 : f32
    %359 = vector.broadcast %cst_139 : f32 to vector<10x192xf32>
    %360 = arith.addf %359, %358 : vector<10x192xf32>
    %361 = arith.mulf %323, %360 : vector<10x192xf32>
    %c0_140 = arith.constant 0 : index
    %c0_141 = arith.constant 0 : index
    %362 = vector.load %arg29[%c0_140, %c0_141] : memref<192x48xf32, #tpu.memory_space<vmem>>, vector<192x48xf32>
    %cst_142 = arith.constant dense<0.000000e+00> : vector<10x48xf32>
    %363 = tpu.matmul %361, %362, %cst_142 {dimension_numbers = #tpu.dot_dimension_numbers<[1], [0], [0], [1], [0, 0, 1, 1], [], []>} : vector<10x192xf32>, vector<192x48xf32>, vector<10x48xf32> -> vector<10x48xf32>
    %c0_143 = arith.constant 0 : index
    %c0_144 = arith.constant 0 : index
    %364 = vector.load %arg30[%c0_143, %c0_144] : memref<1x48xf32, #tpu.memory_space<vmem>>, vector<1x48xf32>
    %365 = vector.broadcast %364 : vector<1x48xf32> to vector<10x48xf32>
    %366 = arith.addf %363, %365 : vector<10x48xf32>
    %367 = arith.addf %305, %366 : vector<10x48xf32>
    %c0_145 = arith.constant 0 : index
    %c0_146 = arith.constant 0 : index
    %368 = vector.load %arg31[%c0_145, %c0_146] : memref<1x48xf32, #tpu.memory_space<vmem>>, vector<1x48xf32>
    %c0_147 = arith.constant 0 : index
    %c0_148 = arith.constant 0 : index
    %369 = vector.load %arg32[%c0_147, %c0_148] : memref<1x48xf32, #tpu.memory_space<vmem>>, vector<1x48xf32>
    %cst_149 = arith.constant dense<0.000000e+00> : vector<10xf32>
    %370 = vector.multi_reduction <add>, %367, %cst_149 [1] : vector<10x48xf32> to vector<10xf32>
    %371 = vector.shape_cast %370 : vector<10xf32> to vector<10x1xf32>
    %cst_150 = arith.constant 4.800000e+01 : f32
    %372 = vector.broadcast %cst_150 : f32 to vector<10x1xf32>
    %373 = arith.divf %371, %372 : vector<10x1xf32>
    %374 = vector.broadcast %373 : vector<10x1xf32> to vector<10x48xf32>
    %375 = arith.subf %367, %374 : vector<10x48xf32>
    %376 = arith.mulf %375, %375 : vector<10x48xf32>
    %cst_151 = arith.constant dense<0.000000e+00> : vector<10xf32>
    %377 = vector.multi_reduction <add>, %376, %cst_151 [1] : vector<10x48xf32> to vector<10xf32>
    %378 = vector.shape_cast %377 : vector<10xf32> to vector<10x1xf32>
    %cst_152 = arith.constant 4.800000e+01 : f32
    %379 = vector.broadcast %cst_152 : f32 to vector<10x1xf32>
    %380 = arith.divf %378, %379 : vector<10x1xf32>
    %381 = vector.broadcast %373 : vector<10x1xf32> to vector<10x48xf32>
    %382 = arith.subf %367, %381 : vector<10x48xf32>
    %cst_153 = arith.constant 9.99999974E-6 : f32
    %383 = vector.broadcast %cst_153 : f32 to vector<10x1xf32>
    %384 = arith.addf %380, %383 : vector<10x1xf32>
    %385 = math.rsqrt %384 : vector<10x1xf32>
    %386 = vector.broadcast %385 : vector<10x1xf32> to vector<10x48xf32>
    %387 = arith.mulf %382, %386 : vector<10x48xf32>
    %388 = vector.broadcast %368 : vector<1x48xf32> to vector<10x48xf32>
    %389 = arith.mulf %387, %388 : vector<10x48xf32>
    %390 = vector.broadcast %369 : vector<1x48xf32> to vector<10x48xf32>
    %391 = arith.addf %389, %390 : vector<10x48xf32>
    %c0_154 = arith.constant 0 : index
    %c0_155 = arith.constant 0 : index
    %392 = vector.load %arg33[%c0_154, %c0_155] : memref<2x10xf32, #tpu.memory_space<vmem>>, vector<2x10xf32>
    %cst_156 = arith.constant dense<0.000000e+00> : vector<2x48xf32>
    %393 = tpu.matmul %392, %391, %cst_156 {dimension_numbers = #tpu.dot_dimension_numbers<[1], [0], [0], [1], [0, 0, 1, 1], [], []>} : vector<2x10xf32>, vector<10x48xf32>, vector<2x48xf32> -> vector<2x48xf32>
    %c0_157 = arith.constant 0 : index
    %c0_158 = arith.constant 0 : index
    %394 = vector.load %arg34[%c0_157, %c0_158] : memref<48x7xf32, #tpu.memory_space<vmem>>, vector<48x7xf32>
    %cst_159 = arith.constant dense<0.000000e+00> : vector<2x7xf32>
    %395 = tpu.matmul %393, %394, %cst_159 {dimension_numbers = #tpu.dot_dimension_numbers<[1], [0], [0], [1], [0, 0, 1, 1], [], []>} : vector<2x48xf32>, vector<48x7xf32>, vector<2x7xf32> -> vector<2x7xf32>
    %c0_160 = arith.constant 0 : index
    %c0_161 = arith.constant 0 : index
    %396 = vector.load %arg35[%c0_160, %c0_161] : memref<1x7xf32, #tpu.memory_space<vmem>>, vector<1x7xf32>
    %397 = vector.broadcast %396 : vector<1x7xf32> to vector<2x7xf32>
    %398 = arith.addf %395, %397 : vector<2x7xf32>
    %c0_162 = arith.constant 0 : index
    %c0_163 = arith.constant 0 : index
    %399 = vector.load %arg36[%c0_162, %c0_163] : memref<2x7xf32, #tpu.memory_space<vmem>>, vector<2x7xf32>
    tpu.vector_store %arg36[%c0_162, %c0_163], %398 {strides = array<i32>} : memref<2x7xf32, #tpu.memory_space<vmem>>, vector<2x7xf32>,
    return
  }
}

</mosaic_0001>

<bundles_post_ra>
// kernel: forward.1
= control target key start
LH: loop header
LB: loop body
LE: loop exit
PB: predicated region body
PF: predicated region fallthrough
CT: control target
= control target key end

     0   :  { %s4488_s6 = smov 1   ;;  %s4489_s10 = smov 2   ;;  %s5372_s0 = inlined_call_operand.smem [shape: u32[37], index: -1, kind: input, shape index: {}] }
   0x1   :  { %s4563_s5 = sld [smem:[%s5372_s0]]   ;;  %s4490_s14 = smov 3  }
   0x2   :  { %s4568_s9 = sld [smem:[%s5372_s0 + %s4488_s6]]   ;;  %s4491_s18 = smov 4  }
   0x3   :  { %s4573_s13 = sld [smem:[%s5372_s0 + %s4489_s10]]   ;;  %s4492_s22 = smov 5  }
   0x4   :  { %s4578_s17 = sld [smem:[%s5372_s0 + %s4490_s14]]   ;;  %s4493_s26 = smov 6  }
   0x5   :  { %s4583_s21 = sld [smem:[%s5372_s0 + %s4491_s18]]   ;;  %s4494_s30 = smov 7  }
   0x6   :  { %s4588_s25 = sld [smem:[%s5372_s0 + %s4492_s22]]   ;;  %s4495_s4 = smov 8  }
   0x7   :  { %5387 = sst [smem:[#allocation41_spill]] %s4563_s5  ;;  %s4496_s10 = smov 9  }
   0x8   :  { %5388 = sst [smem:[#allocation42_spill]] %s4568_s9  ;;  %s4497_s15 = smov 10  }
   0x9   :  { %5389 = sst [smem:[#allocation43_spill]] %s4573_s13  ;;  %s4498_s20 = smov 11  }
   0xa   :  { %5390 = sst [smem:[#allocation44_spill]] %s4578_s17  ;;  %s4500_s1 = smov 13  }
   0xb   :  { %s4593_s29 = sld [smem:[%s5372_s0 + %s4493_s26]]   ;;  %s4499_s26 = smov 12  }
   0xc   :  { %5391 = sst [smem:[#allocation45_spill]] %s4588_s25  ;;  %s4501_s7 = smov 14  }
   0xd   :  { %s4598_s3 = sld [smem:[%s5372_s0 + %s4494_s30]]   ;;  %s4503_s22 = smov 16  }
   0xe   :  { %s4603_s8 = sld [smem:[%s5372_s0 + %s4495_s4]]   ;;  %s4504_s28 = smov 17  }
   0xf   :  { %s4608_s14 = sld [smem:[%s5372_s0 + %s4496_s10]]  }
  0x10   :  { %s4613_s19 = sld [smem:[%s5372_s0 + %s4497_s15]]   ;;  %s4502_s15 = smov 15  }
  0x11   :  { %5392 = sst [smem:[#allocation46_spill]] %s4593_s29 }
  0x12   :  { %s4618_s24 = sld [smem:[%s5372_s0 + %s4498_s20]]  }
  0x13   :  { %5393 = sst [smem:[#allocation47_spill]] %s4598_s3 }
  0x14   :  { %5394 = sst [smem:[#allocation48_spill]] %s4603_s8 }
  0x15   :  { %5395 = sst [smem:[#allocation49_spill]] %s4608_s14 }
  0x16   :  { %s4623_s30 = sld [smem:[%s5372_s0 + %s4499_s26]]  }
  0x17   :  { %s4628_s6 = sld [smem:[%s5372_s0 + %s4500_s1]]  }
  0x18   :  { %s4633_s12 = sld [smem:[%s5372_s0 + %s4501_s7]]   ;;  %s4505_s7 = smov 18  }
  0x19   :  { %s4638_s20 = sld [smem:[%s5372_s0 + %s4502_s15]]   ;;  %s4506_s15 = smov 19  }
  0x1a   :  { %s4643_s27 = sld [smem:[%s5372_s0 + %s4503_s22]]   ;;  %s4507_s22 = smov 20  }
  0x1b   :  { %s4648_s4 = sld [smem:[%s5372_s0 + %s4504_s28]]   ;;  %s4508_s28 = smov 21  }
  0x1c   :  { %5396 = sst [smem:[#allocation50_spill]] %s4623_s30 }
  0x1d   :  { %s4668_s30 = sld [smem:[%s5372_s0 + %s4508_s28]]   ;;  %s4512_s28 = smov 25  }
  0x1e   :  { %5397 = sst [smem:[#allocation51_spill]] %s4633_s12 }
  0x1f   :  { %5398 = sst [smem:[#allocation52_spill]] %s4638_s20 }
  0x20   :  { %5399 = sst [smem:[#allocation53_spill]] %s4643_s27 }
  0x21   :  { %s4653_s12 = sld [smem:[%s5372_s0 + %s4505_s7]]   ;;  %s4509_s7 = smov 22  }
  0x22   :  { %s4658_s20 = sld [smem:[%s5372_s0 + %s4506_s15]]   ;;  %s4510_s15 = smov 23  }
  0x23   :  { %s4663_s27 = sld [smem:[%s5372_s0 + %s4507_s22]]   ;;  %s4511_s22 = smov 24  }
  0x24   :  { %5401 = sst [smem:[#allocation55_spill]] %s4668_s30 }
  0x25   :  { %s4673_s14 = sld [smem:[%s5372_s0 + %s4509_s7]]   ;;  %s4513_s7 = smov 26  }
  0x26   :  { %s4678_s8 = sld [smem:[%s5372_s0 + %s4510_s15]]   ;;  %s4514_s15 = smov 27  }
  0x27   :  { %s4688_s30 = sld [smem:[%s5372_s0 + %s4512_s28]]   ;;  %s4516_s28 = smov 29  }
  0x28   :  { %s4693_s3 = sld [smem:[%s5372_s0 + %s4513_s7]]   ;;  %s4517_s7 = smov 30  }
  0x29   :  { %5400 = sst [smem:[#allocation54_spill]] %s4663_s27 }
  0x2a   :  { %s4683_s27 = sld [smem:[%s5372_s0 + %s4511_s22]]   ;;  %s4515_s22 = smov 28  }
  0x2b   :  { %s4698_s29 = sld [smem:[%s5372_s0 + %s4514_s15]]   ;;  %s4518_s15 = smov 31  }
  0x2c   :  { %s4703_s13 = sld [smem:[%s5372_s0 + %s4515_s22]]   ;;  %s4519_s22 = smov 32  }
  0x2d   :  { %s4708_s25 = sld [smem:[%s5372_s0 + %s4516_s28]]   ;;  %s4520_s28 = smov 33  }
  0x2e   :  { %s4713_s9 = sld [smem:[%s5372_s0 + %s4517_s7]]   ;;  %s4521_s7 = smov 34  }
  0x2f   :  { %s4723_s17 = sld [smem:[%s5372_s0 + %s4519_s22]]   ;;  %s4523_s22 = smov 36  }
  0x30   :  { %s4733_s5 = sld [smem:[%s5372_s0 + %s4521_s7]]  }
  0x31   :  { %5402 = sst [smem:[#allocation56_spill]] %s4698_s29 }
  0x32   :  { %5403 = sst [smem:[#allocation57_spill]] %s4703_s13 }
  0x33   :  { %5404 = sst [smem:[#allocation58_spill]] %s4708_s25 }
  0x34   :  { %s4718_s29 = sld [smem:[%s5372_s0 + %s4518_s15]]   ;;  %s4522_s15 = smov 35  }
  0x35   :  { %s4728_s25 = sld [smem:[%s5372_s0 + %s4520_s28]]  }
  0x36   :  { %s4743_s13 = sld [smem:[%s5372_s0 + %s4523_s22]]  }
  0x3a   :  { %5405 = sst [smem:[#allocation59_spill]] %s4718_s29 }
  0x3b   :  { %s4738_s29 = sld [smem:[%s5372_s0 + %s4522_s15]]  }
  0x3c   :  { %78 = vsyncpa [#allocation4], 0 }
  0x3d   :  { %79 = vsyncpa [#allocation7], 0 }
  0x3e   :  { %80 = vsyncpa [#allocation10], 0 }
  0x3f   :  { %81 = vsyncpa [#allocation13], 0 }
  0x40   :  { %82 = vsyncpa [#allocation16], 0 }
  0x41   :  { %83 = vsyncpa [#allocation19], 0 }
  0x42   :  { %84 = vsyncpa [#allocation22], 0 }
  0x43   :  { %85 = vsyncpa [#allocation25], 0 }
  0x44   :  { %86 = vsyncpa [#allocation28], 0 }
  0x45   :  { %87 = vsyncpa [#allocation5], 0  ;;  %s4524_s28 = smov [#allocation6]   ;;  %s4525_s2 = smov [#allocation9]  }
  0x46   :  { %s122_s1 = sshll.u32 %s4524_s28, 4  ;;  %s144_s7 = sshll.u32 %s4525_s2, 4  ;;  %s123_s1 = int_to_ptr.vmem [resolvable:$true] %s122_s1  ;;  %s145_s7 = int_to_ptr.vmem [resolvable:$true] %s144_s7 }
  0x47   :  { %s4072_s0 = scalar_lea.hbm %s4613_s19, 16 }
  0x48   :  { %p4073_p0 = scmp.ne.s32.totalorder %s4613_s19, %s4072_s0  ;;  %p4076_p1 = scmp.lt.u32.totalorder %s4072_s0, %s4613_s19 }
  0x4a   :  { %p4078_p2 = pnand %p4076_p1, %p4073_p0 }
  0x4c   :  { %4081 = shalt.err (!%p4078_p2)
}
  0x4d   :  { %s4082_s10 = scalar_lea.vmem %s123_s1, 16  ;;  %s4086_s11 = scalar_lea.vmem %s123_s1, 32 }
  0x4e   :  { %p4083_p3 = scmp.ne.s32.totalorder %s123_s1, %s4082_s10  ;;  %p4087_p4 = scmp.lt.s32.totalorder %s123_s1, %s123_s1 }
  0x4f   :  { %p4088_p5 = scmp.lt.s32.totalorder %s4086_s11, %s4082_s10 }
  0x51   :  { %p4089_p6 = por %p4088_p5, %p4087_p4 }
  0x53   :  { %p4090_p7 = pnand %p4089_p6, %p4083_p3 }
  0x55   :  { %4093 = shalt.err (!%p4090_p7)
}
  0x56   :  { %125 = dma.hbm_to_vmem [thread:$0]  %s4613_s19, 16, %s123_s1, [#allocation7]  }
  0x57   :  { %s4094_s15 = scalar_lea.hbm %s4628_s6, 16 }
  0x58   :  { %p4095_p8 = scmp.ne.s32.totalorder %s4628_s6, %s4094_s15  ;;  %p4098_p9 = scmp.lt.u32.totalorder %s4094_s15, %s4628_s6 }
  0x5a   :  { %p4100_p10 = pnand %p4098_p9, %p4095_p8 }
  0x5c   :  { %4103 = shalt.err (!%p4100_p10)
}
  0x5d   :  { %s4104_s16 = scalar_lea.vmem %s145_s7, 16  ;;  %s4108_s18 = scalar_lea.vmem %s145_s7, 32 }
  0x5e   :  { %p4105_p11 = scmp.ne.s32.totalorder %s145_s7, %s4104_s16  ;;  %p4109_p12 = scmp.lt.s32.totalorder %s145_s7, %s145_s7 }
  0x5f   :  { %p4110_p13 = scmp.lt.s32.totalorder %s4108_s18, %s4104_s16 }
  0x61   :  { %p4111_p0 = por %p4110_p13, %p4109_p12 }
  0x63   :  { %p4112_p1 = pnand %p4111_p0, %p4105_p11 }
  0x65   :  { %4115 = shalt.err (!%p4112_p1)
}
  0x66   :  { %147 = dma.hbm_to_vmem [thread:$0]  %s4628_s6, 16, %s145_s7, [#allocation10]  }
  0x67   :  { %s4526_s22 = smov [#allocation12]   ;;  %s4527_s23 = smov [#allocation15]  }
  0x68   :  { %s171_s19 = sshll.u32 %s4526_s22, 4  ;;  %s200_s26 = sshll.u32 %s4527_s23, 4  ;;  %s172_s19 = int_to_ptr.vmem [resolvable:$true] %s171_s19  ;;  %s4753_s26 = int_to_ptr.vmem [resolvable:$true] %s200_s26 }
  0x69   :  { %s4116_s28 = scalar_lea.hbm %s4653_s12, 256 }
  0x6a   :  { %p4117_p2 = scmp.ne.s32.totalorder %s4653_s12, %s4116_s28  ;;  %p4120_p3 = scmp.lt.u32.totalorder %s4116_s28, %s4653_s12 }
  0x6c   :  { %p4122_p4 = pnand %p4120_p3, %p4117_p2 }
  0x6e   :  { %4125 = shalt.err (!%p4122_p4)
}
  0x6f   :  { %s4126_s1 = scalar_lea.vmem %s172_s19, 256  ;;  %p4131_p6 = scmp.lt.s32.totalorder %s172_s19, %s172_s19 }
  0x70   :  { %p4127_p5 = scmp.ne.s32.totalorder %s172_s19, %s4126_s1  ;;  %p4132_p7 = scmp.lt.s32.totalorder %s4126_s1, %s4126_s1 }
  0x72   :  { %p4133_p8 = por %p4132_p7, %p4131_p6 }
  0x74   :  { %p4134_p9 = pnand %p4133_p8, %p4127_p5 }
  0x76   :  { %4137 = shalt.err (!%p4134_p9)
}
  0x77   :  { %s4528_s6 = smov 128   ;;  %s4529_s2 = smov 8  }
  0x78   :  { %177 = dma.hbm_to_vmem [thread:$0]  %s4653_s12, 256, %s172_s19, [#allocation13], %s4528_s6, %s4528_s6, %s4529_s2  }
  0x79   :  { %s4138_s7 = scalar_lea.hbm %s4673_s14, 16 }
  0x7a   :  { %p4139_p10 = scmp.ne.s32.totalorder %s4673_s14, %s4138_s7  ;;  %p4142_p11 = scmp.lt.u32.totalorder %s4138_s7, %s4673_s14 }
  0x7c   :  { %p4144_p12 = pnand %p4142_p11, %p4139_p10 }
  0x7e   :  { %4147 = shalt.err (!%p4144_p12)
}
  0x7f   :  { %s4148_s0 = scalar_lea.vmem %s4753_s26, 16  ;;  %s4152_s10 = scalar_lea.vmem %s4753_s26, 32 }
  0x80   :  { %p4149_p13 = scmp.ne.s32.totalorder %s4753_s26, %s4148_s0  ;;  %p4153_p0 = scmp.lt.s32.totalorder %s4753_s26, %s4753_s26 }
  0x81   :  { %p4154_p1 = scmp.lt.s32.totalorder %s4152_s10, %s4148_s0 }
  0x83   :  { %p4155_p2 = por %p4154_p1, %p4153_p0 }
  0x85   :  { %p4156_p3 = pnand %p4155_p2, %p4149_p13 }
  0x87   :  { %4159 = shalt.err (!%p4156_p3)
}
  0x88   :  { %203 = dma.hbm_to_vmem [thread:$0]  %s4673_s14, 16, %s4753_s26, [#allocation16]  }
  0x89   :  { %s4530_s12 = smov [#allocation18]   ;;  %s4531_s15 = smov [#allocation21]  }
  0x8a   :  { %s220_s11 = sshll.u32 %s4530_s12, 4  ;;  %s241_s16 = sshll.u32 %s4531_s15, 4  ;;  %s221_s11 = int_to_ptr.vmem [resolvable:$true] %s220_s11  ;;  %s4772_s16 = int_to_ptr.vmem [resolvable:$true] %s241_s16 }
  0x8b   :  { %s4160_s18 = scalar_lea.hbm %s4683_s27, 16 }
  0x8c   :  { %p4161_p4 = scmp.ne.s32.totalorder %s4683_s27, %s4160_s18  ;;  %p4164_p5 = scmp.lt.u32.totalorder %s4160_s18, %s4683_s27 }
  0x8e   :  { %p4166_p6 = pnand %p4164_p5, %p4161_p4 }
  0x90   :  { %4169 = shalt.err (!%p4166_p6)
}
  0x91   :  { %s4170_s22 = scalar_lea.vmem %s221_s11, 16  ;;  %s4174_s19 = scalar_lea.vmem %s221_s11, 32 }
  0x92   :  { %p4171_p7 = scmp.ne.s32.totalorder %s221_s11, %s4170_s22  ;;  %p4175_p8 = scmp.lt.s32.totalorder %s221_s11, %s221_s11 }
  0x93   :  { %p4176_p9 = scmp.lt.s32.totalorder %s4174_s19, %s4170_s22 }
  0x95   :  { %p4177_p10 = por %p4176_p9, %p4175_p8 }
  0x97   :  { %p4178_p11 = pnand %p4177_p10, %p4171_p7 }
  0x99   :  { %4181 = shalt.err (!%p4178_p11)
}
  0x9a   :  { %223 = dma.hbm_to_vmem [thread:$0]  %s4683_s27, 16, %s221_s11, [#allocation19]  }
  0x9b   :  { %s4182_s14 = scalar_lea.hbm %s4693_s3, 256 }
  0x9c   :  { %p4183_p12 = scmp.ne.s32.totalorder %s4693_s3, %s4182_s14  ;;  %p4186_p13 = scmp.lt.u32.totalorder %s4182_s14, %s4693_s3 }
  0x9e   :  { %p4188_p0 = pnand %p4186_p13, %p4183_p12 }
  0xa0   :  { %4191 = shalt.err (!%p4188_p0)
}
  0xa1   :  { %s4192_s23 = scalar_lea.vmem %s4772_s16, 256  ;;  %p4197_p2 = scmp.lt.s32.totalorder %s4772_s16, %s4772_s16 }
  0xa2   :  { %p4193_p1 = scmp.ne.s32.totalorder %s4772_s16, %s4192_s23  ;;  %p4198_p3 = scmp.lt.s32.totalorder %s4192_s23, %s4192_s23 }
  0xa4   :  { %p4199_p4 = por %p4198_p3, %p4197_p2 }
  0xa6   :  { %p4200_p5 = pnand %p4199_p4, %p4193_p1 }
  0xa8   :  { %4203 = shalt.err (!%p4200_p5)
}
  0xa9   :  { %247 = dma.hbm_to_vmem [thread:$0]  %s4693_s3, 256, %s4772_s16, [#allocation22], %s4528_s6, %s4528_s6, %s4529_s2  }
  0xaa   :  { %s4532_s27 = smov [#allocation24]   ;;  %s4533_s28 = smov [#allocation27]  }
  0xab   :  { %s268_s26 = sshll.u32 %s4532_s27, 4  ;;  %s288_s1 = sshll.u32 %s4533_s28, 4  ;;  %s269_s26 = int_to_ptr.vmem [resolvable:$true] %s268_s26  ;;  %s289_s1 = int_to_ptr.vmem [resolvable:$true] %s288_s1 }
  0xac   :  { %s4204_s7 = scalar_lea.hbm %s4713_s9, 16 }
  0xad   :  { %p4205_p6 = scmp.ne.s32.totalorder %s4713_s9, %s4204_s7  ;;  %p4208_p7 = scmp.lt.u32.totalorder %s4204_s7, %s4713_s9 }
  0xaf   :  { %p4210_p8 = pnand %p4208_p7, %p4205_p6 }
  0xb1   :  { %4213 = shalt.err (!%p4210_p8)
}
  0xb2   :  { %s4214_s0 = scalar_lea.vmem %s269_s26, 16  ;;  %s4218_s10 = scalar_lea.vmem %s269_s26, 32 }
  0xb3   :  { %p4215_p9 = scmp.ne.s32.totalorder %s269_s26, %s4214_s0  ;;  %p4219_p10 = scmp.lt.s32.totalorder %s269_s26, %s269_s26 }
  0xb4   :  { %p4220_p11 = scmp.lt.s32.totalorder %s4218_s10, %s4214_s0 }
  0xb6   :  { %p4221_p12 = por %p4220_p11, %p4219_p10 }
  0xb8   :  { %p4222_p13 = pnand %p4221_p12, %p4215_p9 }
  0xba   :  { %4225 = shalt.err (!%p4222_p13)
}
  0xbb   :  { %271 = dma.hbm_to_vmem [thread:$0]  %s4713_s9, 16, %s269_s26, [#allocation25]  }
  0xbc   :  { %s4226_s3 = scalar_lea.hbm %s4723_s17, 16 }
  0xbd   :  { %p4227_p0 = scmp.ne.s32.totalorder %s4723_s17, %s4226_s3  ;;  %p4230_p1 = scmp.lt.u32.totalorder %s4226_s3, %s4723_s17 }
  0xbf   :  { %p4232_p2 = pnand %p4230_p1, %p4227_p0 }
  0xc1   :  { %4235 = shalt.err (!%p4232_p2)
}
  0xc2   :  { %s4236_s12 = scalar_lea.vmem %s289_s1, 16  ;;  %s4240_s11 = scalar_lea.vmem %s289_s1, 32 }
  0xc3   :  { %p4237_p3 = scmp.ne.s32.totalorder %s289_s1, %s4236_s12  ;;  %p4241_p4 = scmp.lt.s32.totalorder %s289_s1, %s289_s1 }
  0xc4   :  { %p4242_p5 = scmp.lt.s32.totalorder %s4240_s11, %s4236_s12 }
  0xc6   :  { %p4243_p6 = por %p4242_p5, %p4241_p4 }
  0xc8   :  { %p4244_p7 = pnand %p4243_p6, %p4237_p3 }
  0xca   :  { %4247 = shalt.err (!%p4244_p7)
}
  0xcb   :  { %291 = dma.hbm_to_vmem [thread:$0]  %s4723_s17, 16, %s289_s1, [#allocation28]  }
  0xcc   :  { %s4534_s15 = smov [#allocation3]   ;;  %s4535_s16 = smov [#allocation8]  }
  0xcd   :  { %s102_s9 = sshll.u32 %s4534_s15, 4  ;;  %s132_s18 = sshll.u32 %s4535_s16, 4  ;;  %s103_s9 = int_to_ptr.vmem [resolvable:$true] %s102_s9  ;;  %s133_s18 = int_to_ptr.vmem [resolvable:$true] %s132_s18 }
  0xce   :  { %s4248_s22 = scalar_lea.hbm %s4583_s21, 128 }
  0xcf   :  { %p4249_p8 = scmp.ne.s32.totalorder %s4583_s21, %s4248_s22  ;;  %p4252_p9 = scmp.lt.u32.totalorder %s4248_s22, %s4583_s21 }
  0xd1   :  { %p4254_p10 = pnand %p4252_p9, %p4249_p8 }
  0xd3   :  { %4257 = shalt.err (!%p4254_p10)
}
  0xd4   :  { %s4258_s19 = scalar_lea.vmem %s103_s9, 128  ;;  %p4263_p12 = scmp.lt.s32.totalorder %s103_s9, %s103_s9 }
  0xd5   :  { %p4259_p11 = scmp.ne.s32.totalorder %s103_s9, %s4258_s19  ;;  %p4264_p13 = scmp.lt.s32.totalorder %s4258_s19, %s4258_s19 }
  0xd7   :  { %p4265_p0 = por %p4264_p13, %p4263_p12 }
  0xd9   :  { %p4266_p1 = pnand %p4265_p0, %p4259_p11 }
  0xdb   :  { %4269 = shalt.err (!%p4266_p1)
}
  0xdc   :  { %105 = dma.hbm_to_vmem [thread:$0]  %s4583_s21, 128, %s103_s9, [#allocation4]  }
  0xdd   :  { %s4270_s17 = scalar_lea.hbm %s4618_s24, 16 }
  0xde   :  { %p4271_p2 = scmp.ne.s32.totalorder %s4618_s24, %s4270_s17  ;;  %p4274_p3 = scmp.lt.u32.totalorder %s4270_s17, %s4618_s24 }
  0xe0   :  { %p4276_p4 = pnand %p4274_p3, %p4271_p2 }
  0xe2   :  { %4279 = shalt.err (!%p4276_p4)
}
  0xe3   :  { %s4280_s14 = scalar_lea.vmem %s133_s18, 16  ;;  %s4284_s23 = scalar_lea.vmem %s133_s18, 32 }
  0xe4   :  { %p4281_p5 = scmp.ne.s32.totalorder %s133_s18, %s4280_s14  ;;  %p4285_p6 = scmp.lt.s32.totalorder %s133_s18, %s133_s18 }
  0xe5   :  { %p4286_p7 = scmp.lt.s32.totalorder %s4284_s23, %s4280_s14 }
  0xe7   :  { %p4287_p8 = por %p4286_p7, %p4285_p6 }
  0xe9   :  { %p4288_p9 = pnand %p4287_p8, %p4281_p5 }
  0xeb   :  { %4291 = shalt.err (!%p4288_p9)
}
  0xec   :  { %135 = dma.hbm_to_vmem [thread:$0]  %s4618_s24, 16, %s133_s18, [#allocation7]  }
  0xed   :  { %s4536_s27 = smov [#allocation11]   ;;  %s4537_s26 = smov [#allocation14]  }
  0xee   :  { %s159_s21 = sshll.u32 %s4536_s27, 4  ;;  %s183_s28 = sshll.u32 %s4537_s26, 4  ;;  %s160_s21 = int_to_ptr.vmem [resolvable:$true] %s159_s21  ;;  %s4806_s28 = int_to_ptr.vmem [resolvable:$true] %s183_s28 }
  0xef   :  { %s4292_s1 = scalar_lea.hbm %s4648_s4, 256 }
  0xf0   :  { %p4293_p10 = scmp.ne.s32.totalorder %s4648_s4, %s4292_s1  ;;  %p4296_p11 = scmp.lt.u32.totalorder %s4292_s1, %s4648_s4 }
  0xf2   :  { %p4298_p12 = pnand %p4296_p11, %p4293_p10 }
  0xf4   :  { %4301 = shalt.err (!%p4298_p12)
}
  0xf5   :  { %s4302_s7 = scalar_lea.vmem %s160_s21, 256  ;;  %p4307_p0 = scmp.lt.s32.totalorder %s160_s21, %s160_s21 }
  0xf6   :  { %p4303_p13 = scmp.ne.s32.totalorder %s160_s21, %s4302_s7  ;;  %p4308_p1 = scmp.lt.s32.totalorder %s4302_s7, %s4302_s7 }
  0xf8   :  { %p4309_p2 = por %p4308_p1, %p4307_p0 }
  0xfa   :  { %p4310_p3 = pnand %p4309_p2, %p4303_p13 }
  0xfc   :  { %4313 = shalt.err (!%p4310_p3)
}
  0xfd   :  { %165 = dma.hbm_to_vmem [thread:$0]  %s4648_s4, 256, %s160_s21, [#allocation10], %s4528_s6, %s4528_s6, %s4529_s2  }
  0xfe   :  { %s4314_s24 = scalar_lea.hbm %s4658_s20, 256 }
  0xff   :  { %p4315_p4 = scmp.ne.s32.totalorder %s4658_s20, %s4314_s24  ;;  %p4318_p5 = scmp.lt.u32.totalorder %s4314_s24, %s4658_s20 }
 0x101   :  { %p4320_p6 = pnand %p4318_p5, %p4315_p4 }
 0x103   :  { %4323 = shalt.err (!%p4320_p6)
}
 0x104   :  { %s4324_s0 = scalar_lea.vmem %s4806_s28, 256  ;;  %p4329_p8 = scmp.lt.s32.totalorder %s4806_s28, %s4806_s28 }
 0x105   :  { %p4325_p7 = scmp.ne.s32.totalorder %s4806_s28, %s4324_s0  ;;  %p4330_p9 = scmp.lt.s32.totalorder %s4324_s0, %s4324_s0 }
 0x107   :  { %p4331_p10 = por %p4330_p9, %p4329_p8 }
 0x109   :  { %p4332_p11 = pnand %p4331_p10, %p4325_p7 }
 0x10b   :  { %4335 = shalt.err (!%p4332_p11)
}
 0x10c   :  { %189 = dma.hbm_to_vmem [thread:$0]  %s4658_s20, 256, %s4806_s28, [#allocation13], %s4528_s6, %s4528_s6, %s4529_s2  }
 0x10d   :  { %s4538_s4 = smov [#allocation17]   ;;  %s4539_s3 = smov [#allocation20]  }
 0x10e   :  { %s210_s10 = sshll.u32 %s4538_s4, 4  ;;  %s229_s12 = sshll.u32 %s4539_s3, 4  ;;  %s211_s10 = int_to_ptr.vmem [resolvable:$true] %s210_s10  ;;  %s4827_s12 = int_to_ptr.vmem [resolvable:$true] %s229_s12 }
 0x10f   :  { %s4336_s11 = scalar_lea.hbm %s4678_s8, 16 }
 0x110   :  { %p4337_p12 = scmp.ne.s32.totalorder %s4678_s8, %s4336_s11  ;;  %p4340_p13 = scmp.lt.u32.totalorder %s4336_s11, %s4678_s8 }
 0x112   :  { %p4342_p0 = pnand %p4340_p13, %p4337_p12 }
 0x114   :  { %4345 = shalt.err (!%p4342_p0)
}
 0x115   :  { %s4346_s15 = scalar_lea.vmem %s211_s10, 16  ;;  %s4350_s9 = scalar_lea.vmem %s211_s10, 32 }
 0x116   :  { %p4347_p1 = scmp.ne.s32.totalorder %s211_s10, %s4346_s15  ;;  %p4351_p2 = scmp.lt.s32.totalorder %s211_s10, %s211_s10 }
 0x117   :  { %p4352_p3 = scmp.lt.s32.totalorder %s4350_s9, %s4346_s15 }
 0x119   :  { %p4353_p4 = por %p4352_p3, %p4351_p2 }
 0x11b   :  { %p4354_p5 = pnand %p4353_p4, %p4347_p1 }
 0x11d   :  { %4357 = shalt.err (!%p4354_p5)
}
 0x11e   :  { %213 = dma.hbm_to_vmem [thread:$0]  %s4678_s8, 16, %s211_s10, [#allocation16]  }
 0x11f   :  { %s4358_s20 = scalar_lea.hbm %s4688_s30, 256 }
 0x120   :  { %p4359_p6 = scmp.ne.s32.totalorder %s4688_s30, %s4358_s20  ;;  %p4362_p7 = scmp.lt.u32.totalorder %s4358_s20, %s4688_s30 }
 0x122   :  { %p4364_p8 = pnand %p4362_p7, %p4359_p6 }
 0x124   :  { %4367 = shalt.err (!%p4364_p8)
}
 0x125   :  { %s4368_s16 = scalar_lea.vmem %s4827_s12, 256  ;;  %p4373_p10 = scmp.lt.s32.totalorder %s4827_s12, %s4827_s12 }
 0x126   :  { %p4369_p9 = scmp.ne.s32.totalorder %s4827_s12, %s4368_s16  ;;  %p4374_p11 = scmp.lt.s32.totalorder %s4368_s16, %s4368_s16 }
 0x128   :  { %p4375_p12 = por %p4374_p11, %p4373_p10 }
 0x12a   :  { %p4376_p13 = pnand %p4375_p12, %p4369_p9 }
 0x12c   :  { %4379 = shalt.err (!%p4376_p13)
}
 0x12d   :  { %s5406_s8 = sld [smem:[#allocation57_spill]]  ;;  %s4540_s18 = smov [#allocation23]  }
 0x12e   :  { %235 = dma.hbm_to_vmem [thread:$0]  %s4688_s30, 256, %s4827_s12, [#allocation19], %s4528_s6, %s4528_s6, %s4529_s2  }
 0x12f   :  { %s256_s22 = sshll.u32 %s4540_s18, 4  ;;  %s4541_s19 = smov [#allocation26]   ;;  %s257_s22 = int_to_ptr.vmem [resolvable:$true] %s256_s22 }
 0x130   :  { %s278_s17 = sshll.u32 %s4541_s19, 4  ;;  %s279_s17 = int_to_ptr.vmem [resolvable:$true] %s278_s17 }
 0x133   :  { %s4380_s14 = scalar_lea.hbm %s5406_s8, 32 }
 0x134   :  { %p4381_p0 = scmp.ne.s32.totalorder %s5406_s8, %s4380_s14  ;;  %p4384_p1 = scmp.lt.u32.totalorder %s4380_s14, %s5406_s8 }
 0x136   :  { %p4386_p2 = pnand %p4384_p1, %p4381_p0 }
 0x138   :  { %4389 = shalt.err (!%p4386_p2)
}
 0x139   :  { %s4390_s23 = scalar_lea.vmem %s257_s22, 32  ;;  %p4395_p4 = scmp.lt.s32.totalorder %s257_s22, %s257_s22 }
 0x13a   :  { %p4391_p3 = scmp.ne.s32.totalorder %s257_s22, %s4390_s23  ;;  %p4396_p5 = scmp.lt.s32.totalorder %s4390_s23, %s4390_s23 }
 0x13c   :  { %p4397_p6 = por %p4396_p5, %p4395_p4 }
 0x13e   :  { %p4398_p7 = pnand %p4397_p6, %p4391_p3 }
 0x140   :  { %4401 = shalt.err (!%p4398_p7)
}
 0x141   :  { %s5407_s30 = sld [smem:[#allocation59_spill]] }
 0x142   :  { %259 = dma.hbm_to_vmem [thread:$0]  %s5406_s8, 32, %s257_s22, [#allocation22]  }
 0x147   :  { %s4402_s6 = scalar_lea.hbm %s5407_s30, 16 }
 0x148   :  { %p4403_p8 = scmp.ne.s32.totalorder %s5407_s30, %s4402_s6  ;;  %p4406_p9 = scmp.lt.u32.totalorder %s4402_s6, %s5407_s30 }
 0x14a   :  { %p4408_p10 = pnand %p4406_p9, %p4403_p8 }
 0x14c   :  { %4411 = shalt.err (!%p4408_p10)
}
 0x14d   :  { %s4412_s2 = scalar_lea.vmem %s279_s17, 16  ;;  %s4416_s27 = scalar_lea.vmem %s279_s17, 32 }
 0x14e   :  { %p4413_p11 = scmp.ne.s32.totalorder %s279_s17, %s4412_s2  ;;  %p4417_p12 = scmp.lt.s32.totalorder %s279_s17, %s279_s17 }
 0x14f   :  { %p4418_p13 = scmp.lt.s32.totalorder %s4416_s27, %s4412_s2 }
 0x151   :  { %p4419_p0 = por %p4418_p13, %p4417_p12 }
 0x153   :  { %p4420_p1 = pnand %p4419_p0, %p4413_p11 }
 0x155   :  { %4423 = shalt.err (!%p4420_p1)
}
 0x156   :  { %281 = dma.hbm_to_vmem [thread:$0]  %s5407_s30, 16, %s279_s17, [#allocation25]  }
 0x157   :  { %s4542_s21 = smov [#allocation29]   ;;  %s4424_s28 = scalar_lea.hbm %s4738_s29, 16 }
 0x158   :  { %s302_s26 = sshll.u32 %s4542_s21, 4  ;;  %p4425_p2 = scmp.ne.s32.totalorder %s4738_s29, %s4424_s28  ;;  %s303_s26 = int_to_ptr.vmem [resolvable:$true] %s302_s26 }
 0x159   :  { %p4428_p3 = scmp.lt.u32.totalorder %s4424_s28, %s4738_s29 }
 0x15b   :  { %p4430_p4 = pnand %p4428_p3, %p4425_p2 }
 0x15d   :  { %4433 = shalt.err (!%p4430_p4)
}
 0x15e   :  { %s4434_s1 = scalar_lea.vmem %s303_s26, 16  ;;  %s4438_s7 = scalar_lea.vmem %s303_s26, 32 }
 0x15f   :  { %p4435_p5 = scmp.ne.s32.totalorder %s303_s26, %s4434_s1  ;;  %p4439_p6 = scmp.lt.s32.totalorder %s303_s26, %s303_s26 }
 0x160   :  { %p4440_p7 = scmp.lt.s32.totalorder %s4438_s7, %s4434_s1 }
 0x162   :  { %p4441_p8 = por %p4440_p7, %p4439_p6 }
 0x164   :  { %p4442_p9 = pnand %p4441_p8, %p4435_p5 }
 0x166   :  { %4445 = shalt.err (!%p4442_p9)
}
 0x167   :  { %305 = dma.hbm_to_vmem [thread:$0]  %s4738_s29, 16, %s303_s26, [#allocation28]  }
 0x168   :  { %4468 = dma.done.wait [#allocation4], 128  }
 0x169   :  { %4469 = vsyncadd [#allocation4], 4294967168 }
 0x16a   :  { %4470 = dma.done.wait [#allocation7], 32  }
 0x16b   :  { %4471 = vsyncadd [#allocation7], 4294967264 }
 0x16c   :  { %4472 = dma.done.wait [#allocation10], 272  }
 0x16d   :  { %4473 = vsyncadd [#allocation10], 4294967024 }
 0x16e   :  { %4474 = dma.done.wait [#allocation13], 512  }
 0x16f   :  { %4475 = vsyncadd [#allocation13], 4294966784 }
 0x170   :  { %4476 = dma.done.wait [#allocation16], 32  }
 0x171   :  { %4477 = vsyncadd [#allocation16], 4294967264 }
 0x172   :  { %4478 = dma.done.wait [#allocation19], 272  }
 0x173   :  { %4479 = vsyncadd [#allocation19], 4294967024 }
 0x174   :  { %4480 = dma.done.wait [#allocation22], 288  }
 0x175   :  { %4481 = vsyncadd [#allocation22], 4294967008 }
 0x176   :  { %4482 = dma.done.wait [#allocation25], 32  }
 0x177   :  { %4483 = vsyncadd [#allocation25], 4294967264 }
 0x178   :  { %4484 = dma.done.wait [#allocation28], 32  }
 0x179   :  { %4485 = vsyncadd [#allocation28], 4294967264  ;;  %s5408_s24 = sld [smem:[#allocation41_spill]]  ;;  %s5409_s29 = sld [smem:[#allocation44_spill]]  ;;  %v4543_v0 = vmov 0.0   ;;  %v4544_v1 = vmov 0.0|0.0  }
 0x17a   :  { %s5410_s0 = sld [smem:[#allocation42_spill]]  ;;  %445 = vmatprep.mubr.f32.mxu0 %v4543_v0  ;;  %3629 = vmatprep.subr.bf16.mxu1 %v4544_v1  ;;  %vm376_vm0 = vcmask 1041408   ;;  %vm369_vm1 = vcmask 15360   ;;  %s5411_s4 = sld [smem:[#allocation45_spill]]  ;;  %vm496_vm2 = vcmask 523264   ;;  %vm494_vm3 = vcmask 1044480  }
 0x17b   :  { %s5412_s10 = sld [smem:[#allocation43_spill]]  ;;  %s5413_s3 = sld [smem:[#allocation46_spill]]  ;;  %vm602_vm4 = vcmask 392192   ;;  %vm694_vm5 = vcmask 130048   ;;  %vm782_vm7 = vcmask 74752   ;;  %vm778_vm8 = vcmask 80896  }
 0x17c   :  { %s5414_s12 = sld [smem:[#allocation47_spill]]  ;;  %s4545_s11 = smov 80   ;;  %vm4952_vm6 = vmpackc.low %vm694_vm5, %vm694_vm5  ;;  %vm4549_vm9 = vmmov 1   ;;  %vm1312_vm11 = vcmask 261120   ;;  %vm1416_vm12 = vcmask 386048   ;;  %vm4553_vm13 = vmmov 0  }
 0x17d   :  { %s4546_s15 = smov 32   ;;  %s4547_s9 = smov 64   ;;  %vm4978_vm10 = vmpackc.low %vm376_vm0, %vm4549_vm9  ;;  %vm1840_vm14 = vcmask 254976   ;;  %vm1949_vm15 = vcmask 257026  }
 0x17e   :  { %s4548_s20 = smov 112   ;;  %s4550_s16 = smov 16  }
 0x17f   :  { %v3267_v2 = vld.sshfl [vmem:[%s5408_s24] sm:$0x33 pattern:$0x76325410]  ;;  %v467_v5 = vld [vmem:[%s5409_s29 + $0x8] sm:$0xff]  ;;  %v468_v6 = vld [vmem:[%s5409_s29 + $0x10] sm:$0xff] }
 0x180   :  { %v466_v3 = vld [vmem:[%s5409_s29] sm:$0xff]  ;;  %v368_v4 = vcombine.high %v3267_v2, %v3267_v2  ;;  %v469_v9 = vld [vmem:[%s5409_s29 + $0x18] sm:$0xff]  ;;  %v471_v12 = vld [vmem:[%s5409_s29 + $0x28] sm:$0xff]  ;;  %s4551_s8 = smov 48   ;;  %s4552_s18 = smov 96  }
 0x181   :  { %v357_v7 = vld [vmem:[%s5410_s0] sm:$0xff]  ;;  %v3630_v8 = vpack.c.bf16 %v467_v5, %v466_v3  ;;  %v3633_v10 = vpack.c.bf16 %v469_v9, %v468_v6  ;;  %v358_v13 = vld [vmem:[%s5410_s0 + $0x8] sm:$0x3]  ;;  %v472_v15 = vld [vmem:[%s5409_s29 + $0x30] sm:$0xff]  ;;  %s5419_s22 = sld [smem:[#allocation48_spill]]  ;;  %s5420_s19 = sld [smem:[#allocation49_spill]] }
 0x182   :  { %3268 = vmatprep.subr.msk.mxu0 %vm376_vm0, %v368_v4  ;;  %v470_v11 = vld [vmem:[%s5409_s29 + $0x20] sm:$0xff]  ;;  %v473_v16 = vld [vmem:[%s5409_s29 + $0x38] sm:$0xff]  ;;  %v475_v19 = vld [vmem:[%s5409_s29 + $0x48] sm:$0xff]  ;;  %s5421_s17 = sld [smem:[#allocation50_spill]]  ;;  %s5422_s14 = sld [smem:[#allocation51_spill]] }
 0x183   :  { %3269 = vmatpush1.msk.msra.mxu0 %vm376_vm0, %v3267_v2  ;;  %3631 = vmatpush1.bf16.msra.mxu1 %v3630_v8  ;;  %v3636_v14 = vpack.c.bf16 %v471_v12, %v470_v11  ;;  %v3639_v17 = vpack.c.bf16 %v473_v16, %v472_v15  ;;  %v474_v18 = vld [vmem:[%s5409_s29 + $0x40] sm:$0xff]  ;;  %v476_v21 = vld [vmem:[%s5409_s29 + $0x50] sm:$0xff]  ;;  %v477_v22 = vld [vmem:[%s5409_s29 + $0x58] sm:$0xff]  ;;  %s5423_s23 = sld [smem:[#allocation52_spill]]  ;;  %s5424_s30 = sld [smem:[#allocation53_spill]]  ;;  %vm2173_vm0 = vcmask 261126  }
 0x184   :  { %3270 = vmatmul.mubr.msk.f32.vlgmr.msra.gmra.mrb[0].mxu0 %vm369_vm1, %v357_v7  ;;  %3632 = vmatprep.subr.bf16.mxu1 %v4544_v1  ;;  %v3642_v20 = vpack.c.bf16 %v475_v19, %v474_v18  ;;  %v3645_v23 = vpack.c.bf16 %v477_v22, %v476_v21  ;;  %v478_v24 = vld [vmem:[%s5409_s29 + $0x60] sm:$0xff]  ;;  %v479_v25 = vld [vmem:[%s5409_s29 + $0x68] sm:$0xff]  ;;  %v480_v27 = vld [vmem:[%s5409_s29 + $0x70] sm:$0xff]  ;;  %v592_v19 = vlaneseq  ;;  %s5425_s6 = sld [smem:[#allocation55_spill]]  ;;  %s5426_s2 = sld [smem:[#allocation54_spill]] }
 0x185   :  { %451 = vmatprep.mubr.f32.mxu0 %v4543_v0  ;;  %v3648_v26 = vpack.c.bf16 %v479_v25, %v478_v24  ;;  %v481_v28 = vld [vmem:[%s5409_s29 + $0x78] sm:$0xff]  ;;  %v482_v30 = vld [vmem:[%s5409_s29 + $0x80] sm:$0xff]  ;;  %v483_v31 = vld [vmem:[%s5409_s29 + $0x88] sm:$0xff]  ;;  %s5427_s27 = sld [smem:[#allocation56_spill]]  ;;  %s5428_s21 = sld [smem:[#allocation58_spill]] }
 0x186   :  { %v3651_v29 = vpack.c.bf16 %v481_v28, %v480_v27  ;;  %v3654_v32 = vpack.c.bf16 %v483_v31, %v482_v30  ;;  %v484_v33 = vld [vmem:[%s5409_s29 + $0x90] sm:$0xff]  ;;  %v485_v34 = vld [vmem:[%s5409_s29 + $0x98] sm:$0xff]  ;;  %v486_v36 = vld [vmem:[%s5409_s29 + $0xa0] sm:$0xff] }
 0x187   :  { %3634 = vmatpush1.bf16.msra.mxu1 %v3633_v10  ;;  %v3657_v35 = vpack.c.bf16 %v485_v34, %v484_v33  ;;  %v487_v37 = vld [vmem:[%s5409_s29 + $0xa8] sm:$0xff]  ;;  %v488_v39 = vld [vmem:[%s5409_s29 + $0xb0] sm:$0xff]  ;;  %v489_v40 = vld [vmem:[%s5409_s29 + $0xb8] sm:$0xff] }
 0x188   :  { %3271 = vmatmul.mubr.msk.f32.gmra.mrb[2].mxu0 %vm369_vm1, %v358_v13  ;;  %3635 = vmatprep.subr.bf16.mxu1 %v4544_v1  ;;  %v3660_v38 = vpack.c.bf16 %v487_v37, %v486_v36  ;;  %v3663_v41 = vpack.c.bf16 %v489_v40, %v488_v39  ;;  %v579_v42 = vld [vmem:[%s5411_s4 + $0x8] sm:$0xff]  ;;  %v581_v43 = vld [vmem:[%s5411_s4 + $0x18] sm:$0xff]  ;;  %v578_v44 = vld [vmem:[%s5411_s4] sm:$0xff]  ;;  %vm2061_vm1 = vcmask 259076  }
 0x189   :  { %673 = vmatprep.mubr.f32.mxu0 %v4543_v0  ;;  %v3665_v45 = vpack.c.bf16 %v581_v43, %v579_v42  ;;  %v580_v46 = vld [vmem:[%s5411_s4 + $0x10] sm:$0xff]  ;;  %v583_v47 = vld [vmem:[%s5411_s4 + $0x28] sm:$0xff]  ;;  %v585_v48 = vld [vmem:[%s5411_s4 + $0x38] sm:$0xff] }
 0x18a   :  { %v3667_v49 = vpack.c.bf16 %v580_v46, %v578_v44  ;;  %v3669_v50 = vpack.c.bf16 %v585_v48, %v583_v47  ;;  %v582_v51 = vld [vmem:[%s5411_s4 + $0x20] sm:$0xff]  ;;  %v584_v52 = vld [vmem:[%s5411_s4 + $0x30] sm:$0xff]  ;;  %v587_v53 = vld [vmem:[%s5411_s4 + $0x48] sm:$0xff] }
 0x18b   :  { %3637 = vmatpush1.bf16.msra.mxu1 %v3636_v14  ;;  %3666 = vmatprep.subr.bf16.mxu0 %v3665_v45  ;;  %v589_v54 = vld [vmem:[%s5411_s4 + $0x58] sm:$0xff]  ;;  %v3671_v55 = vpack.c.bf16 %v584_v52, %v582_v51  ;;  %v459_v57 = vld [vmem:[%s5412_s10 + $0x8] sm:$0xff]  ;;  %v458_v59 = vld [vmem:[%s5412_s10] sm:$0xff] }
 0x18c   :  { %3638 = vmatprep.subr.bf16.mxu1 %v4544_v1  ;;  %3668 = vmatpush1.bf16.msra.mxu0 %v3667_v49  ;;  %v3673_v56 = vpack.c.bf16 %v589_v54, %v587_v53  ;;  %v461_v63 = vld [vmem:[%s5412_s10 + $0x18] sm:$0x3]  ;;  %v460_v3 = vld [vmem:[%s5412_s10 + $0x10] sm:$0x3]  ;;  %v586_v7 = vld [vmem:[%s5411_s4 + $0x40] sm:$0xff] }
 0x18d   :  { %3670 = vmatprep.subr.bf16.mxu0 %v3669_v50  ;;  %v588_v8 = vld [vmem:[%s5411_s4 + $0x50] sm:$0xff]  ;;  %v590_v22 = vld [vmem:[%s5413_s3] sm:$0x3] }
 0x18e   :  { %v3675_v9 = vpack.c.bf16 %v588_v8, %v586_v7  ;;  %v490_v10 = vld [vmem:[#allocation3] sm:$0x1f]  ;;  %v4966_v42 = vld [vmem:[%s5414_s12] sm:$0xff] }
 0x18f   :  { %3640 = vmatpush1.bf16.msra.mxu1 %v3639_v17  ;;  %v492_v11 = vrot.slane %v490_v10, 3 }
 0x190   :  { %3641 = vmatprep.subr.bf16.mxu1 %v4544_v1  ;;  %3672 = vmatpush1.bf16.msra.mxu0 %v3671_v55 }
 0x191   :  { %3674 = vmatprep.subr.bf16.mxu0 %v3673_v56  ;;  %v495_v12 = vsel %vm494_vm3, %v490_v10, %v492_v11  ;;  %vm2621_vm3 = vcmask 1046528  }
 0x193   :  { %3643 = vmatpush1.bf16.msra.mxu1 %v3642_v20  ;;  %v4928_v20 = vshrl.u32 %v592_v19, 7 }
 0x194   :  { %3644 = vmatprep.subr.bf16.mxu1 %v4544_v1  ;;  %3676 = vmatpush1.bf16.msra.mxu0 %v3675_v9 }
 0x195   :  { %v594_v21 = vsub.s32 0, %v4928_v20  ;;  %v598_v24 = vsub.s32 1, %v4928_v20 }
 0x197   :  { %3646 = vmatpush1.bf16.msra.mxu1 %v3645_v23  ;;  %v595_v23 = vrot.slane %v590_v22, %v594_v21  ;;  %v599_v28 = vrot.slane %v590_v22, %v598_v24 }
 0x198   :  { %3647 = vmatprep.subr.bf16.mxu1 %v4544_v1 }
 0x19b   :  { %3649 = vmatpush1.bf16.msra.mxu1 %v3648_v26 }
 0x19c   :  { %3650 = vmatprep.subr.bf16.mxu1 %v4544_v1 }
 0x19f   :  { %3652 = vmatpush1.bf16.msra.mxu1 %v3651_v29 }
 0x1a0   :  { %3653 = vmatprep.subr.bf16.mxu1 %v4544_v1 }
 0x1a3   :  { %3655 = vmatpush1.bf16.msra.mxu1 %v3654_v32 }
 0x1a4   :  { %3656 = vmatprep.subr.bf16.mxu1 %v4544_v1 }
 0x1a7   :  { %3658 = vmatpush1.bf16.msra.mxu1 %v3657_v35 }
 0x1a8   :  { %3659 = vmatprep.subr.bf16.mxu1 %v4544_v1 }
 0x1ab   :  { %3661 = vmatpush1.bf16.msra.mxu1 %v3660_v38 }
 0x1ac   :  { %3662 = vmatprep.subr.bf16.mxu1 %v4544_v1 }
 0x1af   :  { %3664 = vmatpush1.bf16.msra.mxu1 %v3663_v41  ;;  %v4963_v41 = vld [vmem:[%s5414_s12 + $0x8] sm:$0x3] }
 0x257   :  { %v447_v58 = vpop.f32.mrb[0].mxu0 }
 0x258   :  { %v449_v60 = vpop.f32.mrb[1].mxu0  ;;  %v462_v62 = vmul.f32 %v458_v59, %v447_v58 }
 0x259   :  { %v463_v61 = vmul.f32 %v459_v57, %v449_v60 }
 0x25b   :  { %v453_v2 = vpop.f32.mrb[2].mxu0  ;;  %3272 = vmatprep.mubr.msk.f32.mxu1 %vm496_vm2, %v463_v61 }
 0x25c   :  { %v455_v4 = vpop.f32.mrb[3].mxu0  ;;  %568 = vmatmul.mubr.f32.vlgmr.msra.gmra.mrb[0].mxu1 %v462_v62  ;;  %v464_v6 = vmul.f32 %v460_v3, %v453_v2 }
 0x25d   :  { %v465_v5 = vmul.f32 %v461_v63, %v455_v4 }
 0x25f   :  { %3273 = vmatprep.mubr.msk.f32.mxu1 %vm496_vm2, %v465_v5 }
 0x260   :  { %573 = vmatmul.mubr.f32.gmra.mrb[2].mxu1 %v464_v6 }
 0x32f   :  { %v569_v13 = vpop.f32.mrb[0].mxu1 }
 0x330   :  { %v4919_v14 = vadd.f32 %v569_v13, %v495_v12  ;;  %v571_v15 = vpop.f32.mrb[1].mxu1 }
 0x332   :  { %3274 = vmatmul.mubr.msk.f32.vlgmr.msra.gmra.mrb[4].mxu0 %vm602_vm4, %v4919_v14 }
 0x333   :  { %v574_v16 = vpop.f32.mrb[2].mxu1  ;;  %679 = vmatprep.mubr.f32.mxu0 %v4543_v0 }
 0x334   :  { %v4924_v17 = vadd.f32 %v574_v16, %v492_v11  ;;  %v576_v18 = vpop.f32.mrb[3].mxu1 }
 0x336   :  { %3275 = vmatmul.mubr.msk.f32.gmra.mrb[6].mxu0 %vm602_vm4, %v4924_v17 }
 0x405   :  { %v675_v25 = vpop.f32.mrb[4].mxu0 }
 0x406   :  { %v4935_v26 = vadd.f32 %v675_v25, %v595_v23  ;;  %v677_v27 = vpop.f32.mrb[5].mxu0 }
 0x407   :  { %v678_v32 = vadd.f32 %v677_v27, %v599_v28 }
 0x408   :  { %3445 = vmatprep.mubr.msk.f32.mxu0 %vm694_vm5, %v4935_v26 }
 0x409   :  { %v681_v29 = vpop.f32.mrb[6].mxu0 }
 0x40a   :  { %v4941_v30 = vadd.f32 %v681_v29, %v595_v23  ;;  %v683_v31 = vpop.f32.mrb[7].mxu0 }
 0x40b   :  { %v684_v33 = vadd.f32 %v683_v31, %v599_v28 }
 0x40c   :  { %v4945_v34 = vpack.i.bf16 %v4941_v30, %v4935_v26 }
 0x40d   :  { %v4947_v35 = vpack.c.bf16 %v684_v33, %v678_v32 }
 0x40e   :  { %3956 = vrot.lane.b32.xlu0 %v4945_v34, %s4545_s11 }
 0x480   :  { %v3957_v36 = vpop.permute.xlu0 %3956 }
 0x481   :  { %v3959_v37 = vunpack.i.h.bf16 %v3957_v36  ;;  %v3958_v38 = vunpack.i.l.bf16 %v3957_v36 }
 0x483   :  { %v3677_v40 = vpack.c.bf16 %v3959_v37, %v3958_v38 }
 0x485   :  { %3679 = vmatprep.subr.msk.bf16.mxu0 %vm4952_vm6, %v3677_v40 }
 0x486   :  { %3682 = vmatpush3.bf16.xpose.msk.msra.mxu0 %vm4952_vm6, %v3677_v40 }
 0x48d   :  { %3446 = vmatmul.mubr.msk.f32.vlgmr.msra.gmra.mrb[8].mxu0 %vm694_vm5, %v4941_v30 }
 0x560   :  { %v3447_v43 = vpop.f32.mrb[8].mxu0 }
 0x561   :  { %v775_v44 = vadd.f32 %v3447_v43, %v4963_v41  ;;  %v769_v45 = vpop.f32.mrb[9].mxu0 }
 0x562   :  { %v770_v46 = vadd.f32 %v769_v45, %v4966_v42 }
 0x563   :  { %v783_v47 = vsel %vm782_vm7, %v775_v44, -inf }
 0x564   :  { %784 = vmax.xlane.f32.xlu1 %v783_v47  ;;  %v779_v48 = vsel %vm778_vm8, %v770_v46, -inf }
 0x565   :  { %780 = vmax.xlane.f32.xlu0 %v779_v48 }
 0x575   :  { %3961 = vrot.lane.b32.xlu1 %v4945_v34, %s4546_s15 }
 0x579   :  { %3966 = vrot.lane.b32.xlu1 %v4945_v34, %s4547_s9 }
 0x57b   :  { %894 = vrot.lane.b32.xlu0 %v4941_v30, %s4548_s20 }
 0x5f1   :  { %v785_v49 = vpop.xlane.xlu1 %784 }
 0x5f2   :  { %v787_v50 = vsub.f32 %v775_v44, %v785_v49  ;;  %v781_v51 = vpop.xlane.xlu0 %780 }
 0x5f3   :  { %v786_v52 = vsub.f32 %v770_v46, %v781_v51 }
 0x5f4   :  { %v790_v53 = vmul.f32 1.442695, %v787_v50 }
 0x5f5   :  { %v788_v54 = vmul.f32 1.442695, %v786_v52  ;;  %v3962_v55 = vpop.permute.xlu1 %3961 }
 0x5f6   :  { %3980 = vpow2.f32 %v790_v53  ;;  %v3964_v56 = vunpack.i.h.bf16 %v3962_v55  ;;  %v3963_v57 = vunpack.i.l.bf16 %v3962_v55  ;;  %v895_v16 = vpop.permute.xlu0 %894 }
 0x5f7   :  { %3982 = vpow2.f32 %v788_v54 }
 0x5f8   :  { %v3683_v59 = vpack.c.bf16 %v3964_v56, %v3963_v57 }
 0x5f9   :  { %v3967_v60 = vpop.permute.xlu1 %3966 }
 0x5fa   :  { %v3969_v61 = vunpack.i.h.bf16 %v3967_v60  ;;  %v3968_v62 = vunpack.i.l.bf16 %v3967_v60  ;;  %3685 = vmatprep.subr.msk.bf16.mxu0 %vm4978_vm10, %v3683_v59 }
 0x5fb   :  { %3688 = vmatpush3.bf16.msk.msra.mxu0 %vm4978_vm10, %v3683_v59 }
 0x5fc   :  { %v3689_v63 = vpack.c.bf16 %v3969_v61, %v3968_v62 }
 0x5fe   :  { %3691 = vmatprep.subr.msk.bf16.mxu0 %vm4952_vm6, %v3689_v63 }
 0x600   :  { %v3981_v2 = vpop.eup %3980 }
 0x601   :  { %v795_v3 = vsel %vm782_vm7, %v3981_v2, 0.0  ;;  %v3983_v4 = vpop.eup %3982 }
 0x602   :  { %796 = vadd.xlane.f32.xlu1 %v795_v3  ;;  %v792_v5 = vsel %vm778_vm8, %v3983_v4, 0.0 }
 0x606   :  { %793 = vadd.xlane.f32.xlu1 %v792_v5 }
 0x617   :  { %892 = vrot.lane.b32.xlu1 %v4935_v26, %s4548_s20 }
 0x68f   :  { %v797_v6 = vpop.xlane.xlu1 %796 }
 0x690   :  { %3984 = vrcp.f32 %v797_v6 }
 0x693   :  { %v794_v7 = vpop.xlane.xlu1 %793 }
 0x694   :  { %3986 = vrcp.f32 %v794_v7 }
 0x697   :  { %v893_v15 = vpop.permute.xlu1 %892 }
 0x69a   :  { %v3985_v8 = vpop.eup %3984 }
 0x69b   :  { %v801_v10 = vmul.f32 %v3985_v8, %v3981_v2 }
 0x69d   :  { %v803_v13 = vmul.f32 0.14433756, %v801_v10 }
 0x69e   :  { %v3987_v9 = vpop.eup %3986 }
 0x69f   :  { %v799_v11 = vmul.f32 %v3987_v9, %v3983_v4 }
 0x6a1   :  { %v802_v12 = vmul.f32 0.14433756, %v799_v11 }
 0x6a3   :  { %3452 = vmatprep.mubr.msk.f32.mxu0 %vm778_vm8, %v802_v12 }
 0x6a4   :  { %3453 = vmatmul.mubr.msk.f32.vlgmr.msra.gmra.mrb[10].mxu0 %vm778_vm8, %v803_v13 }
 0x6a5   :  { %3694 = vmatpush3.bf16.xpose.msk.msra.mxu0 %vm4952_vm6, %v3689_v63  ;;  %3459 = vmatprep.mubr.msk.f32.mxu0 %vm694_vm5, %v893_v15 }
 0x6ac   :  { %3460 = vmatmul.mubr.msk.f32.vlgmr.msra.gmra.mrb[12].mxu0 %vm694_vm5, %v895_v16 }
 0x777   :  { %v4997_v18 = vpop.f32.mrb[10].mxu0 }
 0x778   :  { %v4999_v19 = vpop.f32.mrb[11].mxu0 }
 0x77f   :  { %v3461_v22 = vpop.f32.mrb[12].mxu0 }
 0x780   :  { %v980_v23 = vadd.f32 %v3461_v22, %v4963_v41  ;;  %v974_v25 = vpop.f32.mrb[13].mxu0 }
 0x781   :  { %v975_v27 = vadd.f32 %v974_v25, %v4966_v42 }
 0x782   :  { %v986_v28 = vsel %vm782_vm7, %v980_v23, -inf }
 0x783   :  { %987 = vmax.xlane.f32.xlu0 %v986_v28  ;;  %v983_v29 = vsel %vm778_vm8, %v975_v27, -inf }
 0x784   :  { %984 = vmax.xlane.f32.xlu1 %v983_v29 }
 0x795   :  { %3971 = vrot.lane.b32.xlu1 %v4945_v34, %s4550_s16 }
 0x799   :  { %3976 = vrot.lane.b32.xlu0 %v4945_v34, %s4551_s8 }
 0x810   :  { %v988_v31 = vpop.xlane.xlu0 %987 }
 0x811   :  { %v990_v32 = vsub.f32 %v980_v23, %v988_v31  ;;  %v985_v33 = vpop.xlane.xlu1 %984  ;;  %v1315_v31 = vld [vmem:[%s5419_s22] sm:$0xff] }
 0x812   :  { %v989_v36 = vsub.f32 %v975_v27, %v985_v33  ;;  %v1317_v33 = vld [vmem:[%s5419_s22 + $0x10] sm:$0xff] }
 0x813   :  { %v993_v37 = vmul.f32 1.442695, %v990_v32  ;;  %v1316_v32 = vld [vmem:[%s5419_s22 + $0x8] sm:$0xff] }
 0x814   :  { %v991_v38 = vmul.f32 1.442695, %v989_v36  ;;  %v3977_v40 = vpop.permute.xlu0 %3976  ;;  %v3713_v36 = vpack.c.bf16 %v1316_v32, %v1315_v31  ;;  %v3301_v31 = vld [vmem:[#allocation8] ss:$0 sm:$0xff] }
 0x815   :  { %3988 = vpow2.f32 %v993_v37  ;;  %v3972_v43 = vpop.permute.xlu1 %3971  ;;  %v3979_v44 = vunpack.i.h.bf16 %v3977_v40  ;;  %v3978_v45 = vunpack.i.l.bf16 %v3977_v40  ;;  %v1318_v37 = vld [vmem:[%s5419_s22 + $0x18] sm:$0xff]  ;;  %v1319_v40 = vld [vmem:[%s5419_s22 + $0x20] sm:$0xff] }
 0x816   :  { %v3974_v46 = vunpack.i.h.bf16 %v3972_v43  ;;  %v3973_v47 = vunpack.i.l.bf16 %v3972_v43  ;;  %3990 = vpow2.f32 %v991_v38  ;;  %v3717_v38 = vpack.c.bf16 %v1318_v37, %v1317_v33  ;;  %v1320_v43 = vld [vmem:[%s5419_s22 + $0x28] sm:$0xff]  ;;  %3714 = vmatprep.subr.bf16.mxu1 %v3713_v36 }
 0x817   :  { %v3701_v49 = vpack.c.bf16 %v3979_v44, %v3978_v45  ;;  %3716 = vmatpush3.bf16.msra.mxu1 %v3713_v36  ;;  %v3721_v44 = vpack.c.bf16 %v1320_v43, %v1319_v40  ;;  %v1734_v40 = vld [vmem:[%s5422_s14] sm:$0xff]  ;;  %v1735_v43 = vld [vmem:[%s5422_s14 + $0x8] sm:$0xff] }
 0x818   :  { %v3695_v48 = vpack.c.bf16 %v3974_v46, %v3973_v47  ;;  %3718 = vmatprep.subr.bf16.mxu1 %v3717_v38 }
 0x81a   :  { %3697 = vmatprep.subr.msk.bf16.mxu0 %vm4978_vm10, %v3695_v48 }
 0x81b   :  { %3700 = vmatpush3.bf16.msk.msra.mxu0 %vm4978_vm10, %v3695_v48  ;;  %3720 = vmatpush3.bf16.msra.mxu1 %v3717_v38  ;;  %v1564_v38 = vld [vmem:[#allocation11] sm:$0xff] }
 0x81c   :  { %3703 = vmatprep.subr.msk.bf16.mxu0 %vm4952_vm6, %v3701_v49  ;;  %3722 = vmatprep.subr.bf16.mxu1 %v3721_v44 }
 0x81f   :  { %v3989_v34 = vpop.eup %3988  ;;  %3724 = vmatpush3.bf16.msra.mxu1 %v3721_v44  ;;  %v5084_v44 = vpack.c.bf16 %v1735_v43, %v1734_v40 }
 0x820   :  { %v998_v50 = vsel %vm782_vm7, %v3989_v34, 0.0  ;;  %v3991_v51 = vpop.eup %3990 }
 0x821   :  { %999 = vadd.xlane.f32.xlu1 %v998_v50  ;;  %v995_v52 = vsel %vm778_vm8, %v3991_v51, 0.0 }
 0x825   :  { %996 = vadd.xlane.f32.xlu1 %v995_v52 }
 0x836   :  { %1095 = vrot.lane.b32.xlu1 %v4935_v26, %s4552_s18 }
 0x83a   :  { %1097 = vrot.lane.b32.xlu1 %v4941_v30, %s4552_s18 }
 0x8ae   :  { %v1000_v53 = vpop.xlane.xlu1 %999 }
 0x8af   :  { %3992 = vrcp.f32 %v1000_v53 }
 0x8b2   :  { %v997_v54 = vpop.xlane.xlu1 %996 }
 0x8b3   :  { %3994 = vrcp.f32 %v997_v54  ;;  %v3297_v54 = vld [vmem:[%s5420_s19] ss:$0 sm:$0xff] }
 0x8b6   :  { %v1096_v62 = vpop.permute.xlu1 %1095 }
 0x8b9   :  { %v3993_v55 = vpop.eup %3992 }
 0x8ba   :  { %v1004_v57 = vmul.f32 %v3993_v55, %v3989_v34  ;;  %v1098_v26 = vpop.permute.xlu1 %1097 }
 0x8bc   :  { %v1006_v61 = vmul.f32 0.14433756, %v1004_v57 }
 0x8bd   :  { %v3995_v56 = vpop.eup %3994 }
 0x8be   :  { %v1002_v59 = vmul.f32 %v3995_v56, %v3991_v51 }
 0x8c0   :  { %v1005_v60 = vmul.f32 0.14433756, %v1002_v59 }
 0x8c2   :  { %3466 = vmatprep.mubr.msk.f32.mxu0 %vm778_vm8, %v1005_v60 }
 0x8c3   :  { %3467 = vmatmul.mubr.msk.f32.vlgmr.msra.gmra.mrb[14].mxu0 %vm778_vm8, %v1006_v61 }
 0x8c4   :  { %3706 = vmatpush3.bf16.xpose.msk.msra.mxu0 %vm4952_vm6, %v3701_v49  ;;  %3473 = vmatprep.mubr.msk.f32.mxu0 %vm694_vm5, %v1096_v62  ;;  %vm2610_vm6 = vcmask 1040384  }
 0x8c5   :  { %3709 = vmatprep.subr.msk.bf16.mxu0 %vm4978_vm10, %v4947_v35 }
 0x8cb   :  { %3474 = vmatmul.mubr.msk.f32.vlgmr.msra.gmra.mrb[16].mxu0 %vm694_vm5, %v1098_v26 }
 0x8cc   :  { %3712 = vmatpush3.bf16.msk.msra.mxu0 %vm4978_vm10, %v4947_v35 }
 0x996   :  { %v3468_v30 = vpop.f32.mrb[14].mxu0 }
 0x997   :  { %v1086_v63 = vpop.f32.mrb[15].mxu0 }
 0x99e   :  { %v3475_v2 = vpop.f32.mrb[16].mxu0 }
 0x99f   :  { %v1183_v3 = vadd.f32 %v3475_v2, %v4963_v41  ;;  %v1177_v39 = vpop.f32.mrb[17].mxu0 }
 0x9a0   :  { %v1178_v4 = vadd.f32 %v1177_v39, %v4966_v42 }
 0x9a1   :  { %v1189_v5 = vsel %vm782_vm7, %v1183_v3, -inf }
 0x9a2   :  { %1190 = vmax.xlane.f32.xlu0 %v1189_v5  ;;  %v1186_v6 = vsel %vm778_vm8, %v1178_v4, -inf  ;;  %v1457_v5 = vld [vmem:[%s5421_s17] sm:$0xff] }
 0x9a3   :  { %1187 = vmax.xlane.f32.xlu1 %v1186_v6  ;;  %v1458_v6 = vld [vmem:[%s5421_s17 + $0x8] sm:$0xff] }
 0xa2f   :  { %v1191_v7 = vpop.xlane.xlu0 %1190 }
 0xa30   :  { %v1193_v8 = vsub.f32 %v1183_v3, %v1191_v7  ;;  %v1188_v9 = vpop.xlane.xlu1 %1187  ;;  %v3725_v7 = vpack.c.bf16 %v1458_v6, %v1457_v5 }
 0xa31   :  { %v1192_v10 = vsub.f32 %v1178_v4, %v1188_v9  ;;  %v1460_v9 = vld [vmem:[%s5421_s17 + $0x18] sm:$0xff] }
 0xa32   :  { %v1196_v11 = vmul.f32 1.442695, %v1193_v8  ;;  %3726 = vmatprep.subr.bf16.mxu0 %v3725_v7  ;;  %v1459_v8 = vld [vmem:[%s5421_s17 + $0x10] sm:$0xff] }
 0xa33   :  { %v1194_v35 = vmul.f32 1.442695, %v1192_v10  ;;  %v3729_v10 = vpack.c.bf16 %v1460_v9, %v1459_v8 }
 0xa34   :  { %3996 = vpow2.f32 %v1196_v11  ;;  %v1461_v11 = vld [vmem:[%s5421_s17 + $0x20] sm:$0xff] }
 0xa35   :  { %3998 = vpow2.f32 %v1194_v35  ;;  %v1462_v35 = vld [vmem:[%s5421_s17 + $0x28] sm:$0xff] }
 0xa3e   :  { %v3997_v12 = vpop.eup %3996 }
 0xa3f   :  { %v3999_v13 = vpop.eup %3998  ;;  %v1201_v41 = vsel %vm782_vm7, %v3997_v12, 0.0  ;;  %vm2645_vm7 = vcmask 785408  }
 0xa40   :  { %1202 = vadd.xlane.f32.xlu1 %v1201_v41  ;;  %v1198_v42 = vsel %vm778_vm8, %v3999_v13, 0.0 }
 0xa41   :  { %1199 = vadd.xlane.f32.xlu0 %v1198_v42 }
 0xa51   :  { %1298 = vrot.lane.b32.xlu1 %v3468_v30, %s4550_s16 }
 0xa57   :  { %1296 = vrot.lane.b32.xlu0 %v1086_v63, %s4550_s16 }
 0xacd   :  { %v1203_v15 = vpop.xlane.xlu1 %1202 }
 0xace   :  { %4000 = vrcp.f32 %v1203_v15  ;;  %v1200_v16 = vpop.xlane.xlu0 %1199 }
 0xacf   :  { %4002 = vrcp.f32 %v1200_v16 }
 0xad1   :  { %v1299_v48 = vpop.permute.xlu1 %1298 }
 0xad2   :  { %v1297_v47 = vpop.permute.xlu0 %1296  ;;  %v1311_v51 = vsel %vm694_vm5, %v4997_v18, %v1299_v48  ;;  %v3302_v48 = vld [vmem:[#allocation9] ss:$0 sm:$0xff] }
 0xad3   :  { %v1310_v34 = vsel %vm694_vm5, %v4999_v19, %v1297_v47 }
 0xad8   :  { %v4001_v22 = vpop.eup %4000 }
 0xad9   :  { %v4003_v23 = vpop.eup %4002  ;;  %v1207_v25 = vmul.f32 %v4001_v22, %v3997_v12  ;;  %v3733_v12 = vpack.c.bf16 %v1462_v35, %v1461_v11 }
 0xada   :  { %v1205_v27 = vmul.f32 %v4003_v23, %v3999_v13 }
 0xadb   :  { %v1209_v29 = vmul.f32 0.14433756, %v1207_v25  ;;  %v3300_v25 = vld [vmem:[#allocation6] ss:$0 sm:$0xff] }
 0xadc   :  { %v1208_v28 = vmul.f32 0.14433756, %v1205_v27 }
 0xade   :  { %3480 = vmatprep.mubr.msk.f32.mxu0 %vm778_vm8, %v1208_v28 }
 0xadf   :  { %3481 = vmatmul.mubr.msk.f32.vlgmr.msra.gmra.mrb[18].mxu0 %vm778_vm8, %v1209_v29 }
 0xae0   :  { %3728 = vmatpush3.bf16.msra.mxu0 %v3725_v7 }
 0xae1   :  { %3730 = vmatprep.subr.bf16.mxu0 %v3729_v10 }
 0xae4   :  { %3732 = vmatpush3.bf16.msra.mxu0 %v3729_v10 }
 0xae5   :  { %3734 = vmatprep.subr.bf16.mxu0 %v3733_v12 }
 0xae8   :  { %3736 = vmatpush3.bf16.msra.mxu0 %v3733_v12 }
 0xae9   :  { %3749 = vmatprep.subr.bf16.mxu0 %v4544_v1 }
 0xbb2   :  { %v3482_v45 = vpop.f32.mrb[18].mxu0 }
 0xbb3   :  { %1306 = vrot.lane.b32.xlu0 %v3482_v45, %s4546_s15  ;;  %v1285_v46 = vpop.f32.mrb[19].mxu0  ;;  %v1736_v45 = vld [vmem:[%s5422_s14 + $0x10] sm:$0xff] }
 0xbb4   :  { %1304 = vrot.lane.b32.xlu1 %v1285_v46, %s4546_s15  ;;  %v1737_v46 = vld [vmem:[%s5422_s14 + $0x18] sm:$0xff] }
 0xbb5   :  { %v5089_v47 = vpack.c.bf16 %v1737_v46, %v1736_v45 }
 0xc25   :  { %v1307_v49 = vpop.permute.xlu0 %1306 }
 0xc26   :  { %v1305_v50 = vpop.permute.xlu1 %1304  ;;  %v1314_v53 = vsel %vm1312_vm11, %v1311_v51, %v1307_v49 }
 0xc27   :  { %v1313_v52 = vsel %vm1312_vm11, %v1310_v34, %v1305_v50  ;;  %v3305_v34 = vld [vmem:[%s5423_s23] ss:$0 sm:$0xff] }
 0xc28   :  { %3495 = vmatprep.mubr.msk.f32.mxu1 %vm602_vm4, %v1313_v52 }
 0xc29   :  { %3496 = vmatmul.mubr.msk.f32.vlgmr.msra.gmra.mrb[4].mxu1 %vm602_vm4, %v1314_v53 }
 0xc2a   :  { %3517 = vmatprep.mubr.msk.f32.mxu1 %vm778_vm8, %v1564_v38 }
 0xcfc   :  { %v3497_v55 = vpop.f32.mrb[4].mxu1 }
 0xcfd   :  { %v1406_v56 = vadd.f32 %v3497_v55, %v3297_v54  ;;  %v1400_v57 = vpop.f32.mrb[5].mxu1 }
 0xcfe   :  { %v1401_v59 = vadd.f32 %v3297_v54, %v1400_v57 }
 0xcff   :  { %v1410_v19 = vadd.f32 %v1406_v56, %v4924_v17 }
 0xd00   :  { %v1409_v60 = vadd.f32 %v1401_v59, %v4919_v14 }
 0xd01   :  { %v1417_v18 = vsel %vm1416_vm12, %v1410_v19, 0.0 }
 0xd02   :  { %1418 = vadd.xlane.f32.xlu0 %v1417_v18  ;;  %v1413_v61 = vsel %vm602_vm4, %v1409_v60, 0.0  ;;  %v1563_v18 = vld [vmem:[%s5424_s30 + $0x8] sm:$0x3] }
 0xd03   :  { %1414 = vadd.xlane.f32.xlu1 %v1413_v61 }
 0xd8f   :  { %v1419_v62 = vpop.xlane.xlu0 %1418 }
 0xd90   :  { %v1422_v26 = vmul.f32 0.020833334, %v1419_v62  ;;  %v1415_v30 = vpop.xlane.xlu1 %1414 }
 0xd91   :  { %v1421_v63 = vmul.f32 0.020833334, %v1415_v30 }
 0xd92   :  { %v1424_v2 = vsub.f32 %v1410_v19, %v1422_v26  ;;  %v1565_v19 = vld [vmem:[#allocation11 + $0x8] sm:$0x3] }
 0xd93   :  { %v1423_v3 = vsub.f32 %v1409_v60, %v1421_v63  ;;  %v1562_v60 = vld [vmem:[%s5424_s30] sm:$0xff] }
 0xd94   :  { %v1426_v17 = vmul.f32 %v1424_v2, %v1424_v2 }
 0xd95   :  { %v1425_v14 = vmul.f32 %v1423_v3, %v1423_v3 }
 0xd96   :  { %v1430_v39 = vsel %vm1416_vm12, %v1426_v17, 0.0 }
 0xd97   :  { %1431 = vadd.xlane.f32.xlu1 %v1430_v39  ;;  %v1427_v4 = vsel %vm602_vm4, %v1425_v14, 0.0 }
 0xd98   :  { %1428 = vadd.xlane.f32.xlu0 %v1427_v4 }
 0xe24   :  { %v1432_v13 = vpop.xlane.xlu1 %1431 }
 0xe25   :  { %v1434_v41 = vmul.f32 0.020833334, %v1432_v13  ;;  %v1429_v42 = vpop.xlane.xlu0 %1428 }
 0xe26   :  { %v1433_v15 = vmul.f32 0.020833334, %v1429_v42 }
 0xe27   :  { %v1436_v16 = vadd.f32 1e-05, %v1434_v41 }
 0xe28   :  { %v1435_v22 = vadd.f32 1e-05, %v1433_v15 }
 0xe29   :  { %4004 = vrsqrt.f32 %v1436_v16 }
 0xe2a   :  { %4006 = vrsqrt.f32 %v1435_v22 }
 0xe33   :  { %v4005_v23 = vpop.eup %4004 }
 0xe34   :  { %v4007_v27 = vpop.eup %4006  ;;  %v1440_v28 = vmul.f32 %v4005_v23, %v1424_v2 }
 0xe35   :  { %v1439_v29 = vmul.f32 %v4007_v27, %v1423_v3 }
 0xe36   :  { %v1448_v32 = vmul.f32 %v3300_v25, %v1440_v28 }
 0xe37   :  { %v1447_v33 = vmul.f32 %v3300_v25, %v1439_v29 }
 0xe38   :  { %v5075_v37 = vadd.f32 %v3301_v31, %v1448_v32 }
 0xe39   :  { %v5073_v36 = vadd.f32 %v3301_v31, %v1447_v33 }
 0xe3b   :  { %3510 = vmatprep.mubr.msk.f32.mxu0 %vm602_vm4, %v5073_v36 }
 0xe3c   :  { %3511 = vmatmul.mubr.msk.f32.vlgmr.msra.gmra.mrb[20].mxu0 %vm602_vm4, %v5075_v37 }
 0xe3d   :  { %3751 = vmatpush3.bf16.msra.mxu0 %v5084_v44  ;;  %3535 = vmatprep.mubr.msk.f32.mxu0 %vm4553_vm13, %v4543_v0 }
 0xe3e   :  { %3752 = vmatprep.subr.bf16.mxu0 %v4544_v1 }
 0xe41   :  { %3754 = vmatpush3.bf16.msra.mxu0 %v5089_v47 }
 0xe42   :  { %3761 = vmatprep.subr.bf16.mxu0 %v4544_v1 }
 0xe44   :  { %3536 = vmatmul.mubr.f32.vlgmr.msra.gmra.mrb[22].mxu0 %v4543_v0 }
 0xe45   :  { %3763 = vmatpush3.bf16.msra.mxu0 %v5084_v44  ;;  %3557 = vmatprep.mubr.msk.f32.mxu0 %vm4553_vm13, %v4543_v0 }
 0xe46   :  { %3764 = vmatprep.subr.bf16.mxu0 %v4544_v1 }
 0xe49   :  { %3766 = vmatpush3.bf16.msra.mxu0 %v5089_v47 }
 0xe4a   :  { %3773 = vmatprep.subr.bf16.mxu0 %v4544_v1 }
 0xf0f   :  { %v3512_v49 = vpop.f32.mrb[20].mxu0 }
 0xf10   :  { %v1548_v50 = vadd.f32 %v3512_v49, %v3302_v48  ;;  %v1542_v51 = vpop.f32.mrb[21].mxu0 }
 0xf11   :  { %v1543_v52 = vadd.f32 %v3302_v48, %v1542_v51 }
 0xf12   :  { %v1559_v53 = vmul.f32 %v3305_v34, %v1548_v50 }
 0xf13   :  { %v1558_v54 = vmul.f32 %v3305_v34, %v1543_v52 }
 0xf14   :  { %v1561_v55 = vsub.f32 %v1548_v50, %v1559_v53 }
 0xf15   :  { %v1560_v56 = vsub.f32 %v1543_v52, %v1558_v54  ;;  %v3743_v57 = vpack.c.bf16 %v1559_v53, %v1558_v54 }
 0xf17   :  { %v3737_v59 = vpack.c.bf16 %v1561_v55, %v1560_v56  ;;  %v1807_v61 = vpop.f32.mrb[22].mxu0 }
 0xf18   :  { %v3537_v62 = vpop.f32.mrb[23].mxu0 }
 0xf19   :  { %3739 = vmatprep.subr.msk.bf16.mxu1 %vm4978_vm10, %v3737_v59 }
 0xf1a   :  { %3742 = vmatpush3.bf16.msk.msra.mxu1 %vm4978_vm10, %v3737_v59 }
 0xf1b   :  { %3745 = vmatprep.subr.msk.bf16.mxu1 %vm4978_vm10, %v3743_v57 }
 0xf1d   :  { %3518 = vmatmul.mubr.msk.f32.vlgmr.msra.gmra.mrb[6].mxu1 %vm778_vm8, %v1565_v19 }
 0xf1e   :  { %3748 = vmatpush3.bf16.msk.msra.mxu1 %vm4978_vm10, %v3743_v57  ;;  %3524 = vmatprep.mubr.msk.f32.mxu1 %vm778_vm8, %v1562_v60 }
 0xf1f   :  { %3755 = vmatprep.subr.bf16.mxu1 %v4544_v1 }
 0xf25   :  { %3525 = vmatmul.mubr.msk.f32.vlgmr.msra.gmra.mrb[6].mxu1 %vm778_vm8, %v1563_v18 }
 0xf26   :  { %3757 = vmatpush3.bf16.msra.mxu1 %v5084_v44  ;;  %3546 = vmatprep.mubr.msk.f32.mxu1 %vm4553_vm13, %v4543_v0 }
 0xf27   :  { %3758 = vmatprep.subr.bf16.mxu1 %v4544_v1 }
 0xf2a   :  { %3760 = vmatpush3.bf16.msra.mxu1 %v5089_v47 }
 0xf2b   :  { %3767 = vmatprep.subr.bf16.mxu1 %v4544_v1 }
 0xff8   :  { %v5124_v26 = vpop.f32.mrb[6].mxu1 }
 0xff9   :  { %v5126_v30 = vpop.f32.mrb[7].mxu1 }
 0xffa   :  { %v1811_v63 = vadd.f32 %v1807_v61, %v5126_v30 }
 0xffc   :  { %4008 = vtanh.f32 %v1811_v63  ;;  %v3312_v3 = vmul.f32 -1.442695, %v1811_v63 }
 0xffe   :  { %4010 = vpow2.f32 %v3312_v3 }
0x1006   :  { %v4009_v2 = vpop.eup %4008 }
0x1007   :  { %1821 = vrot.lane.b32.xlu0 %v4009_v2, %s4547_s9 }
0x1008   :  { %v4011_v17 = vpop.eup %4010 }
0x1009   :  { %v1815_v14 = vadd.f32 1.0, %v4011_v17 }
0x100b   :  { %4012 = vrcp.f32 %v1815_v14 }
0x1015   :  { %v4013_v39 = vpop.eup %4012 }
0x1016   :  { %v1819_v6 = vmul.f32 0.0, %v4013_v39 }
0x1079   :  { %v1822_v4 = vpop.permute.xlu0 %1821 }
0x107a   :  { %v1824_v5 = vmul.f32 %v4013_v39, %v1822_v4 }
0x107c   :  { %1826 = vrot.lane.b32.xlu1 %v1824_v5, %s4546_s15 }
0x10ee   :  { %v1827_v7 = vpop.permute.xlu1 %1826 }
0x10ef   :  { %v1829_v8 = vadd.f32 %v1827_v7, %v1819_v6 }
0x10f1   :  { %4014 = vtanh.f32 %v1829_v8  ;;  %v1926_v29 = vrot.slane %v1829_v8, 6 }
0x10fb   :  { %v4015_v9 = vpop.eup %4014 }
0x10fc   :  { %1832 = vrot.lane.b32.xlu1 %v4015_v9, %s4547_s9 }
0x116e   :  { %v1833_v10 = vpop.permute.xlu1 %1832 }
0x116f   :  { %v1835_v11 = vmul.f32 %v4013_v39, %v1833_v10 }
0x1171   :  { %1837 = vrot.lane.b32.xlu0 %v1835_v11, %s4546_s15 }
0x11e3   :  { %v1838_v35 = vpop.permute.xlu0 %1837 }
0x11e4   :  { %1841 = vst.msk [vmem:[#allocation2] sm:$0x3] %vm1840_vm14, %v1838_v35  ;;  %3547 = vmatmul.mubr.msk.f32.vlgmr.msra.gmra.mrb[8].mxu1 %vm1312_vm11, %v1838_v35 }
0x11e5   :  { %3769 = vmatpush3.bf16.msra.mxu1 %v5084_v44  ;;  %3568 = vmatprep.mubr.msk.f32.mxu1 %vm4553_vm13, %v4543_v0 }
0x11e6   :  { %3770 = vmatprep.subr.bf16.mxu1 %v4544_v1 }
0x11e9   :  { %3772 = vmatpush3.bf16.msra.mxu1 %v5089_v47 }
0x12b7   :  { %v1910_v12 = vpop.f32.mrb[8].mxu1 }
0x12b8   :  { %v1915_v13 = vrot.slane %v1910_v12, 6  ;;  %v3548_v41 = vpop.f32.mrb[9].mxu1 }
0x12ba   :  { %v1917_v42 = vadd.f32 %v1915_v13, %v5126_v30 }
0x12bc   :  { %4016 = vtanh.f32 %v1917_v42  ;;  %v3314_v16 = vmul.f32 -1.442695, %v1917_v42 }
0x12be   :  { %4018 = vpow2.f32 %v3314_v16 }
0x12c6   :  { %v4017_v15 = vpop.eup %4016 }
0x12c7   :  { %1930 = vrot.lane.b32.xlu1 %v4017_v15, %s4547_s9 }
0x12c8   :  { %v4019_v22 = vpop.eup %4018 }
0x12c9   :  { %v1921_v23 = vadd.f32 1.0, %v4019_v22 }
0x12cb   :  { %4020 = vrcp.f32 %v1921_v23 }
0x12d5   :  { %v4021_v25 = vpop.eup %4020 }
0x12d6   :  { %v1928_v31 = vmul.f32 %v4021_v25, %v1926_v29 }
0x1339   :  { %v1931_v27 = vpop.permute.xlu1 %1930 }
0x133a   :  { %v1933_v28 = vmul.f32 %v4021_v25, %v1931_v27 }
0x133c   :  { %1935 = vrot.lane.b32.xlu0 %v1933_v28, %s4546_s15 }
0x13ae   :  { %v1936_v32 = vpop.permute.xlu0 %1935 }
0x13af   :  { %v1938_v33 = vadd.f32 %v1936_v32, %v1928_v31 }
0x13b1   :  { %4022 = vtanh.f32 %v1938_v33 }
0x13bb   :  { %v4023_v38 = vpop.eup %4022 }
0x13bc   :  { %1941 = vrot.lane.b32.xlu1 %v4023_v38, %s4547_s9 }
0x142e   :  { %v1942_v40 = vpop.permute.xlu1 %1941 }
0x142f   :  { %v5144_v43 = vmul.f32 %v4021_v25, %v1942_v40 }
0x1431   :  { %v1951_v45 = vrot.slane %v5144_v43, 2 }
0x1433   :  { %1952 = vrot.lane.b32.xlu0 %v1951_v45, %s4546_s15 }
0x14a5   :  { %v1953_v46 = vpop.permute.xlu0 %1952 }
0x14a6   :  { %3558 = vmatmul.mubr.msk.f32.vlgmr.msra.gmra.mrb[24].mxu0 %vm1312_vm11, %v1953_v46 }
0x14a7   :  { %3775 = vmatpush3.bf16.msra.mxu0 %v5084_v44  ;;  %3579 = vmatprep.mubr.msk.f32.mxu0 %vm4553_vm13, %v4543_v0 }
0x14a8   :  { %3776 = vmatprep.subr.bf16.mxu0 %v4544_v1 }
0x14ab   :  { %3778 = vmatpush3.bf16.msra.mxu0 %v5089_v47  ;;  %v2038_v47 = vrot.slane %v1938_v33, 6 }
0x1579   :  { %v2022_v48 = vpop.f32.mrb[24].mxu0 }
0x157a   :  { %v2027_v49 = vrot.slane %v2022_v48, 4  ;;  %v3559_v34 = vpop.f32.mrb[25].mxu0 }
0x157c   :  { %v2029_v50 = vadd.f32 %v2027_v49, %v5126_v30 }
0x157e   :  { %4024 = vtanh.f32 %v2029_v50  ;;  %v3316_v52 = vmul.f32 -1.442695, %v2029_v50 }
0x1580   :  { %4026 = vpow2.f32 %v3316_v52  ;;  %v2468_v52 = vld [vmem:[%s5425_s6] sm:$0xff] }
0x1588   :  { %v4025_v51 = vpop.eup %4024 }
0x1589   :  { %2042 = vrot.lane.b32.xlu1 %v4025_v51, %s4547_s9  ;;  %v2298_v51 = vld [vmem:[#allocation14] sm:$0xff] }
0x158a   :  { %v4027_v53 = vpop.eup %4026 }
0x158b   :  { %v2033_v44 = vadd.f32 1.0, %v4027_v53  ;;  %v2469_v53 = vld [vmem:[%s5425_s6 + $0x8] sm:$0xff] }
0x158d   :  { %4028 = vrcp.f32 %v2033_v44  ;;  %v2470_v44 = vld [vmem:[%s5425_s6 + $0x10] sm:$0xff] }
0x1597   :  { %v4029_v54 = vpop.eup %4028 }
0x1598   :  { %v2040_v57 = vmul.f32 %v4029_v54, %v2038_v47 }
0x15fb   :  { %v2043_v55 = vpop.permute.xlu1 %2042 }
0x15fc   :  { %v2045_v56 = vmul.f32 %v4029_v54, %v2043_v55  ;;  %v2471_v55 = vld [vmem:[%s5425_s6 + $0x18] sm:$0xff] }
0x15fe   :  { %2047 = vrot.lane.b32.xlu0 %v2045_v56, %s4546_s15  ;;  %v3795_v56 = vpack.c.bf16 %v2471_v55, %v2470_v44  ;;  %v2662_v55 = vld [vmem:[%s5427_s27 + $0x70] sm:$0xff] }
0x1670   :  { %v2048_v59 = vpop.permute.xlu0 %2047 }
0x1671   :  { %v2050_v19 = vadd.f32 %v2048_v59, %v2040_v57  ;;  %v3321_v59 = vld [vmem:[%s5426_s2] ss:$0 sm:$0xff] }
0x1673   :  { %4030 = vtanh.f32 %v2050_v19  ;;  %v2150_v10 = vrot.slane %v2050_v19, 6 }
0x167d   :  { %v4031_v60 = vpop.eup %4030 }
0x167e   :  { %2053 = vrot.lane.b32.xlu1 %v4031_v60, %s4547_s9 }
0x16f0   :  { %v2054_v18 = vpop.permute.xlu1 %2053 }
0x16f1   :  { %v5158_v61 = vmul.f32 %v4029_v54, %v2054_v18  ;;  %v3791_v54 = vpack.c.bf16 %v2469_v53, %v2468_v52  ;;  %v2663_v52 = vld [vmem:[%s5427_s27 + $0x78] sm:$0xff] }
0x16f3   :  { %v2063_v62 = vrot.slane %v5158_v61, 4  ;;  %3792 = vmatprep.subr.bf16.mxu0 %v3791_v54 }
0x16f5   :  { %2064 = vrot.lane.b32.xlu0 %v2063_v62, %s4546_s15 }
0x1767   :  { %v2065_v63 = vpop.permute.xlu0 %2064 }
0x1768   :  { %3569 = vmatmul.mubr.msk.f32.vlgmr.msra.gmra.mrb[10].mxu1 %vm1312_vm11, %v2065_v63 }
0x1769   :  { %3586 = vmatprep.mubr.msk.f32.mxu1 %vm778_vm8, %v2298_v51  ;;  %v2661_v51 = vld [vmem:[%s5427_s27 + $0x68] sm:$0xff] }
0x176a   :  { %v3811_v44 = vpack.c.bf16 %v2663_v52, %v2661_v51  ;;  %v2626_v51 = vld [vmem:[#allocation21 + $0x8] sm:$0x3] }
0x183b   :  { %v2134_v2 = vpop.f32.mrb[10].mxu1 }
0x183c   :  { %v2139_v3 = vrot.slane %v2134_v2, 2  ;;  %v3570_v17 = vpop.f32.mrb[11].mxu1 }
0x183d   :  { %v2296_v17 = vld [vmem:[#allocation12] sm:$0xff] }
0x183e   :  { %v2141_v14 = vadd.f32 %v2139_v3, %v5126_v30  ;;  %v2299_v3 = vld [vmem:[#allocation14 + $0x8] sm:$0x3] }
0x1840   :  { %4032 = vtanh.f32 %v2141_v14  ;;  %v3318_v4 = vmul.f32 -1.442695, %v2141_v14  ;;  %v2297_v14 = vld [vmem:[#allocation12 + $0x8] sm:$0x3] }
0x1842   :  { %4034 = vpow2.f32 %v3318_v4 }
0x184a   :  { %v4033_v39 = vpop.eup %4032 }
0x184b   :  { %2154 = vrot.lane.b32.xlu1 %v4033_v39, %s4547_s9 }
0x184c   :  { %v4035_v5 = vpop.eup %4034 }
0x184d   :  { %v2145_v6 = vadd.f32 1.0, %v4035_v5  ;;  %v3328_v5 = vld [vmem:[#allocation15] ss:$0 sm:$0xff] }
0x184f   :  { %4036 = vrcp.f32 %v2145_v6 }
0x1859   :  { %v4037_v7 = vpop.eup %4036 }
0x185a   :  { %v2152_v11 = vmul.f32 %v4037_v7, %v2150_v10 }
0x18bd   :  { %v2155_v8 = vpop.permute.xlu1 %2154 }
0x18be   :  { %v2157_v9 = vmul.f32 %v4037_v7, %v2155_v8 }
0x18c0   :  { %2159 = vrot.lane.b32.xlu0 %v2157_v9, %s4546_s15 }
0x1932   :  { %v2160_v35 = vpop.permute.xlu0 %2159 }
0x1933   :  { %v2162_v12 = vadd.f32 %v2160_v35, %v2152_v11 }
0x1935   :  { %4038 = vtanh.f32 %v2162_v12 }
0x193f   :  { %v4039_v30 = vpop.eup %4038 }
0x1940   :  { %2165 = vrot.lane.b32.xlu1 %v4039_v30, %s4547_s9 }
0x19b2   :  { %v2166_v13 = vpop.permute.xlu1 %2165 }
0x19b3   :  { %v2168_v41 = vmul.f32 %v4037_v7, %v2166_v13 }
0x19b5   :  { %v2175_v42 = vrot.slane %v2168_v41, 6 }
0x19b7   :  { %2176 = vrot.lane.b32.xlu0 %v2175_v42, %s4546_s15 }
0x1a29   :  { %v2177_v15 = vpop.permute.xlu0 %2176 }
0x1a2a   :  { %3580 = vmatmul.mubr.msk.f32.vlgmr.msra.gmra.mrb[26].mxu0 %vm1312_vm11, %v2177_v15 }
0x1a2b   :  { %3794 = vmatpush3.bf16.msra.mxu0 %v3791_v54  ;;  %v2660_v54 = vld [vmem:[%s5427_s27 + $0x60] sm:$0xff] }
0x1a2c   :  { %3796 = vmatprep.subr.bf16.mxu0 %v3795_v56 }
0x1a2f   :  { %3798 = vmatpush3.bf16.msra.mxu0 %v3795_v56  ;;  %v2665_v56 = vld [vmem:[%s5427_s27 + $0x88] sm:$0xff] }
0x1a30   :  { %3835 = vmatprep.subr.bf16.mxu0 %v4544_v1 }
0x1afd   :  { %v2246_v16 = vpop.f32.mrb[26].mxu0 }
0x1afe   :  { %v2250_v22 = vadd.f32 %v5124_v26, %v2246_v16  ;;  %v3581_v23 = vpop.f32.mrb[27].mxu0  ;;  %v2259_v26 = vrot.slane %v2162_v12, 6 }
0x1b00   :  { %4040 = vtanh.f32 %v2250_v22  ;;  %v3320_v27 = vmul.f32 -1.442695, %v2250_v22 }
0x1b02   :  { %4042 = vpow2.f32 %v3320_v27  ;;  %v2651_v27 = vld [vmem:[%s5427_s27 + $0x18] sm:$0xff] }
0x1b0a   :  { %v4041_v25 = vpop.eup %4040 }
0x1b0b   :  { %2263 = vrot.lane.b32.xlu1 %v4041_v25, %s4547_s9  ;;  %v2649_v25 = vld [vmem:[%s5427_s27 + $0x8] sm:$0xff] }
0x1b0c   :  { %v4043_v28 = vpop.eup %4042 }
0x1b0d   :  { %v2254_v29 = vadd.f32 1.0, %v4043_v28  ;;  %v2648_v28 = vld [vmem:[%s5427_s27] sm:$0xff] }
0x1b0f   :  { %4044 = vrcp.f32 %v2254_v29  ;;  %v3799_v29 = vpack.c.bf16 %v2651_v27, %v2649_v25  ;;  %v2680_v27 = vld [vmem:[%s5427_s27 + $0x100] sm:$0xff] }
0x1b19   :  { %v4045_v31 = vpop.eup %4044 }
0x1b1a   :  { %v2261_v38 = vmul.f32 %v4045_v31, %v2259_v26 }
0x1b7d   :  { %v2264_v32 = vpop.permute.xlu1 %2263 }
0x1b7e   :  { %v2266_v33 = vmul.f32 %v4045_v31, %v2264_v32  ;;  %v2653_v32 = vld [vmem:[%s5427_s27 + $0x28] sm:$0xff] }
0x1b80   :  { %2268 = vrot.lane.b32.xlu0 %v2266_v33, %s4546_s15  ;;  %v2655_v33 = vld [vmem:[%s5427_s27 + $0x38] sm:$0xff] }
0x1b84   :  { %1946 = vrot.lane.b32.xlu0 %v5144_v43, %s4546_s15 }
0x1b88   :  { %2170 = vrot.lane.b32.xlu0 %v2168_v41, %s4546_s15 }
0x1bf2   :  { %v2269_v40 = vpop.permute.xlu0 %2268 }
0x1bf3   :  { %v2271_v45 = vadd.f32 %v2269_v40, %v2261_v38  ;;  %v3803_v38 = vpack.c.bf16 %v2655_v33, %v2653_v32  ;;  %v2652_v40 = vld [vmem:[%s5427_s27 + $0x20] sm:$0xff]  ;;  %v3331_v32 = vld [vmem:[#allocation17] ss:$0 sm:$0xff] }
0x1bf5   :  { %4046 = vtanh.f32 %v2271_v45  ;;  %v2654_v45 = vld [vmem:[%s5427_s27 + $0x30] sm:$0xff] }
0x1bf6   :  { %v1947_v46 = vpop.permute.xlu0 %1946 }
0x1bf7   :  { %1950 = vst.msk [vmem:[#allocation2] sm:$0xc] %vm1949_vm15, %v1947_v46  ;;  %v2657_v46 = vld [vmem:[%s5427_s27 + $0x48] sm:$0xff] }
0x1bfa   :  { %v2171_v48 = vpop.permute.xlu0 %2170 }
0x1bfb   :  { %2174 = vst.msk [vmem:[#allocation2] sm:$0xc0] %vm2173_vm0, %v2171_v48  ;;  %v2659_v48 = vld [vmem:[%s5427_s27 + $0x58] sm:$0xff] }
0x1bff   :  { %v4047_v49 = vpop.eup %4046 }
0x1c00   :  { %2274 = vrot.lane.b32.xlu1 %v4047_v49, %s4547_s9  ;;  %v3805_v49 = vpack.c.bf16 %v2654_v45, %v2652_v40 }
0x1c04   :  { %2058 = vrot.lane.b32.xlu1 %v5158_v61, %s4546_s15 }
0x1c72   :  { %v2275_v43 = vpop.permute.xlu1 %2274 }
0x1c73   :  { %v2277_v34 = vmul.f32 %v4045_v31, %v2275_v43  ;;  %v2650_v31 = vld [vmem:[%s5427_s27 + $0x10] sm:$0xff]  ;;  %v3807_v43 = vpack.c.bf16 %v2659_v48, %v2657_v46 }
0x1c74   :  { %v3801_v26 = vpack.c.bf16 %v2650_v31, %v2648_v28  ;;  %v2682_v28 = vld [vmem:[%s5427_s27 + $0x110] sm:$0xff] }
0x1c75   :  { %2279 = vrot.lane.b32.xlu1 %v2277_v34, %s4546_s15  ;;  %v2656_v34 = vld [vmem:[%s5427_s27 + $0x40] sm:$0xff] }
0x1c76   :  { %v2059_v50 = vpop.permute.xlu1 %2058 }
0x1c77   :  { %2062 = vst.msk [vmem:[#allocation2] sm:$0x30] %vm2061_vm1, %v2059_v50  ;;  %v2658_v50 = vld [vmem:[%s5427_s27 + $0x50] sm:$0xff] }
0x1c78   :  { %v3809_v53 = vpack.c.bf16 %v2658_v50, %v2656_v34 }
0x1c7e   :  { %v2283_v57 = vld [vmem:[#allocation2] sm:$0xff] }
0x1c7f   :  { %v2292_v19 = vmul.f32 %v3321_v59, %v2283_v57 }
0x1c81   :  { %v2294_v61 = vsub.f32 %v2283_v57, %v2292_v19  ;;  %v3813_v57 = vpack.c.bf16 %v2662_v55, %v2660_v54 }
0x1ce7   :  { %v2280_v47 = vpop.permute.xlu1 %2279 }
0x1ce8   :  { %2282 = vst.msk [vmem:[#allocation2 + $0x8] sm:$0x3] %vm1840_vm14, %v2280_v47  ;;  %v2667_v47 = vld [vmem:[%s5427_s27 + $0x98] sm:$0xff] }
0x1cef   :  { %v2284_v60 = vld [vmem:[#allocation2 + $0x8] sm:$0x3] }
0x1cf0   :  { %v2293_v18 = vmul.f32 %v3321_v59, %v2284_v60  ;;  %v3815_v59 = vpack.c.bf16 %v2667_v47, %v2665_v56  ;;  %v2617_v47 = vld [vmem:[#allocation20] sm:$0xff] }
0x1cf2   :  { %v2295_v62 = vsub.f32 %v2284_v60, %v2293_v18  ;;  %v3785_v2 = vpack.c.bf16 %v2293_v18, %v2292_v19  ;;  %v2664_v19 = vld [vmem:[%s5427_s27 + $0x80] sm:$0xff]  ;;  %v2666_v60 = vld [vmem:[%s5427_s27 + $0x90] sm:$0xff]  ;;  %v2669_v18 = vld [vmem:[%s5427_s27 + $0xa8] sm:$0xff] }
0x1cf4   :  { %v3779_v63 = vpack.c.bf16 %v2295_v62, %v2294_v61  ;;  %v2671_v61 = vld [vmem:[%s5427_s27 + $0xb8] sm:$0xff]  ;;  %v3817_v62 = vpack.c.bf16 %v2666_v60, %v2664_v19 }
0x1cf5   :  { %v2618_v19 = vld [vmem:[#allocation20 + $0x8] sm:$0x3] }
0x1cf6   :  { %3781 = vmatprep.subr.msk.bf16.mxu1 %vm4978_vm10, %v3779_v63 }
0x1cf7   :  { %3784 = vmatpush3.bf16.msk.msra.mxu1 %vm4978_vm10, %v3779_v63  ;;  %v3819_v63 = vpack.c.bf16 %v2671_v61, %v2669_v18 }
0x1cf8   :  { %3787 = vmatprep.subr.msk.bf16.mxu1 %vm4978_vm10, %v3785_v2 }
0x1cfa   :  { %3587 = vmatmul.mubr.msk.f32.vlgmr.msra.gmra.mrb[12].mxu1 %vm778_vm8, %v2299_v3  ;;  %v2670_v3 = vld [vmem:[%s5427_s27 + $0xb0] sm:$0xff] }
0x1cfb   :  { %3790 = vmatpush3.bf16.msk.msra.mxu1 %vm4978_vm10, %v3785_v2  ;;  %3593 = vmatprep.mubr.msk.f32.mxu1 %vm778_vm8, %v2296_v17  ;;  %v2668_v2 = vld [vmem:[%s5427_s27 + $0xa0] sm:$0xff]  ;;  %v2673_v17 = vld [vmem:[%s5427_s27 + $0xc8] sm:$0xff] }
0x1cfc   :  { %3800 = vmatprep.subr.bf16.mxu1 %v3799_v29  ;;  %v3833_v29 = vpack.c.bf16 %v2682_v28, %v2680_v27  ;;  %v2900_v27 = vld [vmem:[%s5428_s21 + $0x78] sm:$0xff] }
0x1d02   :  { %3594 = vmatmul.mubr.msk.f32.vlgmr.msra.gmra.mrb[12].mxu1 %vm778_vm8, %v2297_v14  ;;  %v2675_v14 = vld [vmem:[%s5427_s27 + $0xd8] sm:$0xff] }
0x1d03   :  { %3802 = vmatpush1.bf16.msra.mxu1 %v3801_v26  ;;  %v3332_v26 = vld [vmem:[#allocation18] ss:$0 sm:$0xff] }
0x1d04   :  { %3804 = vmatprep.subr.bf16.mxu1 %v3803_v38 }
0x1d07   :  { %3806 = vmatpush1.bf16.msra.mxu1 %v3805_v49 }
0x1d08   :  { %3808 = vmatprep.subr.bf16.mxu1 %v3807_v43  ;;  %v2625_v43 = vld [vmem:[#allocation21] sm:$0xff] }
0x1d0b   :  { %3810 = vmatpush1.bf16.msra.mxu1 %v3809_v53 }
0x1d0c   :  { %3812 = vmatprep.subr.bf16.mxu1 %v3811_v44 }
0x1d0f   :  { %3814 = vmatpush1.bf16.msra.mxu1 %v3813_v57 }
0x1d10   :  { %3816 = vmatprep.subr.bf16.mxu1 %v3815_v59 }
0x1d13   :  { %3818 = vmatpush1.bf16.msra.mxu1 %v3817_v62 }
0x1d14   :  { %3820 = vmatprep.subr.bf16.mxu1 %v3819_v63 }
0x1dd5   :  { %v3595_v39 = vpop.f32.mrb[12].mxu1 }
0x1dd6   :  { %v2459_v4 = vpop.f32.mrb[13].mxu1 }
0x1dd7   :  { %3604 = vmatprep.mubr.msk.f32.mxu0 %vm1312_vm11, %v2459_v4  ;;  %v3823_v4 = vpack.c.bf16 %v2675_v14, %v2673_v17  ;;  %v2885_v17 = vld [vmem:[%s5428_s21] sm:$0xff]  ;;  %v2886_v14 = vld [vmem:[%s5428_s21 + $0x8] sm:$0xff] }
0x1dd8   :  { %3605 = vmatmul.mubr.msk.f32.vlgmr.msra.gmra.mrb[28].mxu0 %vm1312_vm11, %v3595_v39  ;;  %v3821_v39 = vpack.c.bf16 %v2670_v3, %v2668_v2 }
0x1dda   :  { %3822 = vmatpush1.bf16.msra.mxu1 %v3821_v39  ;;  %v3836_v39 = vpack.c.bf16 %v2886_v14, %v2885_v17 }
0x1ddb   :  { %3824 = vmatprep.subr.bf16.mxu1 %v3823_v4  ;;  %v2887_v4 = vld [vmem:[%s5428_s21 + $0x10] sm:$0xff] }
0x1ddc   :  { %3837 = vmatpush1.bf16.msra.mxu0 %v3836_v39 }
0x1ddd   :  { %3838 = vmatprep.subr.bf16.mxu0 %v4544_v1 }
0x1eab   :  { %v3606_v6 = vpop.f32.mrb[28].mxu0 }
0x1eac   :  { %v2557_v7 = vadd.f32 %v3606_v6, %v3328_v5  ;;  %v2551_v8 = vpop.f32.mrb[29].mxu0  ;;  %v2674_v6 = vld [vmem:[%s5427_s27 + $0xd0] sm:$0xff] }
0x1ead   :  { %v2552_v9 = vadd.f32 %v3328_v5, %v2551_v8  ;;  %v2672_v5 = vld [vmem:[%s5427_s27 + $0xc0] sm:$0xff] }
0x1eae   :  { %v2561_v10 = vadd.f32 %v2557_v7, %v5075_v37  ;;  %v3825_v7 = vpack.c.bf16 %v2674_v6, %v2672_v5  ;;  %v2888_v5 = vld [vmem:[%s5428_s21 + $0x18] sm:$0xff] }
0x1eaf   :  { %v2560_v11 = vadd.f32 %v2552_v9, %v5073_v36  ;;  %v3839_v6 = vpack.c.bf16 %v2888_v5, %v2887_v4 }
0x1eb0   :  { %v2567_v35 = vsel %vm1416_vm12, %v2561_v10, 0.0  ;;  %3826 = vmatpush1.bf16.msra.mxu1 %v3825_v7  ;;  %v2889_v7 = vld [vmem:[%s5428_s21 + $0x20] sm:$0xff] }
0x1eb1   :  { %2568 = vadd.xlane.f32.xlu1 %v2567_v35  ;;  %v2564_v12 = vsel %vm602_vm4, %v2560_v11, 0.0  ;;  %3840 = vmatpush1.bf16.msra.mxu0 %v3839_v6 }
0x1eb2   :  { %2565 = vadd.xlane.f32.xlu0 %v2564_v12  ;;  %3841 = vmatprep.subr.bf16.mxu0 %v4544_v1 }
0x1f3e   :  { %v2569_v30 = vpop.xlane.xlu1 %2568 }
0x1f3f   :  { %v2571_v13 = vmul.f32 0.020833334, %v2569_v30  ;;  %v2566_v41 = vpop.xlane.xlu0 %2565  ;;  %v2677_v30 = vld [vmem:[%s5427_s27 + $0xe8] sm:$0xff] }
0x1f40   :  { %v2570_v42 = vmul.f32 0.020833334, %v2566_v41 }
0x1f41   :  { %v5204_v15 = vsub.f32 %v2561_v10, %v2571_v13  ;;  %v2679_v13 = vld [vmem:[%s5427_s27 + $0xf8] sm:$0xff] }
0x1f42   :  { %v5206_v37 = vsub.f32 %v2560_v11, %v2570_v42  ;;  %v3827_v41 = vpack.c.bf16 %v2679_v13, %v2677_v30  ;;  %v2676_v42 = vld [vmem:[%s5427_s27 + $0xe0] sm:$0xff]  ;;  %v2894_v30 = vld [vmem:[%s5428_s21 + $0x48] sm:$0xff] }
0x1f43   :  { %v2575_v22 = vmul.f32 %v5204_v15, %v5204_v15 }
0x1f44   :  { %v2574_v36 = vmul.f32 %v5206_v37, %v5206_v37  ;;  %3828 = vmatprep.subr.bf16.mxu1 %v3827_v41  ;;  %v2895_v41 = vld [vmem:[%s5428_s21 + $0x50] sm:$0xff] }
0x1f45   :  { %v2579_v23 = vsel %vm1416_vm12, %v2575_v22, 0.0  ;;  %v2681_v22 = vld [vmem:[%s5427_s27 + $0x108] sm:$0xff] }
0x1f46   :  { %v2576_v16 = vsel %vm602_vm4, %v2574_v36, 0.0  ;;  %v2678_v36 = vld [vmem:[%s5427_s27 + $0xf0] sm:$0xff] }
0x1f47   :  { %2577 = vadd.xlane.f32.xlu0 %v2576_v16  ;;  %v3829_v16 = vpack.c.bf16 %v2678_v36, %v2676_v42  ;;  %v2896_v42 = vld [vmem:[%s5428_s21 + $0x58] sm:$0xff] }
0x1f48   :  { %v3851_v36 = vpack.c.bf16 %v2896_v42, %v2895_v41 }
0x1f49   :  { %3830 = vmatpush1.bf16.msra.mxu1 %v3829_v16  ;;  %v2897_v16 = vld [vmem:[%s5428_s21 + $0x60] sm:$0xff] }
0x1f4b   :  { %2580 = vadd.xlane.f32.xlu0 %v2579_v23  ;;  %v2683_v23 = vld [vmem:[%s5427_s27 + $0x118] sm:$0xff] }
0x1f4c   :  { %v3831_v25 = vpack.c.bf16 %v2683_v23, %v2681_v22  ;;  %v2898_v22 = vld [vmem:[%s5428_s21 + $0x68] sm:$0xff] }
0x1f4d   :  { %v3854_v23 = vpack.c.bf16 %v2898_v22, %v2897_v16 }
0x1f4e   :  { %3832 = vmatprep.subr.bf16.mxu1 %v3831_v25  ;;  %v2899_v25 = vld [vmem:[%s5428_s21 + $0x70] sm:$0xff] }
0x1f4f   :  { %3834 = vmatpush1.bf16.msra.mxu1 %v3833_v29  ;;  %v3857_v28 = vpack.c.bf16 %v2900_v27, %v2899_v25  ;;  %v2901_v29 = vld [vmem:[%s5428_s21 + $0x80] sm:$0xff] }
0x1f50   :  { %3871 = vmatprep.subr.bf16.mxu1 %v4544_v1 }
0x1fd4   :  { %v2578_v8 = vpop.xlane.xlu0 %2577 }
0x1fd5   :  { %v2582_v9 = vmul.f32 0.020833334, %v2578_v8  ;;  %v2890_v8 = vld [vmem:[%s5428_s21 + $0x28] sm:$0xff] }
0x1fd7   :  { %v2584_v10 = vadd.f32 1e-05, %v2582_v9  ;;  %v3842_v9 = vpack.c.bf16 %v2890_v8, %v2889_v7 }
0x1fd8   :  { %v2581_v11 = vpop.xlane.xlu0 %2580 }
0x1fd9   :  { %4048 = vrsqrt.f32 %v2584_v10  ;;  %v2583_v35 = vmul.f32 0.020833334, %v2581_v11  ;;  %3843 = vmatpush1.bf16.msra.mxu0 %v3842_v9  ;;  %v2891_v10 = vld [vmem:[%s5428_s21 + $0x30] sm:$0xff]  ;;  %v2892_v11 = vld [vmem:[%s5428_s21 + $0x38] sm:$0xff] }
0x1fda   :  { %3844 = vmatprep.subr.bf16.mxu0 %v4544_v1 }
0x1fdb   :  { %v2585_v12 = vadd.f32 1e-05, %v2583_v35  ;;  %v3845_v35 = vpack.c.bf16 %v2892_v11, %v2891_v10 }
0x1fdd   :  { %4050 = vrsqrt.f32 %v2585_v12  ;;  %3846 = vmatpush1.bf16.msra.mxu0 %v3845_v35  ;;  %v2893_v12 = vld [vmem:[%s5428_s21 + $0x40] sm:$0xff] }
0x1fde   :  { %3847 = vmatprep.subr.bf16.mxu0 %v4544_v1  ;;  %v3848_v13 = vpack.c.bf16 %v2894_v30, %v2893_v12 }
0x1fe1   :  { %3849 = vmatpush1.bf16.msra.mxu0 %v3848_v13 }
0x1fe2   :  { %3850 = vmatprep.subr.bf16.mxu0 %v4544_v1 }
0x1fe3   :  { %v4049_v31 = vpop.eup %4048 }
0x1fe4   :  { %v2588_v33 = vmul.f32 %v4049_v31, %v5206_v37  ;;  %v2902_v31 = vld [vmem:[%s5428_s21 + $0x88] sm:$0xff] }
0x1fe5   :  { %3852 = vmatpush1.bf16.msra.mxu0 %v3851_v36 }
0x1fe6   :  { %v2596_v38 = vmul.f32 %v3331_v32, %v2588_v33  ;;  %3853 = vmatprep.subr.bf16.mxu0 %v4544_v1  ;;  %v2903_v33 = vld [vmem:[%s5428_s21 + $0x90] sm:$0xff] }
0x1fe7   :  { %v4051_v40 = vpop.eup %4050 }
0x1fe8   :  { %v5252_v45 = vadd.f32 %v3332_v26, %v2596_v38  ;;  %v2589_v46 = vmul.f32 %v4051_v40, %v5204_v15  ;;  %v2905_v40 = vld [vmem:[%s5428_s21 + $0xa0] sm:$0xff] }
0x1fe9   :  { %3855 = vmatpush1.bf16.msra.mxu0 %v3854_v23 }
0x1fea   :  { %2629 = vrot.lane.b32.xlu1 %v5252_v45, %s4551_s8  ;;  %v2597_v48 = vmul.f32 %v3331_v32, %v2589_v46  ;;  %v2622_v34 = vrot.slane %v5252_v45, 1  ;;  %v2611_v50 = vrot.slane %v5252_v45, 7  ;;  %3856 = vmatprep.subr.bf16.mxu0 %v4544_v1  ;;  %v3860_v32 = vpack.c.bf16 %v2902_v31, %v2901_v29  ;;  %v2906_v46 = vld [vmem:[%s5428_s21 + $0xa8] sm:$0xff] }
0x1fec   :  { %v5257_v49 = vadd.f32 %v3332_v26, %v2597_v48  ;;  %v2904_v26 = vld [vmem:[%s5428_s21 + $0x98] sm:$0xff]  ;;  %v3866_v48 = vpack.c.bf16 %v2906_v46, %v2905_v40 }
0x1fed   :  { %3858 = vmatpush1.bf16.msra.mxu0 %v3857_v28  ;;  %v3863_v38 = vpack.c.bf16 %v2904_v26, %v2903_v33 }
0x1fee   :  { %2631 = vrot.lane.b32.xlu1 %v5257_v49, %s4551_s8  ;;  %v2607_v37 = vrot.slane %v5257_v49, 1  ;;  %v2612_v15 = vrot.slane %v5257_v49, 7  ;;  %3859 = vmatprep.subr.bf16.mxu0 %v4544_v1 }
0x1ff0   :  { %v2623_v52 = vsel %vm2621_vm3, %v2622_v34, %v2607_v37  ;;  %v2616_v53 = vsel %vm2610_vm6, %v2607_v37, %v2611_v50  ;;  %v2613_v44 = vsel %vm2610_vm6, %v2611_v50, %v2612_v15  ;;  %v2908_v37 = vld [vmem:[%s5428_s21 + $0xb8] sm:$0xff]  ;;  %v2684_v50 = vld [vmem:[#allocation23] sm:$0x3] }
0x1ff1   :  { %v2627_v54 = vmul.f32 %v2625_v43, %v2623_v52  ;;  %v2628_v55 = vmul.f32 %v2626_v51, %v2616_v53  ;;  %v2619_v59 = vmul.f32 %v2617_v47, %v2616_v53  ;;  %v2620_v62 = vmul.f32 %v2618_v19, %v2613_v44  ;;  %3861 = vmatpush1.bf16.msra.mxu0 %v3860_v32  ;;  %v2907_v43 = vld [vmem:[%s5428_s21 + $0xb0] sm:$0xff] }
0x1ff2   :  { %3862 = vmatprep.subr.bf16.mxu0 %v4544_v1  ;;  %v3869_v34 = vpack.c.bf16 %v2908_v37, %v2907_v43  ;;  %v2689_v51 = vrot.slane %v2684_v50, %v594_v21  ;;  %v2693_v15 = vrot.slane %v2684_v50, %v598_v24 }
0x1ff3   :  { %2637 = vrot.lane.b32.xlu0 %v2627_v54, %s4552_s18  ;;  %2639 = vrot.lane.b32.xlu1 %v2628_v55, %s4552_s18 }
0x1ff5   :  { %3864 = vmatpush1.bf16.msra.mxu0 %v3863_v38 }
0x1ff6   :  { %3865 = vmatprep.subr.bf16.mxu0 %v4544_v1 }
0x1ff9   :  { %3867 = vmatpush1.bf16.msra.mxu0 %v3866_v48 }
0x1ffa   :  { %3868 = vmatprep.subr.bf16.mxu0 %v4544_v1 }
0x1ffd   :  { %3870 = vmatpush1.bf16.msra.mxu0 %v3869_v34 }
0x205c   :  { %v2630_v56 = vpop.permute.xlu1 %2629 }
0x205d   :  { %v2643_v60 = vsel %vm602_vm4, %v2619_v59, %v2630_v56 }
0x2060   :  { %v2632_v57 = vpop.permute.xlu1 %2631 }
0x2061   :  { %v2644_v2 = vsel %vm602_vm4, %v2620_v62, %v2632_v57 }
0x2065   :  { %v2638_v18 = vpop.permute.xlu0 %2637  ;;  %v2640_v63 = vpop.permute.xlu1 %2639 }
0x2066   :  { %v2646_v61 = vsel %vm2645_vm7, %v2643_v60, %v2638_v18  ;;  %3333 = vmatprep.mubr.msk.f32.mxu1 %vm694_vm5, %v2638_v18  ;;  %v2647_v3 = vsel %vm2645_vm7, %v2644_v2, %v2640_v63 }
0x2067   :  { %2765 = vmatmul.mubr.f32.vlgmr.msra.gmra.mrb[14].mxu1 %v2646_v61 }
0x2068   :  { %3334 = vmatprep.mubr.msk.f32.mxu1 %vm694_vm5, %v2640_v63 }
0x206b   :  { %2771 = vmatmul.mubr.f32.gmra.mrb[16].mxu1 %v2647_v3 }
0x206c   :  { %3611 = vmatprep.mubr.msk.f32.mxu1 %vm4553_vm13, %v4543_v0 }
0x213a   :  { %v2766_v52 = vpop.f32.mrb[14].mxu1 }
0x213b   :  { %v5312_v53 = vadd.f32 %v2766_v52, %v2689_v51  ;;  %v2768_v44 = vpop.f32.mrb[15].mxu1 }
0x213c   :  { %v5314_v54 = vadd.f32 %v2768_v44, %v2693_v15 }
0x213d   :  { %v5317_v55 = vmul.f32 0.70710677, %v5312_v53 }
0x213e   :  { %v5320_v56 = vmul.f32 0.70710677, %v5314_v54  ;;  %v2772_v47 = vpop.f32.mrb[16].mxu1 }
0x213f   :  { %v2785_v57 = vand.u32 2147483647, %v5317_v55  ;;  %v5323_v59 = vadd.f32 %v2772_v47, %v2689_v51  ;;  %v2774_v21 = vpop.f32.mrb[17].mxu1  ;;  %vm2865_vm5 = vcmp.ge.f32.partialorder %v5317_v55, 0.0 }
0x2140   :  { %v2786_v20 = vand.u32 2147483647, %v5320_v56  ;;  %v5326_v24 = vadd.f32 %v2774_v21, %v2693_v15  ;;  %vm2866_vm9 = vcmp.ge.f32.partialorder %v5320_v56, 0.0 }
0x2141   :  { %v2789_v19 = vmul.f32 0.3275911, %v2785_v57  ;;  %v5329_v60 = vmul.f32 0.70710677, %v5323_v59  ;;  %v2841_v5 = vsub.f32 0.0, %v2785_v57 }
0x2142   :  { %v2790_v18 = vmul.f32 0.3275911, %v2786_v20  ;;  %v5332_v61 = vmul.f32 0.70710677, %v5326_v24  ;;  %v2842_v6 = vsub.f32 0.0, %v2786_v20 }
0x2143   :  { %v2793_v62 = vadd.f32 1.0, %v2789_v19  ;;  %v2787_v63 = vand.u32 2147483647, %v5329_v60  ;;  %v2845_v8 = vmul.f32 %v2841_v5, %v2785_v57  ;;  %vm2867_vm11 = vcmp.ge.f32.partialorder %v5329_v60, 0.0  ;;  %v3335_v60 = vld [vmem:[#allocation24] ss:$0 sm:$0xff] }
0x2144   :  { %v2794_v2 = vadd.f32 1.0, %v2790_v18  ;;  %v2788_v3 = vand.u32 2147483647, %v5332_v61  ;;  %v2846_v35 = vmul.f32 %v2842_v6, %v2786_v20  ;;  %vm2868_vm14 = vcmp.ge.f32.partialorder %v5332_v61, 0.0 }
0x2145   :  { %4052 = vrcp.f32 %v2793_v62  ;;  %v2791_v17 = vmul.f32 0.3275911, %v2787_v63  ;;  %v2843_v9 = vsub.f32 0.0, %v2787_v63  ;;  %v2849_v42 = vmul.f32 1.442695, %v2845_v8 }
0x2146   :  { %4054 = vrcp.f32 %v2794_v2  ;;  %v2792_v14 = vmul.f32 0.3275911, %v2788_v3  ;;  %v2844_v12 = vsub.f32 0.0, %v2788_v3  ;;  %v2851_v25 = vmul.f32 1.442695, %v2846_v35 }
0x2147   :  { %v2795_v39 = vadd.f32 1.0, %v2791_v17  ;;  %v2847_v16 = vmul.f32 %v2843_v9, %v2787_v63 }
0x2148   :  { %v2796_v4 = vadd.f32 1.0, %v2792_v14  ;;  %v2848_v27 = vmul.f32 %v2844_v12, %v2788_v3 }
0x2149   :  { %4056 = vrcp.f32 %v2795_v39  ;;  %v2853_v38 = vmul.f32 1.442695, %v2847_v16 }
0x214a   :  { %4058 = vrcp.f32 %v2796_v4  ;;  %v2855_v48 = vmul.f32 1.442695, %v2848_v27 }
0x214b   :  { %4060 = vpow2.f32 %v2849_v42 }
0x214c   :  { %4062 = vpow2.f32 %v2851_v25 }
0x214d   :  { %4064 = vpow2.f32 %v2853_v38 }
0x214e   :  { %4066 = vpow2.f32 %v2855_v48 }
0x214f   :  { %v4053_v7 = vpop.eup %4052 }
0x2150   :  { %v4055_v10 = vpop.eup %4054  ;;  %v2805_v11 = vmul.f32 1.0614054, %v4053_v7 }
0x2151   :  { %v2806_v30 = vmul.f32 1.0614054, %v4055_v10 }
0x2152   :  { %v2809_v13 = vadd.f32 -1.4531521, %v2805_v11 }
0x2153   :  { %v4057_v41 = vpop.eup %4056  ;;  %v2810_v36 = vadd.f32 -1.4531521, %v2806_v30 }
0x2154   :  { %v4059_v22 = vpop.eup %4058  ;;  %v2813_v23 = vmul.f32 %v4053_v7, %v2809_v13  ;;  %v2807_v28 = vmul.f32 1.0614054, %v4057_v41 }
0x2155   :  { %v2814_v29 = vmul.f32 %v4055_v10, %v2810_v36  ;;  %v2808_v31 = vmul.f32 1.0614054, %v4059_v22  ;;  %v4061_v3 = vpop.eup %4060 }
0x2156   :  { %v2817_v32 = vadd.f32 1.4214138, %v2813_v23  ;;  %v2811_v33 = vadd.f32 -1.4531521, %v2807_v28  ;;  %v4063_v39 = vpop.eup %4062 }
0x2157   :  { %v2818_v26 = vadd.f32 1.4214138, %v2814_v29  ;;  %v2812_v40 = vadd.f32 -1.4531521, %v2808_v31  ;;  %v4065_v35 = vpop.eup %4064  ;;  %v2778_v29 = vmul.f32 0.5, %v5314_v54  ;;  %v2779_v54 = vmul.f32 0.5, %v5323_v59 }
0x2158   :  { %v2821_v46 = vmul.f32 %v4053_v7, %v2817_v32  ;;  %v2815_v43 = vmul.f32 %v4057_v41, %v2811_v33  ;;  %v4067_v13 = vpop.eup %4066 }
0x2159   :  { %v2822_v37 = vmul.f32 %v4055_v10, %v2818_v26  ;;  %v2816_v34 = vmul.f32 %v4059_v22, %v2812_v40  ;;  %v2780_v40 = vmul.f32 0.5, %v5326_v24 }
0x215a   :  { %v2825_v50 = vadd.f32 -0.28449672, %v2821_v46  ;;  %v2819_v51 = vadd.f32 1.4214138, %v2815_v43 }
0x215b   :  { %v2826_v15 = vadd.f32 -0.28449672, %v2822_v37  ;;  %v2820_v52 = vadd.f32 1.4214138, %v2816_v34 }
0x215c   :  { %v2829_v44 = vmul.f32 %v4053_v7, %v2825_v50  ;;  %v2823_v47 = vmul.f32 %v4057_v41, %v2819_v51 }
0x215d   :  { %v2830_v57 = vmul.f32 %v4055_v10, %v2826_v15  ;;  %v2824_v21 = vmul.f32 %v4059_v22, %v2820_v52 }
0x215e   :  { %v2833_v20 = vadd.f32 0.2548296, %v2829_v44  ;;  %v2827_v19 = vadd.f32 -0.28449672, %v2823_v47 }
0x215f   :  { %v2834_v18 = vadd.f32 0.2548296, %v2830_v57  ;;  %v2828_v62 = vadd.f32 -0.28449672, %v2824_v21 }
0x2160   :  { %v2837_v63 = vmul.f32 %v4053_v7, %v2833_v20  ;;  %v2831_v2 = vmul.f32 %v4057_v41, %v2827_v19 }
0x2161   :  { %v2838_v17 = vmul.f32 %v4055_v10, %v2834_v18  ;;  %v2832_v14 = vmul.f32 %v4059_v22, %v2828_v62 }
0x2162   :  { %v2857_v4 = vmul.f32 %v4061_v3, %v2837_v63  ;;  %v2835_v5 = vadd.f32 0.2548296, %v2831_v2 }
0x2163   :  { %v2858_v6 = vmul.f32 %v4063_v39, %v2838_v17  ;;  %v2836_v8 = vadd.f32 0.2548296, %v2832_v14 }
0x2164   :  { %v2861_v9 = vsub.f32 1.0, %v2857_v4  ;;  %v2839_v11 = vmul.f32 %v4057_v41, %v2835_v5 }
0x2165   :  { %v2862_v12 = vsub.f32 1.0, %v2858_v6  ;;  %v2840_v30 = vmul.f32 %v4059_v22, %v2836_v8  ;;  %v2777_v22 = vmul.f32 0.5, %v5312_v53  ;;  %v3338_v6 = vld [vmem:[#allocation26] ss:$0 sm:$0xff] }
0x2166   :  { %v2869_v42 = vsub.f32 0.0, %v2861_v9  ;;  %v2859_v36 = vmul.f32 %v4065_v35, %v2839_v11  ;;  %v3339_v35 = vld [vmem:[#allocation27] ss:$0 sm:$0xff] }
0x2167   :  { %v2870_v7 = vsub.f32 0.0, %v2862_v12  ;;  %v2860_v16 = vmul.f32 %v4067_v13, %v2840_v30 }
0x2168   :  { %v2873_v23 = vsel %vm2865_vm5, %v2861_v9, %v2869_v42  ;;  %v2863_v10 = vsub.f32 1.0, %v2859_v36  ;;  %v3120_v42 = vld [vmem:[%s4733_s5] sm:$0xff]  ;;  %v3121_v36 = vld [vmem:[%s4733_s5 + $0x8] sm:$0xff] }
0x2169   :  { %v2877_v25 = vadd.f32 1.0, %v2873_v23  ;;  %v2874_v27 = vsel %vm2866_vm9, %v2862_v12, %v2870_v7  ;;  %v2864_v28 = vsub.f32 1.0, %v2860_v16  ;;  %v3043_v16 = vld [vmem:[%s4728_s25] sm:$0x3]  ;;  %v3876_v23 = vpack.c.bf16 %v3121_v36, %v3120_v42  ;;  %s4554_s25 = smov [#allocation30]  }
0x216a   :  { %v2878_v41 = vadd.f32 1.0, %v2874_v27  ;;  %v2871_v31 = vsub.f32 0.0, %v2863_v10  ;;  %s3214_s26 = sshll.u32 %s4554_s25, 4  ;;  %s3215_s26 = int_to_ptr.vmem [resolvable:$true] %s3214_s26 }
0x216b   :  { %v2872_v32 = vsub.f32 0.0, %v2864_v28  ;;  %v2881_v26 = vmul.f32 %v2877_v25, %v2777_v22  ;;  %v3123_v25 = vld [vmem:[%s4733_s5 + $0x18] sm:$0xff]  ;;  %s4446_s28 = scalar_lea.vmem %s3215_s26, 32  ;;  %p4451_p11 = scmp.lt.s32.totalorder %s3215_s26, %s3215_s26 }
0x216c   :  { %v2882_v33 = vmul.f32 %v2878_v41, %v2778_v29  ;;  %v2875_v55 = vsel %vm2867_vm11, %v2863_v10, %v2871_v31  ;;  %v3122_v10 = vld [vmem:[%s4733_s5 + $0x10] sm:$0xff]  ;;  %v3125_v29 = vld [vmem:[%s4733_s5 + $0x28] sm:$0xff]  ;;  %v3342_v22 = vld [vmem:[#allocation29] ss:$0 sm:$0xff]  ;;  %p4447_p10 = scmp.ne.s32.totalorder %s3215_s26, %s4446_s28  ;;  %p4452_p12 = scmp.lt.s32.totalorder %s4446_s28, %s4446_s28 }
0x216d   :  { %v2876_v38 = vsel %vm2868_vm14, %v2864_v28, %v2872_v32  ;;  %v2879_v56 = vadd.f32 1.0, %v2875_v55  ;;  %v3879_v27 = vpack.c.bf16 %v3123_v25, %v3122_v10  ;;  %v3124_v28 = vld [vmem:[%s4733_s5 + $0x20] sm:$0xff] }
0x216e   :  { %v2880_v46 = vadd.f32 1.0, %v2876_v38  ;;  %3336 = vmatprep.mubr.msk.f32.mxu0 %vm496_vm2, %v2882_v33  ;;  %v3882_v58 = vpack.c.bf16 %v3125_v29, %v3124_v28  ;;  %p4453_p13 = por %p4452_p12, %p4451_p11 }
0x216f   :  { %2987 = vmatmul.mubr.f32.vlgmr.msra.gmra.mrb[30].mxu0 %v2881_v26  ;;  %v2883_v53 = vmul.f32 %v2879_v56, %v2779_v54 }
0x2170   :  { %v2884_v48 = vmul.f32 %v2880_v46, %v2780_v40  ;;  %p4454_p0 = pnand %p4453_p13, %p4447_p10 }
0x2172   :  { %3337 = vmatprep.mubr.msk.f32.mxu0 %vm496_vm2, %v2884_v48  ;;  %vm3206_vm2 = vcmask 50176  }
0x2173   :  { %2992 = vmatmul.mubr.f32.gmra.mrb[32].mxu0 %v2883_v53 }
0x2242   :  { %v2988_v43 = vpop.f32.mrb[30].mxu0 }
0x2243   :  { %v2989_v61 = vadd.f32 %v3335_v60, %v2988_v43  ;;  %v2990_v37 = vpop.f32.mrb[31].mxu0 }
0x2245   :  { %v2997_v34 = vadd.f32 %v2989_v61, %v5252_v45 }
0x2246   :  { %v2993_v50 = vpop.f32.mrb[32].mxu0 }
0x2247   :  { %v2994_v51 = vadd.f32 %v3335_v60, %v2993_v50  ;;  %v2995_v24 = vpop.f32.mrb[33].mxu0  ;;  %v3001_v15 = vsel %vm602_vm4, %v2997_v34, 0.0 }
0x2248   :  { %3002 = vadd.xlane.f32.xlu0 %v3001_v15 }
0x2249   :  { %v2998_v59 = vadd.f32 %v2994_v51, %v5257_v49 }
0x224b   :  { %v3004_v52 = vsel %vm1416_vm12, %v2998_v59, 0.0 }
0x224c   :  { %3005 = vadd.xlane.f32.xlu1 %v3004_v52 }
0x22d5   :  { %v3003_v44 = vpop.xlane.xlu0 %3002 }
0x22d6   :  { %v3007_v47 = vmul.f32 0.020833334, %v3003_v44 }
0x22d8   :  { %v3009_v57 = vsub.f32 %v2997_v34, %v3007_v47 }
0x22d9   :  { %v3006_v21 = vpop.xlane.xlu1 %3005 }
0x22da   :  { %v3008_v20 = vmul.f32 0.020833334, %v3006_v21  ;;  %v3011_v19 = vmul.f32 %v3009_v57, %v3009_v57 }
0x22dc   :  { %v3010_v18 = vsub.f32 %v2998_v59, %v3008_v20  ;;  %v3013_v45 = vsel %vm602_vm4, %v3011_v19, 0.0 }
0x22dd   :  { %3014 = vadd.xlane.f32.xlu0 %v3013_v45 }
0x22de   :  { %v3012_v62 = vmul.f32 %v3010_v18, %v3010_v18 }
0x22e0   :  { %v3016_v63 = vsel %vm1416_vm12, %v3012_v62, 0.0 }
0x22e1   :  { %3017 = vadd.xlane.f32.xlu0 %v3016_v63 }
0x236a   :  { %v3015_v2 = vpop.xlane.xlu0 %3014 }
0x236b   :  { %v3019_v3 = vmul.f32 0.020833334, %v3015_v2 }
0x236d   :  { %v3021_v49 = vadd.f32 1e-05, %v3019_v3 }
0x236e   :  { %v3018_v17 = vpop.xlane.xlu0 %3017 }
0x236f   :  { %4068 = vrsqrt.f32 %v3021_v49  ;;  %v3020_v14 = vmul.f32 0.020833334, %v3018_v17 }
0x2371   :  { %v3022_v39 = vadd.f32 1e-05, %v3020_v14 }
0x2373   :  { %4070 = vrsqrt.f32 %v3022_v39 }
0x2379   :  { %v4069_v4 = vpop.eup %4068 }
0x237a   :  { %v3025_v5 = vmul.f32 %v4069_v4, %v3009_v57 }
0x237c   :  { %v3033_v9 = vmul.f32 %v3338_v6, %v3025_v5 }
0x237d   :  { %v4071_v8 = vpop.eup %4070 }
0x237e   :  { %v3026_v11 = vmul.f32 %v4071_v8, %v3010_v18  ;;  %v3041_v30 = vadd.f32 %v3339_v35, %v3033_v9 }
0x2380   :  { %v3034_v12 = vmul.f32 %v3338_v6, %v3026_v11 }
0x2382   :  { %v3042_v13 = vadd.f32 %v3339_v35, %v3034_v12 }
0x2384   :  { %v3872_v7 = vpack.c.bf16 %v3042_v13, %v3041_v30 }
0x2386   :  { %3874 = vmatpush3.bf16.msk.msra.mxu1 %vm4978_vm10, %v3872_v7 }
0x2387   :  { %3875 = vmatprep.subr.bf16.mxu1 %v4544_v1 }
0x2389   :  { %3612 = vmatmul.mubr.msk.f32.vlgmr.msra.gmra.mrb[18].mxu1 %vm778_vm8, %v3043_v16 }
0x238a   :  { %3877 = vmatpush3.bf16.msra.mxu1 %v3876_v23  ;;  %3626 = vmatprep.mubr.msk.f32.mxu1 %vm4553_vm13, %v4543_v0 }
0x238b   :  { %3878 = vmatprep.subr.bf16.mxu1 %v4544_v1 }
0x238e   :  { %3880 = vmatpush3.bf16.msra.mxu1 %v3879_v27 }
0x238f   :  { %3881 = vmatprep.subr.bf16.mxu1 %v4544_v1 }
0x2392   :  { %3883 = vmatpush3.bf16.msra.mxu1 %v3882_v58 }
0x245c   :  { %v3116_v41 = vpop.f32.mrb[18].mxu1 }
0x245d   :  { %v3613_v31 = vpop.f32.mrb[19].mxu1  ;;  %3627 = vmatmul.mubr.msk.f32.vlgmr.msra.gmra.mrb[20].mxu1 %vm602_vm4, %v3116_v41 }
0x2530   :  { %v3202_v32 = vpop.f32.mrb[20].mxu1 }
0x2531   :  { %v3203_v33 = vadd.f32 %v3342_v22, %v3202_v32  ;;  %v3628_v0 = vpop.f32.mrb[21].mxu1 }
0x2533   :  { %3207 = vst.msk [vmem:[#allocation30] sm:$0x3] %vm3206_vm2, %v3203_v33 }
0x2534   :  { %4457 = shalt.err (!%p4454_p0)
}
0x2535   :  { %s4458_s5 = scalar_lea.hbm %s4743_s13, 32 }
0x2536   :  { %p4459_p1 = scmp.ne.s32.totalorder %s4743_s13, %s4458_s5  ;;  %p4462_p2 = scmp.lt.u32.totalorder %s4458_s5, %s4743_s13 }
0x2538   :  { %p4464_p3 = pnand %p4462_p2, %p4459_p1 }
0x253a   :  { %4467 = shalt.err (!%p4464_p3)
}
0x253b   :  { %3217 = dma.vmem_to_hbm [thread:$0]  %s3215_s26, 32, %s4743_s13, [#allocation5]  }
0x253c   :  { %4486 = dma.done.wait [#allocation5], 32  }
0x253d   :  { %4487 = vsyncadd [#allocation5], 4294967264 }
0x253e   :  { %3221 = vsyncpa [#allocation4], 1 }
0x253f   :  { %3222 = vsyncpa [#allocation7], 1 }
0x2540   :  { %3223 = vsyncpa [#allocation10], 1 }
0x2541   :  { %3224 = vsyncpa [#allocation13], 1 }
0x2542   :  { %3225 = vsyncpa [#allocation16], 1 }
0x2543   :  { %3226 = vsyncpa [#allocation19], 1 }
0x2544   :  { %3227 = vsyncpa [#allocation22], 1 }
0x2545   :  { %3228 = vsyncpa [#allocation25], 1 }
0x2546   :  { %3229 = vsyncpa [#allocation28], 1 }
0x2547   :  { %3230 = vsyncpa [#allocation5], 1 }

</bundles_post_ra>
